<compile_context>
chip_gen: v7x
topology: tpu7x:2x2x1
jax: 0.10.0
libtpu: 0.0.40
codegen_flags: <defaults>
</compile_context>

<pallas_src>
import functools

import jax
import jax.numpy as jnp
from jax import lax
from jax.experimental import pallas as pl
from jax.experimental.pallas import tpu as pltpu

NEG_INF = -1e30
EPS = 1e-17
LN_EPS = 1e-5  # PyTorch LayerNorm default eps


def _bf16_dot(a, b):
    """MXU matmul with bf16 operands and f32 accumulation."""
    return jnp.dot(a.astype(jnp.bfloat16), b.astype(jnp.bfloat16),
                   preferred_element_type=jnp.float32)


# --------------------------------------------------------------------------
# Kernel 1: fused obs/input encoder + hoisted segment-invariant projections.
# --------------------------------------------------------------------------

def _encode_kernel(feat_ref, env_ref, act_ref,
                   obs_w_ref, obs_b_ref,
                   in_wo_ref, in_we_ref, in_wa_ref, in_b_ref,
                   wih_ref, lstm_b_ref,
                   dec_wo_ref, dec_we_ref, dec_b1_ref,
                   xw_ref, dpre_ref):
    obs_emb = _bf16_dot(feat_ref[...], obs_w_ref[...]) + obs_b_ref[...]
    env = env_ref[...]                                          # (N, 1)
    pre = (_bf16_dot(obs_emb, in_wo_ref[...])
           + env * in_we_ref[...]                               # (N,1)*(1,H)
           + _bf16_dot(act_ref[...], in_wa_ref[...])
           + in_b_ref[...])
    h = jnp.maximum(pre, 0.0)
    mean = jnp.mean(h, axis=-1, keepdims=True)
    var = jnp.mean(jnp.square(h - mean), axis=-1, keepdims=True)
    emb = (h - mean) * lax.rsqrt(var + LN_EPS)                  # LN, no affine
    # Segment-invariant projections (hoisted out of the K-segment loop).
    xw_ref[...] = _bf16_dot(emb, wih_ref[...]) + lstm_b_ref[...]
    dpre_ref[...] = (_bf16_dot(obs_emb, dec_wo_ref[...])
                     + env * dec_we_ref[...] + dec_b1_ref[...])


def encode_pallas(feat_tm, env_tm, act_tm, params):
    n = feat_tm.shape[0]
    h = params['obs_W'].shape[1]
    return pl.pallas_call(
        _encode_kernel,
        out_shape=(jax.ShapeDtypeStruct((n, 4 * h), jnp.float32),   # xw
                   jax.ShapeDtypeStruct((n, h), jnp.float32)),      # decoder base
    )(feat_tm, env_tm, act_tm,
      params['obs_W'], params['obs_b'],
      params['in_W_obs'], params['in_W_env'], params['in_W_act'], params['in_b'],
      params['lstm_Wih'], params['lstm_b'],
      params['dec_W_obs'], params['dec_W_env'], params['dec_b1'])


# --------------------------------------------------------------------------
# Kernel 2: all K segments in one grid=(K,) kernel (mask carried in VMEM).
# --------------------------------------------------------------------------

def _segments_kernel(xw_ref, dpre_ref, tgt_ref, len_ref,
                     whh_ref, b1w_ref, b1b_ref, b2w_ref, b2b_ref,
                     z1w_ref, z1b_ref, z2w_ref, z2b_ref,
                     dwz_ref, d2w_ref, d2b_ref,
                     enc_ref, logb_ref, samb_ref, maskout_ref, logz_ref,
                     rec_ref, nll_ref,
                     mask_sc,
                     *, T, B, H, A, K):
    f32 = jnp.float32
    k = pl.program_id(0)
    is_last = k == K - 1

    @pl.when(k == 0)
    def _init():
        mask_sc[...] = jnp.ones((T, B, 1), f32)

    # ---- masked LSTM recurrence (input projection hoisted to kernel 1) ----
    whh_b = whh_ref[...].astype(jnp.bfloat16)
    h = jnp.zeros((B, H), f32)
    c = jnp.zeros((B, H), f32)
    # Fully unrolled (T static) so the LLO scheduler overlaps the next step's
    # MXU push with this step's VPU/EUP gate math.
    # TODO(synk): for production H, pad H to a multiple of 128 (or give each
    # gate its own 128-lane-aligned block) so the gate slices are free views.
    for t in range(T):
        gates = xw_ref[t] + jnp.dot(h.astype(jnp.bfloat16), whh_b,
                                    preferred_element_type=f32)   # (B, 4H)
        i_g = jax.nn.sigmoid(gates[:, 0 * H:1 * H])
        f_g = jax.nn.sigmoid(gates[:, 1 * H:2 * H])
        g_g = jnp.tanh(gates[:, 2 * H:3 * H])
        o_g = jax.nn.sigmoid(gates[:, 3 * H:4 * H])
        c_un = f_g * c + i_g * g_g
        h_un = o_g * jnp.tanh(c_un)
        m = mask_sc[t]                                            # (B, 1)
        h = m * h_un
        c = m * c_un
        enc_ref[t] = h                                            # (B, H)

    enc3 = enc_ref[...]                                           # (T, B, H)

    # ---- boundary head, batched over all T*B rows (no per-step matmuls) ----
    enc2 = enc3.reshape(T * B, H)
    hb = jnp.maximum(_bf16_dot(enc2, b1w_ref[...]) + b1b_ref[...], 0.0)
    hb3 = hb.reshape(T, B, H)
    logb3 = jnp.sum(hb3 * b2w_ref[...], axis=-1, keepdims=True) + b2b_ref[...]

    pos3 = lax.broadcasted_iota(jnp.int32, (T, B, 1), 0)
    len3 = len_ref[...]                                           # (1, B, 1)

    lb3 = jnp.where(pos3 >= len3, NEG_INF, logb3)                 # length mask
    lb3 = jnp.where(pos3 == 0, NEG_INF, lb3)                      # no boundary at t=0
    maxv = jnp.max(lb3, axis=0, keepdims=True)
    amax = jnp.min(jnp.where(lb3 == maxv, pos3, T), axis=0, keepdims=True)
    # Last segment: boundary forced to lengths-1 (one-hot), as in the reference.
    bidx = jnp.where(is_last, len3 - 1, amax)                     # (1, B, 1)

    logb_ref[...] = lb3                                           # unused for last seg
    samb_ref[...] = (pos3 == bidx).astype(f32)

    # ---- boundary-weighted readout + latent head (eval: z = posterior mean) ----
    rsel = (pos3 == (bidx - 1)).astype(f32)                       # sample_b shifted by 1
    readout = jnp.sum(enc3 * rsel, axis=0)                        # (B, H)
    hz = jnp.maximum(_bf16_dot(readout, z1w_ref[...]) + z1b_ref[...], 0.0)
    logits_z = _bf16_dot(hz, z2w_ref[...]) + z2b_ref[...]         # (B, 2H)
    logz_ref[...] = logits_z
    sample_z = logits_z[:, :H]

    # ---- decoder (obs/env term hoisted; z broadcast in VMEM) + CE + NLL ----
    zw = _bf16_dot(sample_z, dwz_ref[...])                        # (B, H)
    hdec = jnp.maximum(dpre_ref[...] + zw, 0.0)                   # (T, B, H)
    logits = _bf16_dot(hdec.reshape(T * B, H), d2w_ref[...]) + d2b_ref[...]
    logits3 = logits.reshape(T, B, A)
    rec_ref[...] = logits3
    mx = jnp.max(logits3, axis=-1, keepdims=True)
    lse = mx + jnp.log(jnp.sum(jnp.exp(logits3 - mx), axis=-1, keepdims=True))
    ce3 = lse - jnp.sum(tgt_ref[...] * logits3, axis=-1, keepdims=True)   # (T,B,1)

    mask_entry = mask_sc[...]                                     # mask_{k-1}
    seg_prob = (pos3 < bidx).astype(f32) * mask_entry             # neg_cumsum * mask
    tvalid = (pos3 < (T - 1)).astype(f32)                         # [:, :-1]
    nll_ref[...] = jnp.sum(ce3 * seg_prob * tvalid, axis=0)       # (B, 1) per-row sum

    # ---- carry mask to next segment (running product == prod of cumsums) ----
    new_mask = mask_entry * (pos3 >= bidx).astype(f32)
    mask_sc[...] = new_mask
    maskout_ref[...] = new_mask


def segments_pallas(xw3, dpre3, tgt3, len3, params, *, T, B, H, A, K):
    def cspec(shape):
        zeros = (0,) * len(shape)
        return pl.BlockSpec(tuple(shape), lambda k, _z=zeros: _z)

    def kspec(shape):
        rest = tuple(shape[1:])
        zeros = (0,) * len(rest)
        return pl.BlockSpec((None,) + rest, lambda k, _z=zeros: (k,) + _z)

    kern = functools.partial(_segments_kernel, T=T, B=B, H=H, A=A, K=K)

    out_shapes = (
        jax.ShapeDtypeStruct((K, T, B, H), jnp.float32),    # encodings (time-major)
        jax.ShapeDtypeStruct((K, T, B, 1), jnp.float32),    # masked boundary logits
        jax.ShapeDtypeStruct((K, T, B, 1), jnp.float32),    # boundary samples
        jax.ShapeDtypeStruct((K, T, B, 1), jnp.float32),    # masks (after update)
        jax.ShapeDtypeStruct((K, B, 2 * H), jnp.float32),   # latent logits
        jax.ShapeDtypeStruct((K, T, B, A), jnp.float32),    # reconstruction logits
        jax.ShapeDtypeStruct((K, B, 1), jnp.float32),       # per-(seg, b) weighted CE
    )
    in_arrays = (xw3, dpre3, tgt3, len3,
                 params['lstm_Whh'],
                 params['b1_W'], params['b1_b'], params['b2_W'], params['b2_b'],
                 params['z1_W'], params['z1_b'], params['z2_W'], params['z2_b'],
                 params['dec_W_z'], params['dec2_W'], params['dec2_b'])

    grid_spec = pltpu.PrefetchScalarGridSpec(
        num_scalar_prefetch=0,
        grid=(K,),
        in_specs=[cspec(a.shape) for a in in_arrays],
        out_specs=tuple(kspec(s.shape) for s in out_shapes),
        scratch_shapes=[pltpu.VMEM((T, B, 1), jnp.float32)])   # carried segment mask

    return pl.pallas_call(
        kern,
        grid_spec=grid_spec,
        out_shape=out_shapes,
        compiler_params=pltpu.CompilerParams(
            dimension_semantics=("arbitrary",)),
    )(*in_arrays)


# --------------------------------------------------------------------------
# Parameters
# --------------------------------------------------------------------------

def init_params(key, V, H, A, num_envs):
    keys = jax.random.split(key, 26)

    def w(k, shape, scale=0.1):
        return (scale * jax.random.normal(k, shape)).astype(jnp.float32)

    return {
        'obs_W': w(keys[0], (V, H)), 'obs_b': w(keys[1], (1, H)),
        'env_emb': w(keys[2], (num_envs, 1)),
        'action_emb': w(keys[3], (A, H)),
        # input_encoder Linear(2H+1, H) split into [obs | env | act] blocks
        'in_W_obs': w(keys[4], (H, H)), 'in_W_env': w(keys[5], (1, H)),
        'in_W_act': w(keys[6], (H, H)), 'in_b': w(keys[7], (1, H)),
        # LSTMCell (bias_ih + bias_hh folded into a single bias)
        'lstm_Wih': w(keys[8], (H, 4 * H)), 'lstm_Whh': w(keys[9], (H, 4 * H)),
        'lstm_b': w(keys[10], (1, 4 * H)),
        # head_b_2 stored in the PyTorch (out=1, in=H) row layout
        'b1_W': w(keys[11], (H, H)), 'b1_b': w(keys[12], (1, H)),
        'b2_W': w(keys[13], (1, H)), 'b2_b': w(keys[14], (1, 1)),
        'z1_W': w(keys[15], (H, H)), 'z1_b': w(keys[16], (1, H)),
        'z2_W': w(keys[17], (H, 2 * H)), 'z2_b': w(keys[18], (1, 2 * H)),
        # decoder Linear(2H+1, H) split into [obs | env | z] blocks
        'dec_W_obs': w(keys[19], (H, H)), 'dec_W_env': w(keys[20], (1, H)),
        'dec_W_z': w(keys[21], (H, H)), 'dec_b1': w(keys[22], (1, H)),
        'dec2_W': w(keys[23], (H, A)), 'dec2_b': w(keys[24], (1, A)),
    }


# --------------------------------------------------------------------------
# Model forward (glue in plain JAX, run under one jax.jit)
# --------------------------------------------------------------------------

def compile_forward(params, features, env_id, action, lengths, cfg):
    B, T, V = features.shape
    H = cfg['hidden']
    A = cfg['action_size']
    K = cfg['max_num_segments']

    # Pad batch to a sublane multiple so every in-kernel tile/reshape is aligned.
    BP = max(8, ((B + 7) // 8) * 8)
    pad = BP - B
    features_p = jnp.pad(features, ((0, pad), (0, 0), (0, 0)))
    env_id_p = jnp.pad(env_id, ((0, pad), (0, 0)))
    action_p = jnp.pad(action, ((0, pad), (0, 0)))
    lengths_p = jnp.pad(lengths.astype(jnp.int32), (0, pad), constant_values=1)

    # ---- loop-invariant, time-major tensors (hoisted out of the K loop) ----
    feat_tm = jnp.transpose(features_p, (1, 0, 2)).reshape(T * BP, V)
    env_tm = params['env_emb'][jnp.transpose(env_id_p)].reshape(T * BP, 1)
    act_tm = params['action_emb'][jnp.transpose(action_p)].reshape(T * BP, H)
    tgt_tm = jax.nn.one_hot(jnp.transpose(action_p), A, dtype=jnp.float32)  # (T,BP,A)

    xw_flat, dpre_flat = encode_pallas(feat_tm, env_tm, act_tm, params)
    xw3 = xw_flat.reshape(T, BP, 4 * H)
    dpre3 = dpre_flat.reshape(T, BP, H)
    len3 = lengths_p.reshape(1, BP, 1)

    # ---- one fused pallas_call for all K segments ----
    enc_k, logb_k, samb_k, mask_k, logz_k, rec_k, nllb_k = segments_pallas(
        xw3, dpre3, tgt_tm, len3, params, T=T, B=BP, H=H, A=A, K=K)

    # Back to PyTorch (B, T, ...) layouts (stacked, once) and drop batch padding.
    enc_bt = jnp.transpose(enc_k, (0, 2, 1, 3))[:, :B]          # (K, B, T, H)
    logb_bt = jnp.transpose(logb_k[..., 0], (0, 2, 1))[:, :B]   # (K, B, T)
    samb_bt = jnp.transpose(samb_k[..., 0], (0, 2, 1))[:, :B]   # (K, B, T)
    mask_bt = jnp.transpose(mask_k[..., 0], (0, 2, 1))[:, :B]   # (K, B, T)
    rec_bt = jnp.transpose(rec_k, (0, 2, 1, 3))[:, :B]          # (K, B, T, A)
    logz = logz_k[:, :B]                                        # (K, B, 2H)
    nll_b = nllb_k[:, :B, 0]                                    # (K, B)

    # ----- compute_loss -----
    nll = jnp.sum(jnp.mean(nll_b, axis=1))
    mu = logz[:, :, :H]
    log_var = logz[:, :, H:]
    kl_z = jnp.sum(jnp.mean(
        -0.5 * jnp.sum(1.0 + log_var - mu ** 2 - jnp.exp(log_var), axis=-1),
        axis=-1))

    probs_b = jax.nn.softmax(logb_bt[0], axis=-1)
    rate = cfg['prior_rate']
    values = jnp.arange(1, T + 1, dtype=jnp.float32)[None, :]
    log_prior_un = (jnp.log(rate) * values - rate
                    - jax.scipy.special.gammaln(values + 1.0))
    log_prior_b = jax.nn.log_softmax(log_prior_un, axis=1)
    kl_b = K * jnp.mean(jnp.sum(
        probs_b[:, 1:] * (jnp.log(probs_b[:, 1:] + EPS) - log_prior_b[:, 1:]),
        axis=1))
    loss = nll + cfg['beta_z'] * kl_z + cfg['beta_b'] * kl_b

    # ----- reconstruction accuracy (static-shape masked reimplementation) -----
    bps = jnp.argmax(samb_bt, axis=2)                           # (K, B)
    preds = jnp.argmax(rec_bt, axis=-1)                         # (K, B, T)
    prev = jnp.zeros((B,), bps.dtype)
    prev_list, adj_list = [], []
    for k in range(K):
        prev_list.append(prev)
        cur = jnp.maximum(prev, bps[k])
        adj_list.append(cur)
        prev = cur
    prevs = jnp.stack(prev_list, 0)
    adj = jnp.stack(adj_list, 0)
    t_idx = jnp.arange(T)[None, None, :]
    cover = (t_idx >= prevs[:, :, None]) & (t_idx < adj[:, :, None])
    sel_pred = jnp.sum(jnp.where(cover, preds, 0), axis=0)      # (B, T)
    L = adj[-1]
    valid = jnp.arange(T)[None, :] < L[:, None]
    match = jnp.logical_and(sel_pred == action, valid).astype(jnp.float32)
    # PyTorch yields NaN for an empty reconstructed sequence; guard with max(L, 1).
    rec_acc = jnp.mean(jnp.sum(match, axis=1) / jnp.maximum(L, 1).astype(jnp.float32))

    result = {'loss': loss, 'nll': nll, 'kl_b': kl_b, 'kl_z': kl_z,
              'reconst_acc': rec_acc}
    all_b_samples = [samb_bt[k] for k in range(K)]
    all_b_logits = [logb_bt[k] for k in range(K - 1)] + [None]
    all_masks = [mask_bt[k] for k in range(K - 1)] + [None]
    all_z_logits = [logz[k] for k in range(K)]
    all_z_samples = [logz[k, :, :H] for k in range(K)]
    extras = {'segment': all_b_samples,
              'all_b': {'logits': all_b_logits, 'samples': all_b_samples},
              'all_z': {'logits': all_z_logits, 'samples': all_z_samples},
              'all_recs': [rec_bt[k] for k in range(K)],
              'all_encs': [enc_bt[k] for k in range(K)],
              'all_masks': all_masks}
    return result, extras


def make_forward(cfg):
    """Whole forward under one jax.jit (cfg closed over as static config)."""
    def fwd(params, features, env_id, action, lengths):
        return compile_forward(params, features, env_id, action, lengths, cfg)
    return jax.jit(fwd)


if __name__ == "__main__":
    B, T, V, H, A, K, NUM_ENVS = 2, 8, 10, 32, 6, 3, 4
    cfg = dict(hidden=H, action_size=A, max_num_segments=K,
               beta_b=0.1, beta_z=0.1, prior_rate=3.0)

    key = jax.random.PRNGKey(0)
    kp, kf, ke, ka = jax.random.split(key, 4)
    params = init_params(kp, V, H, A, NUM_ENVS)
    features = jax.random.normal(kf, (B, T, V), jnp.float32)
    env_id = jax.random.randint(ke, (B, T), 0, NUM_ENVS)
    action = jax.random.randint(ka, (B, T), 0, A)
    lengths = jnp.array([T, T - 2], dtype=jnp.int32)

    forward = make_forward(cfg)
    result, extras = forward(params, features, env_id, action, lengths)
    jax.block_until_ready(result['loss'])
    jax.block_until_ready(result['reconst_acc'])
    print("KERNEL_OK")
</pallas_src>

<mosaic_0001>
module attributes {stable_mosaic.version = 11 : i64} {
  func.func @_encode_kernel(%arg0: memref<64x10xf32, #tpu.memory_space<vmem>>, %arg1: memref<64x1xf32, #tpu.memory_space<vmem>>, %arg2: memref<64x32xf32, #tpu.memory_space<vmem>>, %arg3: memref<10x32xf32, #tpu.memory_space<vmem>>, %arg4: memref<1x32xf32, #tpu.memory_space<vmem>>, %arg5: memref<32x32xf32, #tpu.memory_space<vmem>>, %arg6: memref<1x32xf32, #tpu.memory_space<vmem>>, %arg7: memref<32x32xf32, #tpu.memory_space<vmem>>, %arg8: memref<1x32xf32, #tpu.memory_space<vmem>>, %arg9: memref<32x128xf32, #tpu.memory_space<vmem>>, %arg10: memref<1x128xf32, #tpu.memory_space<vmem>>, %arg11: memref<32x32xf32, #tpu.memory_space<vmem>>, %arg12: memref<1x32xf32, #tpu.memory_space<vmem>>, %arg13: memref<1x32xf32, #tpu.memory_space<vmem>>, %arg14: memref<64x128xf32, #tpu.memory_space<vmem>>, %arg15: memref<64x32xf32, #tpu.memory_space<vmem>>) attributes {dimension_semantics = [], scalar_prefetch = 0 : i64, scratch_operands = 0 : i64, tpu.core_type = #tpu.core_type<tc>} {
    %c0 = arith.constant 0 : index
    %c0_0 = arith.constant 0 : index
    %0 = vector.load %arg0[%c0, %c0_0] : memref<64x10xf32, #tpu.memory_space<vmem>>, vector<64x10xf32>
    %c0_1 = arith.constant 0 : index
    %c0_2 = arith.constant 0 : index
    %1 = vector.load %arg3[%c0_1, %c0_2] : memref<10x32xf32, #tpu.memory_space<vmem>>, vector<10x32xf32>
    %2 = arith.truncf %0 : vector<64x10xf32> to vector<64x10xbf16>
    %3 = arith.truncf %1 : vector<10x32xf32> to vector<10x32xbf16>
    %cst = arith.constant dense<0.000000e+00> : vector<64x32xf32>
    %4 = tpu.matmul %2, %3, %cst {dimension_numbers = #tpu.dot_dimension_numbers<[1], [0], [0], [1], [0, 0, 1, 1], [], []>} : vector<64x10xbf16>, vector<10x32xbf16>, vector<64x32xf32> -> vector<64x32xf32>
    %c0_3 = arith.constant 0 : index
    %c0_4 = arith.constant 0 : index
    %5 = vector.load %arg4[%c0_3, %c0_4] : memref<1x32xf32, #tpu.memory_space<vmem>>, vector<1x32xf32>
    %6 = vector.broadcast %5 : vector<1x32xf32> to vector<64x32xf32>
    %7 = arith.addf %4, %6 : vector<64x32xf32>
    %c0_5 = arith.constant 0 : index
    %c0_6 = arith.constant 0 : index
    %8 = vector.load %arg1[%c0_5, %c0_6] : memref<64x1xf32, #tpu.memory_space<vmem>>, vector<64x1xf32>
    %c0_7 = arith.constant 0 : index
    %c0_8 = arith.constant 0 : index
    %9 = vector.load %arg5[%c0_7, %c0_8] : memref<32x32xf32, #tpu.memory_space<vmem>>, vector<32x32xf32>
    %10 = arith.truncf %7 : vector<64x32xf32> to vector<64x32xbf16>
    %11 = arith.truncf %9 : vector<32x32xf32> to vector<32x32xbf16>
    %cst_9 = arith.constant dense<0.000000e+00> : vector<64x32xf32>
    %12 = tpu.matmul %10, %11, %cst_9 {dimension_numbers = #tpu.dot_dimension_numbers<[1], [0], [0], [1], [0, 0, 1, 1], [], []>} : vector<64x32xbf16>, vector<32x32xbf16>, vector<64x32xf32> -> vector<64x32xf32>
    %c0_10 = arith.constant 0 : index
    %c0_11 = arith.constant 0 : index
    %13 = vector.load %arg6[%c0_10, %c0_11] : memref<1x32xf32, #tpu.memory_space<vmem>>, vector<1x32xf32>
    %14 = vector.broadcast %8 : vector<64x1xf32> to vector<64x32xf32>
    %15 = vector.broadcast %13 : vector<1x32xf32> to vector<64x32xf32>
    %16 = arith.mulf %14, %15 : vector<64x32xf32>
    %17 = arith.addf %12, %16 : vector<64x32xf32>
    %c0_12 = arith.constant 0 : index
    %c0_13 = arith.constant 0 : index
    %18 = vector.load %arg2[%c0_12, %c0_13] : memref<64x32xf32, #tpu.memory_space<vmem>>, vector<64x32xf32>
    %c0_14 = arith.constant 0 : index
    %c0_15 = arith.constant 0 : index
    %19 = vector.load %arg7[%c0_14, %c0_15] : memref<32x32xf32, #tpu.memory_space<vmem>>, vector<32x32xf32>
    %20 = arith.truncf %18 : vector<64x32xf32> to vector<64x32xbf16>
    %21 = arith.truncf %19 : vector<32x32xf32> to vector<32x32xbf16>
    %cst_16 = arith.constant dense<0.000000e+00> : vector<64x32xf32>
    %22 = tpu.matmul %20, %21, %cst_16 {dimension_numbers = #tpu.dot_dimension_numbers<[1], [0], [0], [1], [0, 0, 1, 1], [], []>} : vector<64x32xbf16>, vector<32x32xbf16>, vector<64x32xf32> -> vector<64x32xf32>
    %23 = arith.addf %17, %22 : vector<64x32xf32>
    %c0_17 = arith.constant 0 : index
    %c0_18 = arith.constant 0 : index
    %24 = vector.load %arg8[%c0_17, %c0_18] : memref<1x32xf32, #tpu.memory_space<vmem>>, vector<1x32xf32>
    %25 = vector.broadcast %24 : vector<1x32xf32> to vector<64x32xf32>
    %26 = arith.addf %23, %25 : vector<64x32xf32>
    %cst_19 = arith.constant 0.000000e+00 : f32
    %27 = vector.broadcast %cst_19 : f32 to vector<64x32xf32>
    %28 = arith.maximumf %26, %27 : vector<64x32xf32>
    %cst_20 = arith.constant dense<0.000000e+00> : vector<64xf32>
    %29 = vector.multi_reduction <add>, %28, %cst_20 [1] : vector<64x32xf32> to vector<64xf32>
    %30 = vector.shape_cast %29 : vector<64xf32> to vector<64x1xf32>
    %cst_21 = arith.constant 3.200000e+01 : f32
    %31 = vector.broadcast %cst_21 : f32 to vector<64x1xf32>
    %32 = arith.divf %30, %31 : vector<64x1xf32>
    %33 = vector.broadcast %32 : vector<64x1xf32> to vector<64x32xf32>
    %34 = arith.subf %28, %33 : vector<64x32xf32>
    %35 = arith.mulf %34, %34 : vector<64x32xf32>
    %cst_22 = arith.constant dense<0.000000e+00> : vector<64xf32>
    %36 = vector.multi_reduction <add>, %35, %cst_22 [1] : vector<64x32xf32> to vector<64xf32>
    %37 = vector.shape_cast %36 : vector<64xf32> to vector<64x1xf32>
    %cst_23 = arith.constant 3.200000e+01 : f32
    %38 = vector.broadcast %cst_23 : f32 to vector<64x1xf32>
    %39 = arith.divf %37, %38 : vector<64x1xf32>
    %40 = vector.broadcast %32 : vector<64x1xf32> to vector<64x32xf32>
    %41 = arith.subf %28, %40 : vector<64x32xf32>
    %cst_24 = arith.constant 9.99999974E-6 : f32
    %42 = vector.broadcast %cst_24 : f32 to vector<64x1xf32>
    %43 = arith.addf %39, %42 : vector<64x1xf32>
    %44 = math.rsqrt %43 : vector<64x1xf32>
    %45 = vector.broadcast %44 : vector<64x1xf32> to vector<64x32xf32>
    %46 = arith.mulf %41, %45 : vector<64x32xf32>
    %c0_25 = arith.constant 0 : index
    %c0_26 = arith.constant 0 : index
    %47 = vector.load %arg9[%c0_25, %c0_26] : memref<32x128xf32, #tpu.memory_space<vmem>>, vector<32x128xf32>
    %48 = arith.truncf %46 : vector<64x32xf32> to vector<64x32xbf16>
    %49 = arith.truncf %47 : vector<32x128xf32> to vector<32x128xbf16>
    %cst_27 = arith.constant dense<0.000000e+00> : vector<64x128xf32>
    %50 = tpu.matmul %48, %49, %cst_27 {dimension_numbers = #tpu.dot_dimension_numbers<[1], [0], [0], [1], [0, 0, 1, 1], [], []>} : vector<64x32xbf16>, vector<32x128xbf16>, vector<64x128xf32> -> vector<64x128xf32>
    %c0_28 = arith.constant 0 : index
    %c0_29 = arith.constant 0 : index
    %51 = vector.load %arg10[%c0_28, %c0_29] : memref<1x128xf32, #tpu.memory_space<vmem>>, vector<1x128xf32>
    %52 = vector.broadcast %51 : vector<1x128xf32> to vector<64x128xf32>
    %53 = arith.addf %50, %52 : vector<64x128xf32>
    %c0_30 = arith.constant 0 : index
    %c0_31 = arith.constant 0 : index
    %54 = vector.load %arg14[%c0_30, %c0_31] : memref<64x128xf32, #tpu.memory_space<vmem>>, vector<64x128xf32>
    tpu.vector_store %arg14[%c0_30, %c0_31], %53 {strides = array<i32>} : memref<64x128xf32, #tpu.memory_space<vmem>>, vector<64x128xf32>,
    %c0_32 = arith.constant 0 : index
    %c0_33 = arith.constant 0 : index
    %55 = vector.load %arg11[%c0_32, %c0_33] : memref<32x32xf32, #tpu.memory_space<vmem>>, vector<32x32xf32>
    %56 = arith.truncf %7 : vector<64x32xf32> to vector<64x32xbf16>
    %57 = arith.truncf %55 : vector<32x32xf32> to vector<32x32xbf16>
    %cst_34 = arith.constant dense<0.000000e+00> : vector<64x32xf32>
    %58 = tpu.matmul %56, %57, %cst_34 {dimension_numbers = #tpu.dot_dimension_numbers<[1], [0], [0], [1], [0, 0, 1, 1], [], []>} : vector<64x32xbf16>, vector<32x32xbf16>, vector<64x32xf32> -> vector<64x32xf32>
    %c0_35 = arith.constant 0 : index
    %c0_36 = arith.constant 0 : index
    %59 = vector.load %arg12[%c0_35, %c0_36] : memref<1x32xf32, #tpu.memory_space<vmem>>, vector<1x32xf32>
    %60 = vector.broadcast %8 : vector<64x1xf32> to vector<64x32xf32>
    %61 = vector.broadcast %59 : vector<1x32xf32> to vector<64x32xf32>
    %62 = arith.mulf %60, %61 : vector<64x32xf32>
    %63 = arith.addf %58, %62 : vector<64x32xf32>
    %c0_37 = arith.constant 0 : index
    %c0_38 = arith.constant 0 : index
    %64 = vector.load %arg13[%c0_37, %c0_38] : memref<1x32xf32, #tpu.memory_space<vmem>>, vector<1x32xf32>
    %65 = vector.broadcast %64 : vector<1x32xf32> to vector<64x32xf32>
    %66 = arith.addf %63, %65 : vector<64x32xf32>
    %c0_39 = arith.constant 0 : index
    %c0_40 = arith.constant 0 : index
    %67 = vector.load %arg15[%c0_39, %c0_40] : memref<64x32xf32, #tpu.memory_space<vmem>>, vector<64x32xf32>
    tpu.vector_store %arg15[%c0_39, %c0_40], %66 {strides = array<i32>} : memref<64x32xf32, #tpu.memory_space<vmem>>, vector<64x32xf32>,
    return
  }
}

module attributes {stable_mosaic.version = 11 : i64} {
  func.func @_segments_kernel(%arg0: i32, %arg1: memref<8x8x128xf32, #tpu.memory_space<vmem>>, %arg2: memref<8x8x32xf32, #tpu.memory_space<vmem>>, %arg3: memref<8x8x6xf32, #tpu.memory_space<vmem>>, %arg4: memref<1x8x1xi32, #tpu.memory_space<vmem>>, %arg5: memref<32x128xf32, #tpu.memory_space<vmem>>, %arg6: memref<32x32xf32, #tpu.memory_space<vmem>>, %arg7: memref<1x32xf32, #tpu.memory_space<vmem>>, %arg8: memref<1x32xf32, #tpu.memory_space<vmem>>, %arg9: memref<1x1xf32, #tpu.memory_space<vmem>>, %arg10: memref<32x32xf32, #tpu.memory_space<vmem>>, %arg11: memref<1x32xf32, #tpu.memory_space<vmem>>, %arg12: memref<32x64xf32, #tpu.memory_space<vmem>>, %arg13: memref<1x64xf32, #tpu.memory_space<vmem>>, %arg14: memref<32x32xf32, #tpu.memory_space<vmem>>, %arg15: memref<32x6xf32, #tpu.memory_space<vmem>>, %arg16: memref<1x6xf32, #tpu.memory_space<vmem>>, %arg17: memref<1x8x8x32xf32, #tpu.memory_space<vmem>>, %arg18: memref<1x8x8x1xf32, #tpu.memory_space<vmem>>, %arg19: memref<1x8x8x1xf32, #tpu.memory_space<vmem>>, %arg20: memref<1x8x8x1xf32, #tpu.memory_space<vmem>>, %arg21: memref<1x8x64xf32, #tpu.memory_space<vmem>>, %arg22: memref<1x8x8x6xf32, #tpu.memory_space<vmem>>, %arg23: memref<1x8x1xf32, #tpu.memory_space<vmem>>, %arg24: memref<8x8x1xf32, #tpu.memory_space<vmem>>) attributes {dimension_semantics = [#tpu.dimension_semantics<arbitrary>], iteration_bounds = array<i64: 3>, scalar_prefetch = 0 : i64, scratch_operands = 1 : i64, tpu.core_type = #tpu.core_type<tc>, window_params = [{pipeline_mode = #tpu.pipeline_mode<synchronous>, transform_indices = @transform_0, window_bounds = array<i64: 8, 8, 128>}, {pipeline_mode = #tpu.pipeline_mode<synchronous>, transform_indices = @transform_1, window_bounds = array<i64: 8, 8, 32>}, {pipeline_mode = #tpu.pipeline_mode<synchronous>, transform_indices = @transform_2, window_bounds = array<i64: 8, 8, 6>}, {pipeline_mode = #tpu.pipeline_mode<synchronous>, transform_indices = @transform_3, window_bounds = array<i64: 1, 8, 1>}, {pipeline_mode = #tpu.pipeline_mode<synchronous>, transform_indices = @transform_4, window_bounds = array<i64: 32, 128>}, {pipeline_mode = #tpu.pipeline_mode<synchronous>, transform_indices = @transform_5, window_bounds = array<i64: 32, 32>}, {pipeline_mode = #tpu.pipeline_mode<synchronous>, transform_indices = @transform_6, window_bounds = array<i64: 1, 32>}, {pipeline_mode = #tpu.pipeline_mode<synchronous>, transform_indices = @transform_7, window_bounds = array<i64: 1, 32>}, {pipeline_mode = #tpu.pipeline_mode<synchronous>, transform_indices = @transform_8, window_bounds = array<i64: 1, 1>}, {pipeline_mode = #tpu.pipeline_mode<synchronous>, transform_indices = @transform_9, window_bounds = array<i64: 32, 32>}, {pipeline_mode = #tpu.pipeline_mode<synchronous>, transform_indices = @transform_10, window_bounds = array<i64: 1, 32>}, {pipeline_mode = #tpu.pipeline_mode<synchronous>, transform_indices = @transform_11, window_bounds = array<i64: 32, 64>}, {pipeline_mode = #tpu.pipeline_mode<synchronous>, transform_indices = @transform_12, window_bounds = array<i64: 1, 64>}, {pipeline_mode = #tpu.pipeline_mode<synchronous>, transform_indices = @transform_13, window_bounds = array<i64: 32, 32>}, {pipeline_mode = #tpu.pipeline_mode<synchronous>, transform_indices = @transform_14, window_bounds = array<i64: 32, 6>}, {pipeline_mode = #tpu.pipeline_mode<synchronous>, transform_indices = @transform_15, window_bounds = array<i64: 1, 6>}, {transform_indices = @transform_16, window_bounds = array<i64: 1, 8, 8, 32>}, {transform_indices = @transform_17, window_bounds = array<i64: 1, 8, 8, 1>}, {transform_indices = @transform_18, window_bounds = array<i64: 1, 8, 8, 1>}, {transform_indices = @transform_19, window_bounds = array<i64: 1, 8, 8, 1>}, {transform_indices = @transform_20, window_bounds = array<i64: 1, 8, 64>}, {transform_indices = @transform_21, window_bounds = array<i64: 1, 8, 8, 6>}, {transform_indices = @transform_22, window_bounds = array<i64: 1, 8, 1>}]} {
    %c2_i32 = arith.constant 2 : i32
    %0 = arith.cmpi eq, %arg0, %c2_i32 : i32
    %c0_i32 = arith.constant 0 : i32
    %1 = arith.cmpi eq, %arg0, %c0_i32 : i32
    %2 = arith.extui %1 : i1 to i32
    %c0_i32_0 = arith.constant 0 : i32
    %3 = arith.cmpi ne, %2, %c0_i32_0 : i32
    scf.if %3 {
      %cst_191 = arith.constant 1.000000e+00 : f32
      %462 = vector.broadcast %cst_191 : f32 to vector<8x8x1xf32>
      %c0_192 = arith.constant 0 : index
      %c0_193 = arith.constant 0 : index
      %c0_194 = arith.constant 0 : index
      %463 = vector.load %arg24[%c0_192, %c0_193, %c0_194] : memref<8x8x1xf32, #tpu.memory_space<vmem>>, vector<8x8x1xf32>
      tpu.vector_store %arg24[%c0_192, %c0_193, %c0_194], %462 {strides = array<i32>} : memref<8x8x1xf32, #tpu.memory_space<vmem>>, vector<8x8x1xf32>,
    } else {
    }
    %c0 = arith.constant 0 : index
    %c0_1 = arith.constant 0 : index
    %4 = vector.load %arg5[%c0, %c0_1] : memref<32x128xf32, #tpu.memory_space<vmem>>, vector<32x128xf32>
    %5 = arith.truncf %4 : vector<32x128xf32> to vector<32x128xbf16>
    %cst = arith.constant 0.000000e+00 : f32
    %6 = vector.broadcast %cst : f32 to vector<8x32xf32>
    %cst_2 = arith.constant 0.000000e+00 : f32
    %7 = vector.broadcast %cst_2 : f32 to vector<8x32xf32>
    %c0_3 = arith.constant 0 : index
    %c0_4 = arith.constant 0 : index
    %c0_5 = arith.constant 0 : index
    %8 = vector.load %arg1[%c0_3, %c0_4, %c0_5] : memref<8x8x128xf32, #tpu.memory_space<vmem>>, vector<1x8x128xf32>
    %9 = vector.shape_cast %8 : vector<1x8x128xf32> to vector<8x128xf32>
    %10 = arith.truncf %6 : vector<8x32xf32> to vector<8x32xbf16>
    %cst_6 = arith.constant dense<0.000000e+00> : vector<8x128xf32>
    %11 = tpu.matmul %10, %5, %cst_6 {dimension_numbers = #tpu.dot_dimension_numbers<[1], [0], [0], [1], [0, 0, 1, 1], [], []>} : vector<8x32xbf16>, vector<32x128xbf16>, vector<8x128xf32> -> vector<8x128xf32>
    %12 = arith.addf %9, %11 : vector<8x128xf32>
    %13 = vector.extract_strided_slice %12 {offsets = [0, 0], sizes = [8, 32], strides = [1, 1]} : vector<8x128xf32> to vector<8x32xf32>
    %14 = arith.negf %13 : vector<8x32xf32>
    %15 = math.exp %14 : vector<8x32xf32>
    %cst_7 = arith.constant 1.000000e+00 : f32
    %16 = vector.broadcast %cst_7 : f32 to vector<8x32xf32>
    %17 = arith.addf %16, %15 : vector<8x32xf32>
    %18 = arith.divf %16, %17 : vector<8x32xf32>
    %19 = vector.extract_strided_slice %12 {offsets = [0, 32], sizes = [8, 32], strides = [1, 1]} : vector<8x128xf32> to vector<8x32xf32>
    %20 = arith.negf %19 : vector<8x32xf32>
    %21 = math.exp %20 : vector<8x32xf32>
    %cst_8 = arith.constant 1.000000e+00 : f32
    %22 = vector.broadcast %cst_8 : f32 to vector<8x32xf32>
    %23 = arith.addf %22, %21 : vector<8x32xf32>
    %24 = arith.divf %22, %23 : vector<8x32xf32>
    %25 = vector.extract_strided_slice %12 {offsets = [0, 64], sizes = [8, 32], strides = [1, 1]} : vector<8x128xf32> to vector<8x32xf32>
    %26 = math.tanh %25 : vector<8x32xf32>
    %27 = vector.extract_strided_slice %12 {offsets = [0, 96], sizes = [8, 32], strides = [1, 1]} : vector<8x128xf32> to vector<8x32xf32>
    %28 = arith.negf %27 : vector<8x32xf32>
    %29 = math.exp %28 : vector<8x32xf32>
    %cst_9 = arith.constant 1.000000e+00 : f32
    %30 = vector.broadcast %cst_9 : f32 to vector<8x32xf32>
    %31 = arith.addf %30, %29 : vector<8x32xf32>
    %32 = arith.divf %30, %31 : vector<8x32xf32>
    %33 = arith.mulf %24, %7 : vector<8x32xf32>
    %34 = arith.mulf %18, %26 : vector<8x32xf32>
    %35 = arith.addf %33, %34 : vector<8x32xf32>
    %36 = math.tanh %35 : vector<8x32xf32>
    %37 = arith.mulf %32, %36 : vector<8x32xf32>
    %c0_10 = arith.constant 0 : index
    %c0_11 = arith.constant 0 : index
    %c0_12 = arith.constant 0 : index
    %38 = vector.load %arg24[%c0_10, %c0_11, %c0_12] : memref<8x8x1xf32, #tpu.memory_space<vmem>>, vector<1x8x1xf32>
    %39 = vector.shape_cast %38 : vector<1x8x1xf32> to vector<8x1xf32>
    %40 = vector.broadcast %39 : vector<8x1xf32> to vector<8x32xf32>
    %41 = arith.mulf %40, %37 : vector<8x32xf32>
    %42 = vector.broadcast %39 : vector<8x1xf32> to vector<8x32xf32>
    %43 = arith.mulf %42, %35 : vector<8x32xf32>
    %c0_13 = arith.constant 0 : index
    %c0_14 = arith.constant 0 : index
    %c0_15 = arith.constant 0 : index
    %c0_16 = arith.constant 0 : index
    %44 = vector.load %arg17[%c0_13, %c0_14, %c0_15, %c0_16] : memref<1x8x8x32xf32, #tpu.memory_space<vmem>>, vector<1x1x8x32xf32>
    %45 = vector.shape_cast %44 : vector<1x1x8x32xf32> to vector<8x32xf32>
    %46 = vector.shape_cast %41 : vector<8x32xf32> to vector<1x1x8x32xf32>
    tpu.vector_store %arg17[%c0_13, %c0_14, %c0_15, %c0_16], %46 {strides = array<i32>} : memref<1x8x8x32xf32, #tpu.memory_space<vmem>>, vector<1x1x8x32xf32>,
    %c1 = arith.constant 1 : index
    %c0_17 = arith.constant 0 : index
    %c0_18 = arith.constant 0 : index
    %47 = vector.load %arg1[%c1, %c0_17, %c0_18] : memref<8x8x128xf32, #tpu.memory_space<vmem>>, vector<1x8x128xf32>
    %48 = vector.shape_cast %47 : vector<1x8x128xf32> to vector<8x128xf32>
    %49 = arith.truncf %41 : vector<8x32xf32> to vector<8x32xbf16>
    %cst_19 = arith.constant dense<0.000000e+00> : vector<8x128xf32>
    %50 = tpu.matmul %49, %5, %cst_19 {dimension_numbers = #tpu.dot_dimension_numbers<[1], [0], [0], [1], [0, 0, 1, 1], [], []>} : vector<8x32xbf16>, vector<32x128xbf16>, vector<8x128xf32> -> vector<8x128xf32>
    %51 = arith.addf %48, %50 : vector<8x128xf32>
    %52 = vector.extract_strided_slice %51 {offsets = [0, 0], sizes = [8, 32], strides = [1, 1]} : vector<8x128xf32> to vector<8x32xf32>
    %53 = arith.negf %52 : vector<8x32xf32>
    %54 = math.exp %53 : vector<8x32xf32>
    %cst_20 = arith.constant 1.000000e+00 : f32
    %55 = vector.broadcast %cst_20 : f32 to vector<8x32xf32>
    %56 = arith.addf %55, %54 : vector<8x32xf32>
    %57 = arith.divf %55, %56 : vector<8x32xf32>
    %58 = vector.extract_strided_slice %51 {offsets = [0, 32], sizes = [8, 32], strides = [1, 1]} : vector<8x128xf32> to vector<8x32xf32>
    %59 = arith.negf %58 : vector<8x32xf32>
    %60 = math.exp %59 : vector<8x32xf32>
    %cst_21 = arith.constant 1.000000e+00 : f32
    %61 = vector.broadcast %cst_21 : f32 to vector<8x32xf32>
    %62 = arith.addf %61, %60 : vector<8x32xf32>
    %63 = arith.divf %61, %62 : vector<8x32xf32>
    %64 = vector.extract_strided_slice %51 {offsets = [0, 64], sizes = [8, 32], strides = [1, 1]} : vector<8x128xf32> to vector<8x32xf32>
    %65 = math.tanh %64 : vector<8x32xf32>
    %66 = vector.extract_strided_slice %51 {offsets = [0, 96], sizes = [8, 32], strides = [1, 1]} : vector<8x128xf32> to vector<8x32xf32>
    %67 = arith.negf %66 : vector<8x32xf32>
    %68 = math.exp %67 : vector<8x32xf32>
    %cst_22 = arith.constant 1.000000e+00 : f32
    %69 = vector.broadcast %cst_22 : f32 to vector<8x32xf32>
    %70 = arith.addf %69, %68 : vector<8x32xf32>
    %71 = arith.divf %69, %70 : vector<8x32xf32>
    %72 = arith.mulf %63, %43 : vector<8x32xf32>
    %73 = arith.mulf %57, %65 : vector<8x32xf32>
    %74 = arith.addf %72, %73 : vector<8x32xf32>
    %75 = math.tanh %74 : vector<8x32xf32>
    %76 = arith.mulf %71, %75 : vector<8x32xf32>
    %c1_23 = arith.constant 1 : index
    %c0_24 = arith.constant 0 : index
    %c0_25 = arith.constant 0 : index
    %77 = vector.load %arg24[%c1_23, %c0_24, %c0_25] : memref<8x8x1xf32, #tpu.memory_space<vmem>>, vector<1x8x1xf32>
    %78 = vector.shape_cast %77 : vector<1x8x1xf32> to vector<8x1xf32>
    %79 = vector.broadcast %78 : vector<8x1xf32> to vector<8x32xf32>
    %80 = arith.mulf %79, %76 : vector<8x32xf32>
    %81 = vector.broadcast %78 : vector<8x1xf32> to vector<8x32xf32>
    %82 = arith.mulf %81, %74 : vector<8x32xf32>
    %c0_26 = arith.constant 0 : index
    %c1_27 = arith.constant 1 : index
    %c0_28 = arith.constant 0 : index
    %c0_29 = arith.constant 0 : index
    %83 = vector.load %arg17[%c0_26, %c1_27, %c0_28, %c0_29] : memref<1x8x8x32xf32, #tpu.memory_space<vmem>>, vector<1x1x8x32xf32>
    %84 = vector.shape_cast %83 : vector<1x1x8x32xf32> to vector<8x32xf32>
    %85 = vector.shape_cast %80 : vector<8x32xf32> to vector<1x1x8x32xf32>
    tpu.vector_store %arg17[%c0_26, %c1_27, %c0_28, %c0_29], %85 {strides = array<i32>} : memref<1x8x8x32xf32, #tpu.memory_space<vmem>>, vector<1x1x8x32xf32>,
    %c2 = arith.constant 2 : index
    %c0_30 = arith.constant 0 : index
    %c0_31 = arith.constant 0 : index
    %86 = vector.load %arg1[%c2, %c0_30, %c0_31] : memref<8x8x128xf32, #tpu.memory_space<vmem>>, vector<1x8x128xf32>
    %87 = vector.shape_cast %86 : vector<1x8x128xf32> to vector<8x128xf32>
    %88 = arith.truncf %80 : vector<8x32xf32> to vector<8x32xbf16>
    %cst_32 = arith.constant dense<0.000000e+00> : vector<8x128xf32>
    %89 = tpu.matmul %88, %5, %cst_32 {dimension_numbers = #tpu.dot_dimension_numbers<[1], [0], [0], [1], [0, 0, 1, 1], [], []>} : vector<8x32xbf16>, vector<32x128xbf16>, vector<8x128xf32> -> vector<8x128xf32>
    %90 = arith.addf %87, %89 : vector<8x128xf32>
    %91 = vector.extract_strided_slice %90 {offsets = [0, 0], sizes = [8, 32], strides = [1, 1]} : vector<8x128xf32> to vector<8x32xf32>
    %92 = arith.negf %91 : vector<8x32xf32>
    %93 = math.exp %92 : vector<8x32xf32>
    %cst_33 = arith.constant 1.000000e+00 : f32
    %94 = vector.broadcast %cst_33 : f32 to vector<8x32xf32>
    %95 = arith.addf %94, %93 : vector<8x32xf32>
    %96 = arith.divf %94, %95 : vector<8x32xf32>
    %97 = vector.extract_strided_slice %90 {offsets = [0, 32], sizes = [8, 32], strides = [1, 1]} : vector<8x128xf32> to vector<8x32xf32>
    %98 = arith.negf %97 : vector<8x32xf32>
    %99 = math.exp %98 : vector<8x32xf32>
    %cst_34 = arith.constant 1.000000e+00 : f32
    %100 = vector.broadcast %cst_34 : f32 to vector<8x32xf32>
    %101 = arith.addf %100, %99 : vector<8x32xf32>
    %102 = arith.divf %100, %101 : vector<8x32xf32>
    %103 = vector.extract_strided_slice %90 {offsets = [0, 64], sizes = [8, 32], strides = [1, 1]} : vector<8x128xf32> to vector<8x32xf32>
    %104 = math.tanh %103 : vector<8x32xf32>
    %105 = vector.extract_strided_slice %90 {offsets = [0, 96], sizes = [8, 32], strides = [1, 1]} : vector<8x128xf32> to vector<8x32xf32>
    %106 = arith.negf %105 : vector<8x32xf32>
    %107 = math.exp %106 : vector<8x32xf32>
    %cst_35 = arith.constant 1.000000e+00 : f32
    %108 = vector.broadcast %cst_35 : f32 to vector<8x32xf32>
    %109 = arith.addf %108, %107 : vector<8x32xf32>
    %110 = arith.divf %108, %109 : vector<8x32xf32>
    %111 = arith.mulf %102, %82 : vector<8x32xf32>
    %112 = arith.mulf %96, %104 : vector<8x32xf32>
    %113 = arith.addf %111, %112 : vector<8x32xf32>
    %114 = math.tanh %113 : vector<8x32xf32>
    %115 = arith.mulf %110, %114 : vector<8x32xf32>
    %c2_36 = arith.constant 2 : index
    %c0_37 = arith.constant 0 : index
    %c0_38 = arith.constant 0 : index
    %116 = vector.load %arg24[%c2_36, %c0_37, %c0_38] : memref<8x8x1xf32, #tpu.memory_space<vmem>>, vector<1x8x1xf32>
    %117 = vector.shape_cast %116 : vector<1x8x1xf32> to vector<8x1xf32>
    %118 = vector.broadcast %117 : vector<8x1xf32> to vector<8x32xf32>
    %119 = arith.mulf %118, %115 : vector<8x32xf32>
    %120 = vector.broadcast %117 : vector<8x1xf32> to vector<8x32xf32>
    %121 = arith.mulf %120, %113 : vector<8x32xf32>
    %c0_39 = arith.constant 0 : index
    %c2_40 = arith.constant 2 : index
    %c0_41 = arith.constant 0 : index
    %c0_42 = arith.constant 0 : index
    %122 = vector.load %arg17[%c0_39, %c2_40, %c0_41, %c0_42] : memref<1x8x8x32xf32, #tpu.memory_space<vmem>>, vector<1x1x8x32xf32>
    %123 = vector.shape_cast %122 : vector<1x1x8x32xf32> to vector<8x32xf32>
    %124 = vector.shape_cast %119 : vector<8x32xf32> to vector<1x1x8x32xf32>
    tpu.vector_store %arg17[%c0_39, %c2_40, %c0_41, %c0_42], %124 {strides = array<i32>} : memref<1x8x8x32xf32, #tpu.memory_space<vmem>>, vector<1x1x8x32xf32>,
    %c3 = arith.constant 3 : index
    %c0_43 = arith.constant 0 : index
    %c0_44 = arith.constant 0 : index
    %125 = vector.load %arg1[%c3, %c0_43, %c0_44] : memref<8x8x128xf32, #tpu.memory_space<vmem>>, vector<1x8x128xf32>
    %126 = vector.shape_cast %125 : vector<1x8x128xf32> to vector<8x128xf32>
    %127 = arith.truncf %119 : vector<8x32xf32> to vector<8x32xbf16>
    %cst_45 = arith.constant dense<0.000000e+00> : vector<8x128xf32>
    %128 = tpu.matmul %127, %5, %cst_45 {dimension_numbers = #tpu.dot_dimension_numbers<[1], [0], [0], [1], [0, 0, 1, 1], [], []>} : vector<8x32xbf16>, vector<32x128xbf16>, vector<8x128xf32> -> vector<8x128xf32>
    %129 = arith.addf %126, %128 : vector<8x128xf32>
    %130 = vector.extract_strided_slice %129 {offsets = [0, 0], sizes = [8, 32], strides = [1, 1]} : vector<8x128xf32> to vector<8x32xf32>
    %131 = arith.negf %130 : vector<8x32xf32>
    %132 = math.exp %131 : vector<8x32xf32>
    %cst_46 = arith.constant 1.000000e+00 : f32
    %133 = vector.broadcast %cst_46 : f32 to vector<8x32xf32>
    %134 = arith.addf %133, %132 : vector<8x32xf32>
    %135 = arith.divf %133, %134 : vector<8x32xf32>
    %136 = vector.extract_strided_slice %129 {offsets = [0, 32], sizes = [8, 32], strides = [1, 1]} : vector<8x128xf32> to vector<8x32xf32>
    %137 = arith.negf %136 : vector<8x32xf32>
    %138 = math.exp %137 : vector<8x32xf32>
    %cst_47 = arith.constant 1.000000e+00 : f32
    %139 = vector.broadcast %cst_47 : f32 to vector<8x32xf32>
    %140 = arith.addf %139, %138 : vector<8x32xf32>
    %141 = arith.divf %139, %140 : vector<8x32xf32>
    %142 = vector.extract_strided_slice %129 {offsets = [0, 64], sizes = [8, 32], strides = [1, 1]} : vector<8x128xf32> to vector<8x32xf32>
    %143 = math.tanh %142 : vector<8x32xf32>
    %144 = vector.extract_strided_slice %129 {offsets = [0, 96], sizes = [8, 32], strides = [1, 1]} : vector<8x128xf32> to vector<8x32xf32>
    %145 = arith.negf %144 : vector<8x32xf32>
    %146 = math.exp %145 : vector<8x32xf32>
    %cst_48 = arith.constant 1.000000e+00 : f32
    %147 = vector.broadcast %cst_48 : f32 to vector<8x32xf32>
    %148 = arith.addf %147, %146 : vector<8x32xf32>
    %149 = arith.divf %147, %148 : vector<8x32xf32>
    %150 = arith.mulf %141, %121 : vector<8x32xf32>
    %151 = arith.mulf %135, %143 : vector<8x32xf32>
    %152 = arith.addf %150, %151 : vector<8x32xf32>
    %153 = math.tanh %152 : vector<8x32xf32>
    %154 = arith.mulf %149, %153 : vector<8x32xf32>
    %c3_49 = arith.constant 3 : index
    %c0_50 = arith.constant 0 : index
    %c0_51 = arith.constant 0 : index
    %155 = vector.load %arg24[%c3_49, %c0_50, %c0_51] : memref<8x8x1xf32, #tpu.memory_space<vmem>>, vector<1x8x1xf32>
    %156 = vector.shape_cast %155 : vector<1x8x1xf32> to vector<8x1xf32>
    %157 = vector.broadcast %156 : vector<8x1xf32> to vector<8x32xf32>
    %158 = arith.mulf %157, %154 : vector<8x32xf32>
    %159 = vector.broadcast %156 : vector<8x1xf32> to vector<8x32xf32>
    %160 = arith.mulf %159, %152 : vector<8x32xf32>
    %c0_52 = arith.constant 0 : index
    %c3_53 = arith.constant 3 : index
    %c0_54 = arith.constant 0 : index
    %c0_55 = arith.constant 0 : index
    %161 = vector.load %arg17[%c0_52, %c3_53, %c0_54, %c0_55] : memref<1x8x8x32xf32, #tpu.memory_space<vmem>>, vector<1x1x8x32xf32>
    %162 = vector.shape_cast %161 : vector<1x1x8x32xf32> to vector<8x32xf32>
    %163 = vector.shape_cast %158 : vector<8x32xf32> to vector<1x1x8x32xf32>
    tpu.vector_store %arg17[%c0_52, %c3_53, %c0_54, %c0_55], %163 {strides = array<i32>} : memref<1x8x8x32xf32, #tpu.memory_space<vmem>>, vector<1x1x8x32xf32>,
    %c4 = arith.constant 4 : index
    %c0_56 = arith.constant 0 : index
    %c0_57 = arith.constant 0 : index
    %164 = vector.load %arg1[%c4, %c0_56, %c0_57] : memref<8x8x128xf32, #tpu.memory_space<vmem>>, vector<1x8x128xf32>
    %165 = vector.shape_cast %164 : vector<1x8x128xf32> to vector<8x128xf32>
    %166 = arith.truncf %158 : vector<8x32xf32> to vector<8x32xbf16>
    %cst_58 = arith.constant dense<0.000000e+00> : vector<8x128xf32>
    %167 = tpu.matmul %166, %5, %cst_58 {dimension_numbers = #tpu.dot_dimension_numbers<[1], [0], [0], [1], [0, 0, 1, 1], [], []>} : vector<8x32xbf16>, vector<32x128xbf16>, vector<8x128xf32> -> vector<8x128xf32>
    %168 = arith.addf %165, %167 : vector<8x128xf32>
    %169 = vector.extract_strided_slice %168 {offsets = [0, 0], sizes = [8, 32], strides = [1, 1]} : vector<8x128xf32> to vector<8x32xf32>
    %170 = arith.negf %169 : vector<8x32xf32>
    %171 = math.exp %170 : vector<8x32xf32>
    %cst_59 = arith.constant 1.000000e+00 : f32
    %172 = vector.broadcast %cst_59 : f32 to vector<8x32xf32>
    %173 = arith.addf %172, %171 : vector<8x32xf32>
    %174 = arith.divf %172, %173 : vector<8x32xf32>
    %175 = vector.extract_strided_slice %168 {offsets = [0, 32], sizes = [8, 32], strides = [1, 1]} : vector<8x128xf32> to vector<8x32xf32>
    %176 = arith.negf %175 : vector<8x32xf32>
    %177 = math.exp %176 : vector<8x32xf32>
    %cst_60 = arith.constant 1.000000e+00 : f32
    %178 = vector.broadcast %cst_60 : f32 to vector<8x32xf32>
    %179 = arith.addf %178, %177 : vector<8x32xf32>
    %180 = arith.divf %178, %179 : vector<8x32xf32>
    %181 = vector.extract_strided_slice %168 {offsets = [0, 64], sizes = [8, 32], strides = [1, 1]} : vector<8x128xf32> to vector<8x32xf32>
    %182 = math.tanh %181 : vector<8x32xf32>
    %183 = vector.extract_strided_slice %168 {offsets = [0, 96], sizes = [8, 32], strides = [1, 1]} : vector<8x128xf32> to vector<8x32xf32>
    %184 = arith.negf %183 : vector<8x32xf32>
    %185 = math.exp %184 : vector<8x32xf32>
    %cst_61 = arith.constant 1.000000e+00 : f32
    %186 = vector.broadcast %cst_61 : f32 to vector<8x32xf32>
    %187 = arith.addf %186, %185 : vector<8x32xf32>
    %188 = arith.divf %186, %187 : vector<8x32xf32>
    %189 = arith.mulf %180, %160 : vector<8x32xf32>
    %190 = arith.mulf %174, %182 : vector<8x32xf32>
    %191 = arith.addf %189, %190 : vector<8x32xf32>
    %192 = math.tanh %191 : vector<8x32xf32>
    %193 = arith.mulf %188, %192 : vector<8x32xf32>
    %c4_62 = arith.constant 4 : index
    %c0_63 = arith.constant 0 : index
    %c0_64 = arith.constant 0 : index
    %194 = vector.load %arg24[%c4_62, %c0_63, %c0_64] : memref<8x8x1xf32, #tpu.memory_space<vmem>>, vector<1x8x1xf32>
    %195 = vector.shape_cast %194 : vector<1x8x1xf32> to vector<8x1xf32>
    %196 = vector.broadcast %195 : vector<8x1xf32> to vector<8x32xf32>
    %197 = arith.mulf %196, %193 : vector<8x32xf32>
    %198 = vector.broadcast %195 : vector<8x1xf32> to vector<8x32xf32>
    %199 = arith.mulf %198, %191 : vector<8x32xf32>
    %c0_65 = arith.constant 0 : index
    %c4_66 = arith.constant 4 : index
    %c0_67 = arith.constant 0 : index
    %c0_68 = arith.constant 0 : index
    %200 = vector.load %arg17[%c0_65, %c4_66, %c0_67, %c0_68] : memref<1x8x8x32xf32, #tpu.memory_space<vmem>>, vector<1x1x8x32xf32>
    %201 = vector.shape_cast %200 : vector<1x1x8x32xf32> to vector<8x32xf32>
    %202 = vector.shape_cast %197 : vector<8x32xf32> to vector<1x1x8x32xf32>
    tpu.vector_store %arg17[%c0_65, %c4_66, %c0_67, %c0_68], %202 {strides = array<i32>} : memref<1x8x8x32xf32, #tpu.memory_space<vmem>>, vector<1x1x8x32xf32>,
    %c5 = arith.constant 5 : index
    %c0_69 = arith.constant 0 : index
    %c0_70 = arith.constant 0 : index
    %203 = vector.load %arg1[%c5, %c0_69, %c0_70] : memref<8x8x128xf32, #tpu.memory_space<vmem>>, vector<1x8x128xf32>
    %204 = vector.shape_cast %203 : vector<1x8x128xf32> to vector<8x128xf32>
    %205 = arith.truncf %197 : vector<8x32xf32> to vector<8x32xbf16>
    %cst_71 = arith.constant dense<0.000000e+00> : vector<8x128xf32>
    %206 = tpu.matmul %205, %5, %cst_71 {dimension_numbers = #tpu.dot_dimension_numbers<[1], [0], [0], [1], [0, 0, 1, 1], [], []>} : vector<8x32xbf16>, vector<32x128xbf16>, vector<8x128xf32> -> vector<8x128xf32>
    %207 = arith.addf %204, %206 : vector<8x128xf32>
    %208 = vector.extract_strided_slice %207 {offsets = [0, 0], sizes = [8, 32], strides = [1, 1]} : vector<8x128xf32> to vector<8x32xf32>
    %209 = arith.negf %208 : vector<8x32xf32>
    %210 = math.exp %209 : vector<8x32xf32>
    %cst_72 = arith.constant 1.000000e+00 : f32
    %211 = vector.broadcast %cst_72 : f32 to vector<8x32xf32>
    %212 = arith.addf %211, %210 : vector<8x32xf32>
    %213 = arith.divf %211, %212 : vector<8x32xf32>
    %214 = vector.extract_strided_slice %207 {offsets = [0, 32], sizes = [8, 32], strides = [1, 1]} : vector<8x128xf32> to vector<8x32xf32>
    %215 = arith.negf %214 : vector<8x32xf32>
    %216 = math.exp %215 : vector<8x32xf32>
    %cst_73 = arith.constant 1.000000e+00 : f32
    %217 = vector.broadcast %cst_73 : f32 to vector<8x32xf32>
    %218 = arith.addf %217, %216 : vector<8x32xf32>
    %219 = arith.divf %217, %218 : vector<8x32xf32>
    %220 = vector.extract_strided_slice %207 {offsets = [0, 64], sizes = [8, 32], strides = [1, 1]} : vector<8x128xf32> to vector<8x32xf32>
    %221 = math.tanh %220 : vector<8x32xf32>
    %222 = vector.extract_strided_slice %207 {offsets = [0, 96], sizes = [8, 32], strides = [1, 1]} : vector<8x128xf32> to vector<8x32xf32>
    %223 = arith.negf %222 : vector<8x32xf32>
    %224 = math.exp %223 : vector<8x32xf32>
    %cst_74 = arith.constant 1.000000e+00 : f32
    %225 = vector.broadcast %cst_74 : f32 to vector<8x32xf32>
    %226 = arith.addf %225, %224 : vector<8x32xf32>
    %227 = arith.divf %225, %226 : vector<8x32xf32>
    %228 = arith.mulf %219, %199 : vector<8x32xf32>
    %229 = arith.mulf %213, %221 : vector<8x32xf32>
    %230 = arith.addf %228, %229 : vector<8x32xf32>
    %231 = math.tanh %230 : vector<8x32xf32>
    %232 = arith.mulf %227, %231 : vector<8x32xf32>
    %c5_75 = arith.constant 5 : index
    %c0_76 = arith.constant 0 : index
    %c0_77 = arith.constant 0 : index
    %233 = vector.load %arg24[%c5_75, %c0_76, %c0_77] : memref<8x8x1xf32, #tpu.memory_space<vmem>>, vector<1x8x1xf32>
    %234 = vector.shape_cast %233 : vector<1x8x1xf32> to vector<8x1xf32>
    %235 = vector.broadcast %234 : vector<8x1xf32> to vector<8x32xf32>
    %236 = arith.mulf %235, %232 : vector<8x32xf32>
    %237 = vector.broadcast %234 : vector<8x1xf32> to vector<8x32xf32>
    %238 = arith.mulf %237, %230 : vector<8x32xf32>
    %c0_78 = arith.constant 0 : index
    %c5_79 = arith.constant 5 : index
    %c0_80 = arith.constant 0 : index
    %c0_81 = arith.constant 0 : index
    %239 = vector.load %arg17[%c0_78, %c5_79, %c0_80, %c0_81] : memref<1x8x8x32xf32, #tpu.memory_space<vmem>>, vector<1x1x8x32xf32>
    %240 = vector.shape_cast %239 : vector<1x1x8x32xf32> to vector<8x32xf32>
    %241 = vector.shape_cast %236 : vector<8x32xf32> to vector<1x1x8x32xf32>
    tpu.vector_store %arg17[%c0_78, %c5_79, %c0_80, %c0_81], %241 {strides = array<i32>} : memref<1x8x8x32xf32, #tpu.memory_space<vmem>>, vector<1x1x8x32xf32>,
    %c6 = arith.constant 6 : index
    %c0_82 = arith.constant 0 : index
    %c0_83 = arith.constant 0 : index
    %242 = vector.load %arg1[%c6, %c0_82, %c0_83] : memref<8x8x128xf32, #tpu.memory_space<vmem>>, vector<1x8x128xf32>
    %243 = vector.shape_cast %242 : vector<1x8x128xf32> to vector<8x128xf32>
    %244 = arith.truncf %236 : vector<8x32xf32> to vector<8x32xbf16>
    %cst_84 = arith.constant dense<0.000000e+00> : vector<8x128xf32>
    %245 = tpu.matmul %244, %5, %cst_84 {dimension_numbers = #tpu.dot_dimension_numbers<[1], [0], [0], [1], [0, 0, 1, 1], [], []>} : vector<8x32xbf16>, vector<32x128xbf16>, vector<8x128xf32> -> vector<8x128xf32>
    %246 = arith.addf %243, %245 : vector<8x128xf32>
    %247 = vector.extract_strided_slice %246 {offsets = [0, 0], sizes = [8, 32], strides = [1, 1]} : vector<8x128xf32> to vector<8x32xf32>
    %248 = arith.negf %247 : vector<8x32xf32>
    %249 = math.exp %248 : vector<8x32xf32>
    %cst_85 = arith.constant 1.000000e+00 : f32
    %250 = vector.broadcast %cst_85 : f32 to vector<8x32xf32>
    %251 = arith.addf %250, %249 : vector<8x32xf32>
    %252 = arith.divf %250, %251 : vector<8x32xf32>
    %253 = vector.extract_strided_slice %246 {offsets = [0, 32], sizes = [8, 32], strides = [1, 1]} : vector<8x128xf32> to vector<8x32xf32>
    %254 = arith.negf %253 : vector<8x32xf32>
    %255 = math.exp %254 : vector<8x32xf32>
    %cst_86 = arith.constant 1.000000e+00 : f32
    %256 = vector.broadcast %cst_86 : f32 to vector<8x32xf32>
    %257 = arith.addf %256, %255 : vector<8x32xf32>
    %258 = arith.divf %256, %257 : vector<8x32xf32>
    %259 = vector.extract_strided_slice %246 {offsets = [0, 64], sizes = [8, 32], strides = [1, 1]} : vector<8x128xf32> to vector<8x32xf32>
    %260 = math.tanh %259 : vector<8x32xf32>
    %261 = vector.extract_strided_slice %246 {offsets = [0, 96], sizes = [8, 32], strides = [1, 1]} : vector<8x128xf32> to vector<8x32xf32>
    %262 = arith.negf %261 : vector<8x32xf32>
    %263 = math.exp %262 : vector<8x32xf32>
    %cst_87 = arith.constant 1.000000e+00 : f32
    %264 = vector.broadcast %cst_87 : f32 to vector<8x32xf32>
    %265 = arith.addf %264, %263 : vector<8x32xf32>
    %266 = arith.divf %264, %265 : vector<8x32xf32>
    %267 = arith.mulf %258, %238 : vector<8x32xf32>
    %268 = arith.mulf %252, %260 : vector<8x32xf32>
    %269 = arith.addf %267, %268 : vector<8x32xf32>
    %270 = math.tanh %269 : vector<8x32xf32>
    %271 = arith.mulf %266, %270 : vector<8x32xf32>
    %c6_88 = arith.constant 6 : index
    %c0_89 = arith.constant 0 : index
    %c0_90 = arith.constant 0 : index
    %272 = vector.load %arg24[%c6_88, %c0_89, %c0_90] : memref<8x8x1xf32, #tpu.memory_space<vmem>>, vector<1x8x1xf32>
    %273 = vector.shape_cast %272 : vector<1x8x1xf32> to vector<8x1xf32>
    %274 = vector.broadcast %273 : vector<8x1xf32> to vector<8x32xf32>
    %275 = arith.mulf %274, %271 : vector<8x32xf32>
    %276 = vector.broadcast %273 : vector<8x1xf32> to vector<8x32xf32>
    %277 = arith.mulf %276, %269 : vector<8x32xf32>
    %c0_91 = arith.constant 0 : index
    %c6_92 = arith.constant 6 : index
    %c0_93 = arith.constant 0 : index
    %c0_94 = arith.constant 0 : index
    %278 = vector.load %arg17[%c0_91, %c6_92, %c0_93, %c0_94] : memref<1x8x8x32xf32, #tpu.memory_space<vmem>>, vector<1x1x8x32xf32>
    %279 = vector.shape_cast %278 : vector<1x1x8x32xf32> to vector<8x32xf32>
    %280 = vector.shape_cast %275 : vector<8x32xf32> to vector<1x1x8x32xf32>
    tpu.vector_store %arg17[%c0_91, %c6_92, %c0_93, %c0_94], %280 {strides = array<i32>} : memref<1x8x8x32xf32, #tpu.memory_space<vmem>>, vector<1x1x8x32xf32>,
    %c7 = arith.constant 7 : index
    %c0_95 = arith.constant 0 : index
    %c0_96 = arith.constant 0 : index
    %281 = vector.load %arg1[%c7, %c0_95, %c0_96] : memref<8x8x128xf32, #tpu.memory_space<vmem>>, vector<1x8x128xf32>
    %282 = vector.shape_cast %281 : vector<1x8x128xf32> to vector<8x128xf32>
    %283 = arith.truncf %275 : vector<8x32xf32> to vector<8x32xbf16>
    %cst_97 = arith.constant dense<0.000000e+00> : vector<8x128xf32>
    %284 = tpu.matmul %283, %5, %cst_97 {dimension_numbers = #tpu.dot_dimension_numbers<[1], [0], [0], [1], [0, 0, 1, 1], [], []>} : vector<8x32xbf16>, vector<32x128xbf16>, vector<8x128xf32> -> vector<8x128xf32>
    %285 = arith.addf %282, %284 : vector<8x128xf32>
    %286 = vector.extract_strided_slice %285 {offsets = [0, 0], sizes = [8, 32], strides = [1, 1]} : vector<8x128xf32> to vector<8x32xf32>
    %287 = arith.negf %286 : vector<8x32xf32>
    %288 = math.exp %287 : vector<8x32xf32>
    %cst_98 = arith.constant 1.000000e+00 : f32
    %289 = vector.broadcast %cst_98 : f32 to vector<8x32xf32>
    %290 = arith.addf %289, %288 : vector<8x32xf32>
    %291 = arith.divf %289, %290 : vector<8x32xf32>
    %292 = vector.extract_strided_slice %285 {offsets = [0, 32], sizes = [8, 32], strides = [1, 1]} : vector<8x128xf32> to vector<8x32xf32>
    %293 = arith.negf %292 : vector<8x32xf32>
    %294 = math.exp %293 : vector<8x32xf32>
    %cst_99 = arith.constant 1.000000e+00 : f32
    %295 = vector.broadcast %cst_99 : f32 to vector<8x32xf32>
    %296 = arith.addf %295, %294 : vector<8x32xf32>
    %297 = arith.divf %295, %296 : vector<8x32xf32>
    %298 = vector.extract_strided_slice %285 {offsets = [0, 64], sizes = [8, 32], strides = [1, 1]} : vector<8x128xf32> to vector<8x32xf32>
    %299 = math.tanh %298 : vector<8x32xf32>
    %300 = vector.extract_strided_slice %285 {offsets = [0, 96], sizes = [8, 32], strides = [1, 1]} : vector<8x128xf32> to vector<8x32xf32>
    %301 = arith.negf %300 : vector<8x32xf32>
    %302 = math.exp %301 : vector<8x32xf32>
    %cst_100 = arith.constant 1.000000e+00 : f32
    %303 = vector.broadcast %cst_100 : f32 to vector<8x32xf32>
    %304 = arith.addf %303, %302 : vector<8x32xf32>
    %305 = arith.divf %303, %304 : vector<8x32xf32>
    %306 = arith.mulf %297, %277 : vector<8x32xf32>
    %307 = arith.mulf %291, %299 : vector<8x32xf32>
    %308 = arith.addf %306, %307 : vector<8x32xf32>
    %309 = math.tanh %308 : vector<8x32xf32>
    %310 = arith.mulf %305, %309 : vector<8x32xf32>
    %c7_101 = arith.constant 7 : index
    %c0_102 = arith.constant 0 : index
    %c0_103 = arith.constant 0 : index
    %311 = vector.load %arg24[%c7_101, %c0_102, %c0_103] : memref<8x8x1xf32, #tpu.memory_space<vmem>>, vector<1x8x1xf32>
    %312 = vector.shape_cast %311 : vector<1x8x1xf32> to vector<8x1xf32>
    %313 = vector.broadcast %312 : vector<8x1xf32> to vector<8x32xf32>
    %314 = arith.mulf %313, %310 : vector<8x32xf32>
    %c0_104 = arith.constant 0 : index
    %c7_105 = arith.constant 7 : index
    %c0_106 = arith.constant 0 : index
    %c0_107 = arith.constant 0 : index
    %315 = vector.load %arg17[%c0_104, %c7_105, %c0_106, %c0_107] : memref<1x8x8x32xf32, #tpu.memory_space<vmem>>, vector<1x1x8x32xf32>
    %316 = vector.shape_cast %315 : vector<1x1x8x32xf32> to vector<8x32xf32>
    %317 = vector.shape_cast %314 : vector<8x32xf32> to vector<1x1x8x32xf32>
    tpu.vector_store %arg17[%c0_104, %c7_105, %c0_106, %c0_107], %317 {strides = array<i32>} : memref<1x8x8x32xf32, #tpu.memory_space<vmem>>, vector<1x1x8x32xf32>,
    %c0_108 = arith.constant 0 : index
    %c0_109 = arith.constant 0 : index
    %c0_110 = arith.constant 0 : index
    %c0_111 = arith.constant 0 : index
    %318 = vector.load %arg17[%c0_108, %c0_109, %c0_110, %c0_111] : memref<1x8x8x32xf32, #tpu.memory_space<vmem>>, vector<1x8x8x32xf32>
    %319 = vector.shape_cast %318 : vector<1x8x8x32xf32> to vector<8x8x32xf32>
    %320 = vector.shape_cast %319 : vector<8x8x32xf32> to vector<64x32xf32>
    %c0_112 = arith.constant 0 : index
    %c0_113 = arith.constant 0 : index
    %321 = vector.load %arg6[%c0_112, %c0_113] : memref<32x32xf32, #tpu.memory_space<vmem>>, vector<32x32xf32>
    %322 = arith.truncf %320 : vector<64x32xf32> to vector<64x32xbf16>
    %323 = arith.truncf %321 : vector<32x32xf32> to vector<32x32xbf16>
    %cst_114 = arith.constant dense<0.000000e+00> : vector<64x32xf32>
    %324 = tpu.matmul %322, %323, %cst_114 {dimension_numbers = #tpu.dot_dimension_numbers<[1], [0], [0], [1], [0, 0, 1, 1], [], []>} : vector<64x32xbf16>, vector<32x32xbf16>, vector<64x32xf32> -> vector<64x32xf32>
    %c0_115 = arith.constant 0 : index
    %c0_116 = arith.constant 0 : index
    %325 = vector.load %arg7[%c0_115, %c0_116] : memref<1x32xf32, #tpu.memory_space<vmem>>, vector<1x32xf32>
    %326 = vector.broadcast %325 : vector<1x32xf32> to vector<64x32xf32>
    %327 = arith.addf %324, %326 : vector<64x32xf32>
    %cst_117 = arith.constant 0.000000e+00 : f32
    %328 = vector.broadcast %cst_117 : f32 to vector<64x32xf32>
    %329 = arith.maximumf %327, %328 : vector<64x32xf32>
    %330 = vector.shape_cast %329 : vector<64x32xf32> to vector<8x8x32xf32>
    %c0_118 = arith.constant 0 : index
    %c0_119 = arith.constant 0 : index
    %331 = vector.load %arg8[%c0_118, %c0_119] : memref<1x32xf32, #tpu.memory_space<vmem>>, vector<1x32xf32>
    %332 = vector.shape_cast %331 : vector<1x32xf32> to vector<1x1x32xf32>
    %333 = vector.broadcast %332 : vector<1x1x32xf32> to vector<8x8x32xf32>
    %334 = arith.mulf %330, %333 : vector<8x8x32xf32>
    %cst_120 = arith.constant dense<0.000000e+00> : vector<8x8xf32>
    %335 = vector.multi_reduction <add>, %334, %cst_120 [2] : vector<8x8x32xf32> to vector<8x8xf32>
    %336 = vector.shape_cast %335 : vector<8x8xf32> to vector<8x8x1xf32>
    %c0_121 = arith.constant 0 : index
    %c0_122 = arith.constant 0 : index
    %337 = vector.load %arg9[%c0_121, %c0_122] : memref<1x1xf32, #tpu.memory_space<vmem>>, vector<1x1xf32>
    %338 = vector.shape_cast %337 : vector<1x1xf32> to vector<1x1x1xf32>
    %339 = vector.broadcast %338 : vector<1x1x1xf32> to vector<8x8x1xf32>
    %340 = arith.addf %336, %339 : vector<8x8x1xf32>
    %341 = tpu.iota {dimensions = array<i32: 0>} : vector<8x8x1xi32>
    %c0_123 = arith.constant 0 : index
    %c0_124 = arith.constant 0 : index
    %c0_125 = arith.constant 0 : index
    %342 = vector.load %arg4[%c0_123, %c0_124, %c0_125] : memref<1x8x1xi32, #tpu.memory_space<vmem>>, vector<1x8x1xi32>
    %343 = vector.broadcast %342 : vector<1x8x1xi32> to vector<8x8x1xi32>
    %344 = arith.cmpi sge, %341, %343 : vector<8x8x1xi32>
    %cst_126 = arith.constant -1.000000e+30 : f32
    %345 = vector.broadcast %cst_126 : f32 to vector<8x8x1xf32>
    %346 = arith.select %344, %345, %340 : vector<8x8x1xi1>, vector<8x8x1xf32>
    %c0_i32_127 = arith.constant 0 : i32
    %347 = vector.broadcast %c0_i32_127 : i32 to vector<8x8x1xi32>
    %348 = arith.cmpi eq, %341, %347 : vector<8x8x1xi32>
    %cst_128 = arith.constant -1.000000e+30 : f32
    %349 = vector.broadcast %cst_128 : f32 to vector<8x8x1xf32>
    %350 = arith.select %348, %349, %346 : vector<8x8x1xi1>, vector<8x8x1xf32>
    %cst_129 = arith.constant dense<0xFF800000> : vector<8x1xf32>
    %351 = vector.multi_reduction <maximumf>, %350, %cst_129 [0] : vector<8x8x1xf32> to vector<8x1xf32>
    %352 = vector.shape_cast %351 : vector<8x1xf32> to vector<1x8x1xf32>
    %353 = vector.broadcast %352 : vector<1x8x1xf32> to vector<8x8x1xf32>
    %354 = arith.cmpf oeq, %350, %353 : vector<8x8x1xf32>
    %c8_i32 = arith.constant 8 : i32
    %355 = vector.broadcast %c8_i32 : i32 to vector<8x8x1xi32>
    %356 = arith.select %354, %341, %355 : vector<8x8x1xi1>, vector<8x8x1xi32>
    %cst_130 = arith.constant dense<2147483647> : vector<8x1xi32>
    %357 = vector.multi_reduction <minsi>, %356, %cst_130 [0] : vector<8x8x1xi32> to vector<8x1xi32>
    %358 = vector.shape_cast %357 : vector<8x1xi32> to vector<1x8x1xi32>
    %c1_i32 = arith.constant 1 : i32
    %359 = vector.broadcast %c1_i32 : i32 to vector<1x8x1xi32>
    %360 = arith.subi %342, %359 : vector<1x8x1xi32>
    %361 = arith.select %0, %360, %358 : vector<1x8x1xi32>
    %c0_131 = arith.constant 0 : index
    %c0_132 = arith.constant 0 : index
    %c0_133 = arith.constant 0 : index
    %c0_134 = arith.constant 0 : index
    %362 = vector.load %arg18[%c0_131, %c0_132, %c0_133, %c0_134] : memref<1x8x8x1xf32, #tpu.memory_space<vmem>>, vector<1x8x8x1xf32>
    %363 = vector.shape_cast %362 : vector<1x8x8x1xf32> to vector<8x8x1xf32>
    %364 = vector.shape_cast %350 : vector<8x8x1xf32> to vector<1x8x8x1xf32>
    tpu.vector_store %arg18[%c0_131, %c0_132, %c0_133, %c0_134], %364 {strides = array<i32>} : memref<1x8x8x1xf32, #tpu.memory_space<vmem>>, vector<1x8x8x1xf32>,
    %365 = vector.broadcast %361 : vector<1x8x1xi32> to vector<8x8x1xi32>
    %366 = arith.cmpi eq, %341, %365 : vector<8x8x1xi32>
    %367 = arith.extui %366 : vector<8x8x1xi1> to vector<8x8x1xi32>
    %368 = arith.sitofp %367 : vector<8x8x1xi32> to vector<8x8x1xf32>
    %c0_135 = arith.constant 0 : index
    %c0_136 = arith.constant 0 : index
    %c0_137 = arith.constant 0 : index
    %c0_138 = arith.constant 0 : index
    %369 = vector.load %arg19[%c0_135, %c0_136, %c0_137, %c0_138] : memref<1x8x8x1xf32, #tpu.memory_space<vmem>>, vector<1x8x8x1xf32>
    %370 = vector.shape_cast %369 : vector<1x8x8x1xf32> to vector<8x8x1xf32>
    %371 = vector.shape_cast %368 : vector<8x8x1xf32> to vector<1x8x8x1xf32>
    tpu.vector_store %arg19[%c0_135, %c0_136, %c0_137, %c0_138], %371 {strides = array<i32>} : memref<1x8x8x1xf32, #tpu.memory_space<vmem>>, vector<1x8x8x1xf32>,
    %c1_i32_139 = arith.constant 1 : i32
    %372 = vector.broadcast %c1_i32_139 : i32 to vector<1x8x1xi32>
    %373 = arith.subi %361, %372 : vector<1x8x1xi32>
    %374 = vector.broadcast %373 : vector<1x8x1xi32> to vector<8x8x1xi32>
    %375 = arith.cmpi eq, %341, %374 : vector<8x8x1xi32>
    %376 = arith.extui %375 : vector<8x8x1xi1> to vector<8x8x1xi32>
    %377 = arith.sitofp %376 : vector<8x8x1xi32> to vector<8x8x1xf32>
    %378 = vector.broadcast %377 : vector<8x8x1xf32> to vector<8x8x32xf32>
    %379 = arith.mulf %319, %378 : vector<8x8x32xf32>
    %cst_140 = arith.constant dense<0.000000e+00> : vector<8x32xf32>
    %380 = vector.multi_reduction <add>, %379, %cst_140 [0] : vector<8x8x32xf32> to vector<8x32xf32>
    %c0_141 = arith.constant 0 : index
    %c0_142 = arith.constant 0 : index
    %381 = vector.load %arg10[%c0_141, %c0_142] : memref<32x32xf32, #tpu.memory_space<vmem>>, vector<32x32xf32>
    %382 = arith.truncf %380 : vector<8x32xf32> to vector<8x32xbf16>
    %383 = arith.truncf %381 : vector<32x32xf32> to vector<32x32xbf16>
    %cst_143 = arith.constant dense<0.000000e+00> : vector<8x32xf32>
    %384 = tpu.matmul %382, %383, %cst_143 {dimension_numbers = #tpu.dot_dimension_numbers<[1], [0], [0], [1], [0, 0, 1, 1], [], []>} : vector<8x32xbf16>, vector<32x32xbf16>, vector<8x32xf32> -> vector<8x32xf32>
    %c0_144 = arith.constant 0 : index
    %c0_145 = arith.constant 0 : index
    %385 = vector.load %arg11[%c0_144, %c0_145] : memref<1x32xf32, #tpu.memory_space<vmem>>, vector<1x32xf32>
    %386 = vector.broadcast %385 : vector<1x32xf32> to vector<8x32xf32>
    %387 = arith.addf %384, %386 : vector<8x32xf32>
    %cst_146 = arith.constant 0.000000e+00 : f32
    %388 = vector.broadcast %cst_146 : f32 to vector<8x32xf32>
    %389 = arith.maximumf %387, %388 : vector<8x32xf32>
    %c0_147 = arith.constant 0 : index
    %c0_148 = arith.constant 0 : index
    %390 = vector.load %arg12[%c0_147, %c0_148] : memref<32x64xf32, #tpu.memory_space<vmem>>, vector<32x64xf32>
    %391 = arith.truncf %389 : vector<8x32xf32> to vector<8x32xbf16>
    %392 = arith.truncf %390 : vector<32x64xf32> to vector<32x64xbf16>
    %cst_149 = arith.constant dense<0.000000e+00> : vector<8x64xf32>
    %393 = tpu.matmul %391, %392, %cst_149 {dimension_numbers = #tpu.dot_dimension_numbers<[1], [0], [0], [1], [0, 0, 1, 1], [], []>} : vector<8x32xbf16>, vector<32x64xbf16>, vector<8x64xf32> -> vector<8x64xf32>
    %c0_150 = arith.constant 0 : index
    %c0_151 = arith.constant 0 : index
    %394 = vector.load %arg13[%c0_150, %c0_151] : memref<1x64xf32, #tpu.memory_space<vmem>>, vector<1x64xf32>
    %395 = vector.broadcast %394 : vector<1x64xf32> to vector<8x64xf32>
    %396 = arith.addf %393, %395 : vector<8x64xf32>
    %c0_152 = arith.constant 0 : index
    %c0_153 = arith.constant 0 : index
    %c0_154 = arith.constant 0 : index
    %397 = vector.load %arg21[%c0_152, %c0_153, %c0_154] : memref<1x8x64xf32, #tpu.memory_space<vmem>>, vector<1x8x64xf32>
    %398 = vector.shape_cast %397 : vector<1x8x64xf32> to vector<8x64xf32>
    %399 = vector.shape_cast %396 : vector<8x64xf32> to vector<1x8x64xf32>
    tpu.vector_store %arg21[%c0_152, %c0_153, %c0_154], %399 {strides = array<i32>} : memref<1x8x64xf32, #tpu.memory_space<vmem>>, vector<1x8x64xf32>,
    %400 = vector.extract_strided_slice %396 {offsets = [0, 0], sizes = [8, 32], strides = [1, 1]} : vector<8x64xf32> to vector<8x32xf32>
    %c0_155 = arith.constant 0 : index
    %c0_156 = arith.constant 0 : index
    %401 = vector.load %arg14[%c0_155, %c0_156] : memref<32x32xf32, #tpu.memory_space<vmem>>, vector<32x32xf32>
    %402 = arith.truncf %400 : vector<8x32xf32> to vector<8x32xbf16>
    %403 = arith.truncf %401 : vector<32x32xf32> to vector<32x32xbf16>
    %cst_157 = arith.constant dense<0.000000e+00> : vector<8x32xf32>
    %404 = tpu.matmul %402, %403, %cst_157 {dimension_numbers = #tpu.dot_dimension_numbers<[1], [0], [0], [1], [0, 0, 1, 1], [], []>} : vector<8x32xbf16>, vector<32x32xbf16>, vector<8x32xf32> -> vector<8x32xf32>
    %c0_158 = arith.constant 0 : index
    %c0_159 = arith.constant 0 : index
    %c0_160 = arith.constant 0 : index
    %405 = vector.load %arg2[%c0_158, %c0_159, %c0_160] : memref<8x8x32xf32, #tpu.memory_space<vmem>>, vector<8x8x32xf32>
    %406 = vector.shape_cast %404 : vector<8x32xf32> to vector<1x8x32xf32>
    %407 = vector.broadcast %406 : vector<1x8x32xf32> to vector<8x8x32xf32>
    %408 = arith.addf %405, %407 : vector<8x8x32xf32>
    %cst_161 = arith.constant 0.000000e+00 : f32
    %409 = vector.broadcast %cst_161 : f32 to vector<8x8x32xf32>
    %410 = arith.maximumf %408, %409 : vector<8x8x32xf32>
    %411 = vector.shape_cast %410 : vector<8x8x32xf32> to vector<64x32xf32>
    %c0_162 = arith.constant 0 : index
    %c0_163 = arith.constant 0 : index
    %412 = vector.load %arg15[%c0_162, %c0_163] : memref<32x6xf32, #tpu.memory_space<vmem>>, vector<32x6xf32>
    %413 = arith.truncf %411 : vector<64x32xf32> to vector<64x32xbf16>
    %414 = arith.truncf %412 : vector<32x6xf32> to vector<32x6xbf16>
    %cst_164 = arith.constant dense<0.000000e+00> : vector<64x6xf32>
    %415 = tpu.matmul %413, %414, %cst_164 {dimension_numbers = #tpu.dot_dimension_numbers<[1], [0], [0], [1], [0, 0, 1, 1], [], []>} : vector<64x32xbf16>, vector<32x6xbf16>, vector<64x6xf32> -> vector<64x6xf32>
    %c0_165 = arith.constant 0 : index
    %c0_166 = arith.constant 0 : index
    %416 = vector.load %arg16[%c0_165, %c0_166] : memref<1x6xf32, #tpu.memory_space<vmem>>, vector<1x6xf32>
    %417 = vector.broadcast %416 : vector<1x6xf32> to vector<64x6xf32>
    %418 = arith.addf %415, %417 : vector<64x6xf32>
    %419 = vector.shape_cast %418 : vector<64x6xf32> to vector<8x8x6xf32>
    %c0_167 = arith.constant 0 : index
    %c0_168 = arith.constant 0 : index
    %c0_169 = arith.constant 0 : index
    %c0_170 = arith.constant 0 : index
    %420 = vector.load %arg22[%c0_167, %c0_168, %c0_169, %c0_170] : memref<1x8x8x6xf32, #tpu.memory_space<vmem>>, vector<1x8x8x6xf32>
    %421 = vector.shape_cast %420 : vector<1x8x8x6xf32> to vector<8x8x6xf32>
    %422 = vector.shape_cast %419 : vector<8x8x6xf32> to vector<1x8x8x6xf32>
    tpu.vector_store %arg22[%c0_167, %c0_168, %c0_169, %c0_170], %422 {strides = array<i32>} : memref<1x8x8x6xf32, #tpu.memory_space<vmem>>, vector<1x8x8x6xf32>,
    %cst_171 = arith.constant dense<0xFF800000> : vector<8x8xf32>
    %423 = vector.multi_reduction <maximumf>, %419, %cst_171 [2] : vector<8x8x6xf32> to vector<8x8xf32>
    %424 = vector.shape_cast %423 : vector<8x8xf32> to vector<8x8x1xf32>
    %425 = vector.broadcast %424 : vector<8x8x1xf32> to vector<8x8x6xf32>
    %426 = arith.subf %419, %425 : vector<8x8x6xf32>
    %427 = math.exp %426 : vector<8x8x6xf32>
    %cst_172 = arith.constant dense<0.000000e+00> : vector<8x8xf32>
    %428 = vector.multi_reduction <add>, %427, %cst_172 [2] : vector<8x8x6xf32> to vector<8x8xf32>
    %429 = vector.shape_cast %428 : vector<8x8xf32> to vector<8x8x1xf32>
    %430 = math.log %429 : vector<8x8x1xf32>
    %431 = arith.addf %424, %430 : vector<8x8x1xf32>
    %c0_173 = arith.constant 0 : index
    %c0_174 = arith.constant 0 : index
    %c0_175 = arith.constant 0 : index
    %432 = vector.load %arg3[%c0_173, %c0_174, %c0_175] : memref<8x8x6xf32, #tpu.memory_space<vmem>>, vector<8x8x6xf32>
    %433 = arith.mulf %432, %419 : vector<8x8x6xf32>
    %cst_176 = arith.constant dense<0.000000e+00> : vector<8x8xf32>
    %434 = vector.multi_reduction <add>, %433, %cst_176 [2] : vector<8x8x6xf32> to vector<8x8xf32>
    %435 = vector.shape_cast %434 : vector<8x8xf32> to vector<8x8x1xf32>
    %436 = arith.subf %431, %435 : vector<8x8x1xf32>
    %c0_177 = arith.constant 0 : index
    %c0_178 = arith.constant 0 : index
    %c0_179 = arith.constant 0 : index
    %437 = vector.load %arg24[%c0_177, %c0_178, %c0_179] : memref<8x8x1xf32, #tpu.memory_space<vmem>>, vector<8x8x1xf32>
    %438 = vector.broadcast %361 : vector<1x8x1xi32> to vector<8x8x1xi32>
    %439 = arith.cmpi slt, %341, %438 : vector<8x8x1xi32>
    %440 = arith.extui %439 : vector<8x8x1xi1> to vector<8x8x1xi32>
    %441 = arith.sitofp %440 : vector<8x8x1xi32> to vector<8x8x1xf32>
    %442 = arith.mulf %441, %437 : vector<8x8x1xf32>
    %c7_i32 = arith.constant 7 : i32
    %443 = vector.broadcast %c7_i32 : i32 to vector<8x8x1xi32>
    %444 = arith.cmpi slt, %341, %443 : vector<8x8x1xi32>
    %445 = arith.extui %444 : vector<8x8x1xi1> to vector<8x8x1xi32>
    %446 = arith.sitofp %445 : vector<8x8x1xi32> to vector<8x8x1xf32>
    %447 = arith.mulf %436, %442 : vector<8x8x1xf32>
    %448 = arith.mulf %447, %446 : vector<8x8x1xf32>
    %cst_180 = arith.constant dense<0.000000e+00> : vector<8x1xf32>
    %449 = vector.multi_reduction <add>, %448, %cst_180 [0] : vector<8x8x1xf32> to vector<8x1xf32>
    %c0_181 = arith.constant 0 : index
    %c0_182 = arith.constant 0 : index
    %c0_183 = arith.constant 0 : index
    %450 = vector.load %arg23[%c0_181, %c0_182, %c0_183] : memref<1x8x1xf32, #tpu.memory_space<vmem>>, vector<1x8x1xf32>
    %451 = vector.shape_cast %450 : vector<1x8x1xf32> to vector<8x1xf32>
    %452 = vector.shape_cast %449 : vector<8x1xf32> to vector<1x8x1xf32>
    tpu.vector_store %arg23[%c0_181, %c0_182, %c0_183], %452 {strides = array<i32>} : memref<1x8x1xf32, #tpu.memory_space<vmem>>, vector<1x8x1xf32>,
    %453 = vector.broadcast %361 : vector<1x8x1xi32> to vector<8x8x1xi32>
    %454 = arith.cmpi sge, %341, %453 : vector<8x8x1xi32>
    %455 = arith.extui %454 : vector<8x8x1xi1> to vector<8x8x1xi32>
    %456 = arith.sitofp %455 : vector<8x8x1xi32> to vector<8x8x1xf32>
    %457 = arith.mulf %437, %456 : vector<8x8x1xf32>
    %c0_184 = arith.constant 0 : index
    %c0_185 = arith.constant 0 : index
    %c0_186 = arith.constant 0 : index
    %458 = vector.load %arg24[%c0_184, %c0_185, %c0_186] : memref<8x8x1xf32, #tpu.memory_space<vmem>>, vector<8x8x1xf32>
    tpu.vector_store %arg24[%c0_184, %c0_185, %c0_186], %457 {strides = array<i32>} : memref<8x8x1xf32, #tpu.memory_space<vmem>>, vector<8x8x1xf32>,
    %c0_187 = arith.constant 0 : index
    %c0_188 = arith.constant 0 : index
    %c0_189 = arith.constant 0 : index
    %c0_190 = arith.constant 0 : index
    %459 = vector.load %arg20[%c0_187, %c0_188, %c0_189, %c0_190] : memref<1x8x8x1xf32, #tpu.memory_space<vmem>>, vector<1x8x8x1xf32>
    %460 = vector.shape_cast %459 : vector<1x8x8x1xf32> to vector<8x8x1xf32>
    %461 = vector.shape_cast %457 : vector<8x8x1xf32> to vector<1x8x8x1xf32>
    tpu.vector_store %arg20[%c0_187, %c0_188, %c0_189, %c0_190], %461 {strides = array<i32>} : memref<1x8x8x1xf32, #tpu.memory_space<vmem>>, vector<1x8x8x1xf32>,
    return
  }
  func.func @transform_0(%arg0: i32) -> (i32, i32, i32) {
    %c0_i32 = arith.constant 0 : i32
    %c0_i32_0 = arith.constant 0 : i32
    %c0_i32_1 = arith.constant 0 : i32
    %c0_i32_2 = arith.constant 0 : i32
    return %c0_i32, %c0_i32_0, %c0_i32_1 : i32, i32, i32
  }
  func.func @transform_1(%arg0: i32) -> (i32, i32, i32) {
    %c0_i32 = arith.constant 0 : i32
    %c0_i32_0 = arith.constant 0 : i32
    %c0_i32_1 = arith.constant 0 : i32
    %c0_i32_2 = arith.constant 0 : i32
    return %c0_i32, %c0_i32_0, %c0_i32_1 : i32, i32, i32
  }
  func.func @transform_2(%arg0: i32) -> (i32, i32, i32) {
    %c0_i32 = arith.constant 0 : i32
    %c0_i32_0 = arith.constant 0 : i32
    %c0_i32_1 = arith.constant 0 : i32
    %c0_i32_2 = arith.constant 0 : i32
    return %c0_i32, %c0_i32_0, %c0_i32_1 : i32, i32, i32
  }
  func.func @transform_3(%arg0: i32) -> (i32, i32, i32) {
    %c0_i32 = arith.constant 0 : i32
    %c0_i32_0 = arith.constant 0 : i32
    %c0_i32_1 = arith.constant 0 : i32
    %c0_i32_2 = arith.constant 0 : i32
    return %c0_i32, %c0_i32_0, %c0_i32_1 : i32, i32, i32
  }
  func.func @transform_4(%arg0: i32) -> (i32, i32) {
    %c0_i32 = arith.constant 0 : i32
    %c0_i32_0 = arith.constant 0 : i32
    %c0_i32_1 = arith.constant 0 : i32
    return %c0_i32, %c0_i32_0 : i32, i32
  }
  func.func @transform_5(%arg0: i32) -> (i32, i32) {
    %c0_i32 = arith.constant 0 : i32
    %c0_i32_0 = arith.constant 0 : i32
    %c0_i32_1 = arith.constant 0 : i32
    return %c0_i32, %c0_i32_0 : i32, i32
  }
  func.func @transform_6(%arg0: i32) -> (i32, i32) {
    %c0_i32 = arith.constant 0 : i32
    %c0_i32_0 = arith.constant 0 : i32
    %c0_i32_1 = arith.constant 0 : i32
    return %c0_i32, %c0_i32_0 : i32, i32
  }
  func.func @transform_7(%arg0: i32) -> (i32, i32) {
    %c0_i32 = arith.constant 0 : i32
    %c0_i32_0 = arith.constant 0 : i32
    %c0_i32_1 = arith.constant 0 : i32
    return %c0_i32, %c0_i32_0 : i32, i32
  }
  func.func @transform_8(%arg0: i32) -> (i32, i32) {
    %c0_i32 = arith.constant 0 : i32
    %c0_i32_0 = arith.constant 0 : i32
    %c0_i32_1 = arith.constant 0 : i32
    return %c0_i32, %c0_i32_0 : i32, i32
  }
  func.func @transform_9(%arg0: i32) -> (i32, i32) {
    %c0_i32 = arith.constant 0 : i32
    %c0_i32_0 = arith.constant 0 : i32
    %c0_i32_1 = arith.constant 0 : i32
    return %c0_i32, %c0_i32_0 : i32, i32
  }
  func.func @transform_10(%arg0: i32) -> (i32, i32) {
    %c0_i32 = arith.constant 0 : i32
    %c0_i32_0 = arith.constant 0 : i32
    %c0_i32_1 = arith.constant 0 : i32
    return %c0_i32, %c0_i32_0 : i32, i32
  }
  func.func @transform_11(%arg0: i32) -> (i32, i32) {
    %c0_i32 = arith.constant 0 : i32
    %c0_i32_0 = arith.constant 0 : i32
    %c0_i32_1 = arith.constant 0 : i32
    return %c0_i32, %c0_i32_0 : i32, i32
  }
  func.func @transform_12(%arg0: i32) -> (i32, i32) {
    %c0_i32 = arith.constant 0 : i32
    %c0_i32_0 = arith.constant 0 : i32
    %c0_i32_1 = arith.constant 0 : i32
    return %c0_i32, %c0_i32_0 : i32, i32
  }
  func.func @transform_13(%arg0: i32) -> (i32, i32) {
    %c0_i32 = arith.constant 0 : i32
    %c0_i32_0 = arith.constant 0 : i32
    %c0_i32_1 = arith.constant 0 : i32
    return %c0_i32, %c0_i32_0 : i32, i32
  }
  func.func @transform_14(%arg0: i32) -> (i32, i32) {
    %c0_i32 = arith.constant 0 : i32
    %c0_i32_0 = arith.constant 0 : i32
    %c0_i32_1 = arith.constant 0 : i32
    return %c0_i32, %c0_i32_0 : i32, i32
  }
  func.func @transform_15(%arg0: i32) -> (i32, i32) {
    %c0_i32 = arith.constant 0 : i32
    %c0_i32_0 = arith.constant 0 : i32
    %c0_i32_1 = arith.constant 0 : i32
    return %c0_i32, %c0_i32_0 : i32, i32
  }
  func.func @transform_16(%arg0: i32) -> (i32, i32, i32, i32) {
    %c0_i32 = arith.constant 0 : i32
    %c0_i32_0 = arith.constant 0 : i32
    %c0_i32_1 = arith.constant 0 : i32
    %c0_i32_2 = arith.constant 0 : i32
    return %arg0, %c0_i32, %c0_i32_0, %c0_i32_1 : i32, i32, i32, i32
  }
  func.func @transform_17(%arg0: i32) -> (i32, i32, i32, i32) {
    %c0_i32 = arith.constant 0 : i32
    %c0_i32_0 = arith.constant 0 : i32
    %c0_i32_1 = arith.constant 0 : i32
    %c0_i32_2 = arith.constant 0 : i32
    return %arg0, %c0_i32, %c0_i32_0, %c0_i32_1 : i32, i32, i32, i32
  }
  func.func @transform_18(%arg0: i32) -> (i32, i32, i32, i32) {
    %c0_i32 = arith.constant 0 : i32
    %c0_i32_0 = arith.constant 0 : i32
    %c0_i32_1 = arith.constant 0 : i32
    %c0_i32_2 = arith.constant 0 : i32
    return %arg0, %c0_i32, %c0_i32_0, %c0_i32_1 : i32, i32, i32, i32
  }
  func.func @transform_19(%arg0: i32) -> (i32, i32, i32, i32) {
    %c0_i32 = arith.constant 0 : i32
    %c0_i32_0 = arith.constant 0 : i32
    %c0_i32_1 = arith.constant 0 : i32
    %c0_i32_2 = arith.constant 0 : i32
    return %arg0, %c0_i32, %c0_i32_0, %c0_i32_1 : i32, i32, i32, i32
  }
  func.func @transform_20(%arg0: i32) -> (i32, i32, i32) {
    %c0_i32 = arith.constant 0 : i32
    %c0_i32_0 = arith.constant 0 : i32
    %c0_i32_1 = arith.constant 0 : i32
    return %arg0, %c0_i32, %c0_i32_0 : i32, i32, i32
  }
  func.func @transform_21(%arg0: i32) -> (i32, i32, i32, i32) {
    %c0_i32 = arith.constant 0 : i32
    %c0_i32_0 = arith.constant 0 : i32
    %c0_i32_1 = arith.constant 0 : i32
    %c0_i32_2 = arith.constant 0 : i32
    return %arg0, %c0_i32, %c0_i32_0, %c0_i32_1 : i32, i32, i32, i32
  }
  func.func @transform_22(%arg0: i32) -> (i32, i32, i32) {
    %c0_i32 = arith.constant 0 : i32
    %c0_i32_0 = arith.constant 0 : i32
    %c0_i32_1 = arith.constant 0 : i32
    return %arg0, %c0_i32, %c0_i32_0 : i32, i32, i32
  }
}

</mosaic_0001>

<bundles_post_ra>
// kernel: fwd.2
= control target key start
LH: loop header
LB: loop body
LE: loop exit
PB: predicated region body
PF: predicated region fallthrough
CT: control target
= control target key end

     0   :  { %vm85_vm0 = vcmask 1044480   ;;  %vm72_vm1 = vcmask 80896   ;;  %v907_v25 = vmov 0   ;;  %vm227_vm2 = vcmask 261120   ;;  %s1312_s3 = inlined_call_operand.vmem [shape: f32[10,32], index: 3, kind: input, shape index: {}]   ;;  %s1313_s0 = inlined_call_operand.vmem [shape: f32[64,10], index: 0, kind: input, shape index: {}]   ;;  %s1314_s5 = inlined_call_operand.vmem [shape: f32[32,32], index: 5, kind: input, shape index: {}]   ;;  %s1315_s7 = inlined_call_operand.vmem [shape: f32[32,32], index: 7, kind: input, shape index: {}]   ;;  %s1316_s1 = inlined_call_operand.vmem [shape: f32[64,1], index: 1, kind: input, shape index: {}]   ;;  %s1317_s4 = inlined_call_operand.vmem [shape: f32[1,32], index: 4, kind: input, shape index: {}]   ;;  %s1318_s2 = inlined_call_operand.vmem [shape: f32[64,32], index: 2, kind: input, shape index: {}]   ;;  %s1319_s6 = inlined_call_operand.vmem [shape: f32[1,32], index: 6, kind: input, shape index: {}]   ;;  %s1320_s8 = inlined_call_operand.vmem [shape: f32[1,32], index: 8, kind: input, shape index: {}]   ;;  %s1321_s9 = inlined_call_operand.vmem [shape: f32[32,128], index: 9, kind: input, shape index: {}]   ;;  %s1322_s11 = inlined_call_operand.vmem [shape: f32[32,32], index: 11, kind: input, shape index: {}]   ;;  %s1323_s10 = inlined_call_operand.vmem [shape: f32[1,128], index: 10, kind: input, shape index: {}]   ;;  %s1324_s14 = inlined_call_operand.vmem [shape: f32[64,128], index: 14, kind: output, shape index: {0}]   ;;  %s1325_s12 = inlined_call_operand.vmem [shape: f32[1,32], index: 12, kind: input, shape index: {}]   ;;  %s1326_s13 = inlined_call_operand.vmem [shape: f32[1,32], index: 13, kind: input, shape index: {}]   ;;  %s1327_s15 = inlined_call_operand.vmem [shape: f32[64,32], index: 15, kind: output, shape index: {1}]  }
   0x1   :  { %v58_v0 = vld [vmem:[%s1312_s3] sm:$0xff]  ;;  %v59_v1 = vld [vmem:[%s1312_s3 + $0x8] sm:$0x3]  ;;  %v52_v5 = vld [vmem:[%s1313_s0 + $0x10] sm:$0xff]  ;;  %889 = vset.pattern.permute.xlu0 %v907_v25  ;;  %890 = vset.pattern.permute.xlu1 %v907_v25 }
   0x2   :  { %v50_v2 = vld [vmem:[%s1313_s0] sm:$0xff]  ;;  %v64_v3 = vpack.c.bf16 %v59_v1, %v58_v0  ;;  %v51_v4 = vld [vmem:[%s1313_s0 + $0x8] sm:$0xff]  ;;  %v53_v6 = vld [vmem:[%s1313_s0 + $0x18] sm:$0xff] }
   0x3   :  { %v60_v7 = vpack.c.bf16 %v51_v4, %v50_v2  ;;  %v54_v8 = vld [vmem:[%s1313_s0 + $0x20] sm:$0xff]  ;;  %v55_v9 = vld [vmem:[%s1313_s0 + $0x28] sm:$0xff]  ;;  %v56_v10 = vld [vmem:[%s1313_s0 + $0x30] sm:$0xff]  ;;  %v61_v12 = vpack.c.bf16 %v53_v6, %v52_v5 }
   0x4   :  { %886 = vmatprep.subr.msk.bf16.mxu0 %vm85_vm0, %v64_v3  ;;  %v87_v11 = vsel %vm85_vm0, %v64_v3, 0  ;;  %887 = vmatprep.subr.msk.bf16.mxu1 %vm85_vm0, %v64_v3  ;;  %v62_v13 = vpack.c.bf16 %v55_v9, %v54_v8  ;;  %v57_v14 = vld [vmem:[%s1313_s0 + $0x38] sm:$0xff]  ;;  %v162_v16 = vld [vmem:[%s1314_s5] sm:$0xff]  ;;  %v163_v17 = vld [vmem:[%s1314_s5 + $0x8] sm:$0xff] }
   0x5   :  { %811 = vmatpush3.bf16.msra.mxu0 %v87_v11  ;;  %812 = vmatprep.mubr.msk.bf16.mxu0 %vm72_vm1, %v60_v7  ;;  %v63_v15 = vpack.c.bf16 %v57_v14, %v56_v10  ;;  %v170_v18 = vpack.c.bf16 %v163_v17, %v162_v16  ;;  %v164_v19 = vld [vmem:[%s1314_s5 + $0x10] sm:$0xff]  ;;  %v165_v20 = vld [vmem:[%s1314_s5 + $0x18] sm:$0xff]  ;;  %v313_v22 = vld [vmem:[%s1315_s7] sm:$0xff] }
   0x6   :  { %869 = vmatpush3.bf16.msra.mxu1 %v87_v11  ;;  %816 = vmatprep.mubr.msk.bf16.mxu1 %vm72_vm1, %v62_v13  ;;  %v171_v21 = vpack.c.bf16 %v165_v20, %v164_v19  ;;  %v314_v23 = vld [vmem:[%s1315_s7 + $0x8] sm:$0xff]  ;;  %v154_v26 = vld [vmem:[%s1316_s1] sm:$0xff]  ;;  %v156_v27 = vld [vmem:[%s1316_s1 + $0x10] sm:$0xff] }
   0x7   :  { %820 = vmatprep.subr.bf16.mxu1 %v170_v18  ;;  %v321_v24 = vpack.c.bf16 %v314_v23, %v313_v22  ;;  %175 = vperm.xlu0 %889, %v154_v26   ;;  %v155_v28 = vld [vmem:[%s1316_s1 + $0x8] sm:$0xff]  ;;  %v157_v29 = vld [vmem:[%s1316_s1 + $0x18] sm:$0xff]  ;;  %v158_v30 = vld [vmem:[%s1316_s1 + $0x20] sm:$0xff] }
   0x8   :  { %813 = vmatmul.mubr.msk.bf16.vlgmr.msra.gmra.mrb[0].mxu0 %vm72_vm1, %v61_v12  ;;  %185 = vperm.xlu1 %890, %v156_v27   ;;  %v159_v31 = vld [vmem:[%s1316_s1 + $0x28] sm:$0xff]  ;;  %v160_v32 = vld [vmem:[%s1316_s1 + $0x30] sm:$0xff]  ;;  %v161_v33 = vld [vmem:[%s1316_s1 + $0x38] sm:$0xff] }
   0x9   :  { %817 = vmatmul.mubr.msk.bf16.vlgmr.msra.gmra.mrb[0].mxu1 %vm72_vm1, %v63_v15  ;;  %v755_v35 = vld [vmem:[%s1317_s4] ss:$0 sm:$0xff]  ;;  %v315_v50 = vld [vmem:[%s1315_s7 + $0x10] sm:$0xff]  ;;  %v316_v51 = vld [vmem:[%s1315_s7 + $0x18] sm:$0xff] }
   0xa   :  { %821 = vmatpush3.bf16.msra.mxu1 %v170_v18  ;;  %v322_v57 = vpack.c.bf16 %v316_v51, %v315_v50  ;;  %v305_v58 = vld [vmem:[%s1318_s2] sm:$0xff]  ;;  %v306_v59 = vld [vmem:[%s1318_s2 + $0x8] sm:$0xff]  ;;  %v307_v61 = vld [vmem:[%s1318_s2 + $0x10] sm:$0xff] }
   0xb   :  { %822 = vmatprep.subr.bf16.mxu1 %v171_v21  ;;  %180 = vperm.xlu0 %889, %v155_v28   ;;  %v317_v60 = vpack.c.bf16 %v306_v59, %v305_v58  ;;  %v308_v62 = vld [vmem:[%s1318_s2 + $0x18] sm:$0xff]  ;;  %v309_v63 = vld [vmem:[%s1318_s2 + $0x20] sm:$0xff]  ;;  %v310_v0 = vld [vmem:[%s1318_s2 + $0x28] sm:$0xff] }
   0xc   :  { %190 = vperm.xlu1 %890, %v157_v29   ;;  %v318_v1 = vpack.c.bf16 %v308_v62, %v307_v61  ;;  %v319_v2 = vpack.c.bf16 %v310_v0, %v309_v63  ;;  %v311_v3 = vld [vmem:[%s1318_s2 + $0x30] sm:$0xff]  ;;  %v312_v4 = vld [vmem:[%s1318_s2 + $0x38] sm:$0xff]  ;;  %v760_v9 = vld [vmem:[%s1319_s6] ss:$0 sm:$0xff] }
   0xd   :  { %v320_v5 = vpack.c.bf16 %v312_v4, %v311_v3  ;;  %v769_v16 = vld [vmem:[%s1320_s8] ss:$0 sm:$0xff] }
   0xe   :  { %823 = vmatpush3.bf16.msra.mxu1 %v171_v21 }
   0xf   :  { %832 = vmatprep.subr.bf16.mxu1 %v321_v24  ;;  %195 = vperm.xlu0 %889, %v158_v30  }
  0x10   :  { %200 = vperm.xlu1 %890, %v159_v31  }
  0x13   :  { %205 = vperm.xlu0 %889, %v160_v32  }
  0x14   :  { %210 = vperm.xlu1 %890, %v161_v33  }
  0x86   :  { %v1117_v6 = vpop.permute.xlu0 %175 }
  0x87   :  { %v1119_v7 = vpop.permute.xlu1 %185  ;;  %v219_v12 = vmul.f32 %v760_v9, %v1117_v6 }
  0x88   :  { %v221_v11 = vmul.f32 %v760_v9, %v1119_v7 }
  0x8a   :  { %v1121_v8 = vpop.permute.xlu0 %180 }
  0x8b   :  { %v1126_v10 = vpop.permute.xlu1 %190  ;;  %v220_v20 = vmul.f32 %v760_v9, %v1121_v8 }
  0x8c   :  { %v222_v14 = vmul.f32 %v760_v9, %v1126_v10 }
  0x8e   :  { %v1130_v13 = vpop.permute.xlu0 %195 }
  0x8f   :  { %v1136_v17 = vpop.permute.xlu1 %200 }
  0x92   :  { %v1139_v26 = vpop.permute.xlu0 %205 }
  0x93   :  { %v225_v31 = vmul.f32 %v760_v9, %v1139_v26  ;;  %v1142_v33 = vpop.permute.xlu1 %210 }
  0xdb   :  { %v814_v34 = vpop.f32.mrb[0].mxu0 }
  0xdc   :  { %v123_v36 = vpop.f32.mrb[1].mxu0  ;;  %v818_v37 = vpop.f32.mrb[0].mxu1  ;;  %v132_v41 = vadd.f32 %v814_v34, %v755_v35 }
  0xdd   :  { %v815_v38 = vpop.f32.mrb[2].mxu0  ;;  %v148_v39 = vadd.f32 %v818_v37, %v755_v35  ;;  %v139_v40 = vpop.f32.mrb[1].mxu1  ;;  %v124_v46 = vadd.f32 %v755_v35, %v123_v36 }
  0xde   :  { %v135_v42 = vadd.f32 %v815_v38, %v755_v35  ;;  %v126_v43 = vpop.f32.mrb[3].mxu0  ;;  %v140_v44 = vadd.f32 %v755_v35, %v139_v40  ;;  %v819_v45 = vpop.f32.mrb[2].mxu1 }
  0xdf   :  { %v127_v47 = vadd.f32 %v755_v35, %v126_v43  ;;  %v151_v48 = vadd.f32 %v819_v45, %v755_v35  ;;  %v142_v49 = vpop.f32.mrb[3].mxu1 }
  0xe0   :  { %v1073_v52 = vpack.c.bf16 %v135_v42, %v132_v41  ;;  %v143_v53 = vadd.f32 %v755_v35, %v142_v49  ;;  %v223_v35 = vmul.f32 %v760_v9, %v1130_v13  ;;  %v224_v41 = vmul.f32 %v760_v9, %v1136_v17 }
  0xe1   :  { %v1075_v54 = vpack.c.bf16 %v127_v47, %v124_v46  ;;  %v1077_v55 = vpack.c.bf16 %v151_v48, %v148_v39  ;;  %v226_v42 = vmul.f32 %v760_v9, %v1142_v33 }
  0xe2   :  { %v1079_v56 = vpack.c.bf16 %v143_v53, %v140_v44 }
  0xe3   :  { %824 = vmatprep.mubr.msk.bf16.mxu1 %vm227_vm2, %v1075_v54 }
  0xe4   :  { %825 = vmatmul.mubr.msk.bf16.vlgmr.msra.gmra.mrb[4].mxu1 %vm227_vm2, %v1073_v52 }
  0xe5   :  { %833 = vmatpush3.bf16.msra.mxu1 %v321_v24  ;;  %828 = vmatprep.mubr.msk.bf16.mxu1 %vm227_vm2, %v1079_v56 }
  0xe6   :  { %834 = vmatprep.subr.bf16.mxu1 %v322_v57 }
  0xe9   :  { %835 = vmatpush3.bf16.msra.mxu1 %v322_v57 }
  0xec   :  { %829 = vmatmul.mubr.msk.bf16.gmra.mrb[8].mxu1 %vm227_vm2, %v1077_v55 }
  0xed   :  { %836 = vmatprep.mubr.msk.bf16.mxu1 %vm227_vm2, %v317_v60 }
  0xf4   :  { %837 = vmatmul.mubr.msk.bf16.vlgmr.msra.gmra.mrb[4].mxu1 %vm227_vm2, %v318_v1 }
  0xf5   :  { %840 = vmatprep.mubr.msk.bf16.mxu1 %vm227_vm2, %v319_v2 }
  0xfc   :  { %841 = vmatmul.mubr.msk.bf16.gmra.mrb[8].mxu1 %vm227_vm2, %v320_v5 }
 0x1c7   :  { %v838_v15 = vpop.f32.mrb[4].mxu1 }
 0x1c8   :  { %v870_v18 = vadd.f32 %v838_v15, %v221_v11  ;;  %v369_v19 = vpop.f32.mrb[5].mxu1 }
 0x1c9   :  { %v871_v21 = vadd.f32 %v369_v19, %v219_v12  ;;  %v839_v22 = vpop.f32.mrb[6].mxu1 }
 0x1ca   :  { %v417_v23 = vadd.f32 %v870_v18, %v769_v16  ;;  %v872_v24 = vadd.f32 %v839_v22, %v222_v14  ;;  %v372_v25 = vpop.f32.mrb[7].mxu1 }
 0x1cb   :  { %v415_v27 = vadd.f32 %v871_v21, %v769_v16  ;;  %v873_v28 = vadd.f32 %v372_v25, %v220_v20 }
 0x1cc   :  { %v418_v32 = vadd.f32 %v872_v24, %v769_v16  ;;  %v425_v34 = vmax.f32 %v417_v23, 0.0 }
 0x1cd   :  { %v416_v29 = vadd.f32 %v873_v28, %v769_v16  ;;  %v423_v30 = vmax.f32 %v415_v27, 0.0 }
 0x1ce   :  { %v437_v47 = vsel %vm227_vm2, %v425_v34, 0.0  ;;  %v426_v48 = vmax.f32 %v418_v32, 0.0 }
 0x1cf   :  { %v842_v36 = vpop.f32.mrb[8].mxu1  ;;  %v431_v37 = vsel %vm227_vm2, %v423_v30, 0.0  ;;  %v424_v38 = vmax.f32 %v416_v29, 0.0 }
 0x1d0   :  { %v874_v39 = vadd.f32 %v842_v36, %v225_v31  ;;  %432 = vadd.xlane.f32.xlu0 %v431_v37  ;;  %v385_v40 = vpop.f32.mrb[9].mxu1  ;;  %v440_v59 = vsel %vm227_vm2, %v426_v48, 0.0 }
 0x1d1   :  { %v875_v43 = vadd.f32 %v385_v40, %v223_v35  ;;  %v843_v44 = vpop.f32.mrb[10].mxu1  ;;  %v434_v45 = vsel %vm227_vm2, %v424_v38, 0.0 }
 0x1d2   :  { %435 = vadd.xlane.f32.xlu1 %v434_v45  ;;  %v388_v46 = vpop.f32.mrb[11].mxu1  ;;  %v421_v49 = vadd.f32 %v874_v39, %v769_v16  ;;  %v876_v51 = vadd.f32 %v843_v44, %v226_v42 }
 0x1d3   :  { %v419_v50 = vadd.f32 %v875_v43, %v769_v16  ;;  %v877_v53 = vadd.f32 %v388_v46, %v224_v41 }
 0x1d4   :  { %438 = vadd.xlane.f32.xlu0 %v437_v47  ;;  %v422_v60 = vadd.f32 %v876_v51, %v769_v16  ;;  %v429_v62 = vmax.f32 %v421_v49, 0.0 }
 0x1d5   :  { %v420_v57 = vadd.f32 %v877_v53, %v769_v16  ;;  %v427_v58 = vmax.f32 %v419_v50, 0.0  ;;  %v536_v53 = vld [vmem:[%s1321_s9] sm:$0xff] }
 0x1d6   :  { %v449_v0 = vsel %vm227_vm2, %v429_v62, 0.0  ;;  %v430_v2 = vmax.f32 %v422_v60, 0.0  ;;  %v539_v60 = vld [vmem:[%s1321_s9 + $0x18] sm:$0xff] }
 0x1d7   :  { %v443_v61 = vsel %vm227_vm2, %v427_v58, 0.0  ;;  %v428_v63 = vmax.f32 %v420_v57, 0.0  ;;  %v537_v57 = vld [vmem:[%s1321_s9 + $0x8] sm:$0xff] }
 0x1d8   :  { %441 = vadd.xlane.f32.xlu0 %v440_v59  ;;  %444 = vadd.xlane.f32.xlu1 %v443_v61  ;;  %v452_v3 = vsel %vm227_vm2, %v430_v2, 0.0  ;;  %v538_v59 = vld [vmem:[%s1321_s9 + $0x10] sm:$0xff] }
 0x1d9   :  { %v446_v1 = vsel %vm227_vm2, %v428_v63, 0.0  ;;  %v545_v61 = vpack.c.bf16 %v539_v60, %v538_v59 }
 0x1dc   :  { %450 = vadd.xlane.f32.xlu1 %v449_v0  ;;  %447 = vadd.xlane.f32.xlu0 %v446_v1 }
 0x1e0   :  { %453 = vadd.xlane.f32.xlu0 %v452_v3 }
 0x25d   :  { %v433_v4 = vpop.xlane.xlu0 %432 }
 0x25e   :  { %v456_v5 = vmul.f32 0.03125, %v433_v4 }
 0x25f   :  { %v436_v9 = vpop.xlane.xlu1 %435 }
 0x260   :  { %v1155_v11 = vsub.f32 %v423_v30, %v456_v5  ;;  %v457_v12 = vmul.f32 0.03125, %v436_v9 }
 0x261   :  { %v439_v14 = vpop.xlane.xlu0 %438 }
 0x262   :  { %v1157_v15 = vsub.f32 %v424_v38, %v457_v12  ;;  %v458_v16 = vmul.f32 0.03125, %v439_v14  ;;  %v472_v18 = vmul.f32 %v1155_v11, %v1155_v11 }
 0x264   :  { %v1161_v19 = vsub.f32 %v425_v34, %v458_v16  ;;  %v480_v20 = vsel %vm227_vm2, %v472_v18, 0.0  ;;  %v473_v21 = vmul.f32 %v1157_v15, %v1157_v15 }
 0x265   :  { %v442_v22 = vpop.xlane.xlu0 %441  ;;  %481 = vadd.xlane.f32.xlu1 %v480_v20  ;;  %v445_v23 = vpop.xlane.xlu1 %444 }
 0x266   :  { %v459_v24 = vmul.f32 0.03125, %v442_v22  ;;  %v460_v25 = vmul.f32 0.03125, %v445_v23  ;;  %v483_v27 = vsel %vm227_vm2, %v473_v21, 0.0  ;;  %v474_v28 = vmul.f32 %v1161_v19, %v1161_v19 }
 0x267   :  { %484 = vadd.xlane.f32.xlu0 %v483_v27 }
 0x268   :  { %v1169_v29 = vsub.f32 %v426_v48, %v459_v24  ;;  %v1171_v30 = vsub.f32 %v427_v58, %v460_v25  ;;  %v486_v31 = vsel %vm227_vm2, %v474_v28, 0.0  ;;  %v544_v58 = vpack.c.bf16 %v537_v57, %v536_v53 }
 0x269   :  { %487 = vadd.xlane.f32.xlu1 %v486_v31  ;;  %v451_v32 = vpop.xlane.xlu1 %450  ;;  %v448_v34 = vpop.xlane.xlu0 %447 }
 0x26a   :  { %v462_v35 = vmul.f32 0.03125, %v451_v32  ;;  %v461_v36 = vmul.f32 0.03125, %v448_v34  ;;  %v476_v37 = vmul.f32 %v1171_v30, %v1171_v30  ;;  %v475_v38 = vmul.f32 %v1169_v29, %v1169_v29  ;;  %844 = vmatprep.subr.bf16.mxu0 %v544_v58 }
 0x26b   :  { %845 = vmatpush3.bf16.msra.mxu0 %v544_v58 }
 0x26c   :  { %v1178_v39 = vsub.f32 %v429_v62, %v462_v35  ;;  %v1180_v40 = vsub.f32 %v428_v63, %v461_v36  ;;  %v492_v41 = vsel %vm227_vm2, %v476_v37, 0.0  ;;  %v489_v42 = vsel %vm227_vm2, %v475_v38, 0.0  ;;  %846 = vmatprep.subr.bf16.mxu0 %v545_v61  ;;  %v638_v62 = vld [vmem:[%s1322_s11] sm:$0xff]  ;;  %v639_v63 = vld [vmem:[%s1322_s11 + $0x8] sm:$0xff] }
 0x26d   :  { %493 = vadd.xlane.f32.xlu1 %v492_v41  ;;  %490 = vadd.xlane.f32.xlu0 %v489_v42  ;;  %v454_v43 = vpop.xlane.xlu0 %453  ;;  %v642_v0 = vpack.c.bf16 %v639_v63, %v638_v62 }
 0x26e   :  { %v463_v44 = vmul.f32 0.03125, %v454_v43  ;;  %v478_v45 = vmul.f32 %v1178_v39, %v1178_v39  ;;  %v477_v46 = vmul.f32 %v1180_v40, %v1180_v40 }
 0x26f   :  { %847 = vmatpush3.bf16.msra.mxu0 %v545_v61 }
 0x270   :  { %v1188_v47 = vsub.f32 %v430_v2, %v463_v44  ;;  %v498_v48 = vsel %vm227_vm2, %v478_v45, 0.0  ;;  %v495_v49 = vsel %vm227_vm2, %v477_v46, 0.0  ;;  %856 = vmatprep.subr.bf16.mxu0 %v642_v0 }
 0x271   :  { %499 = vadd.xlane.f32.xlu1 %v498_v48  ;;  %496 = vadd.xlane.f32.xlu0 %v495_v49  ;;  %v640_v48 = vld [vmem:[%s1322_s11 + $0x10] sm:$0xff]  ;;  %v641_v49 = vld [vmem:[%s1322_s11 + $0x18] sm:$0xff] }
 0x272   :  { %v479_v50 = vmul.f32 %v1188_v47, %v1188_v47  ;;  %v643_v53 = vpack.c.bf16 %v641_v49, %v640_v48 }
 0x274   :  { %v501_v51 = vsel %vm227_vm2, %v479_v50, 0.0 }
 0x275   :  { %502 = vadd.xlane.f32.xlu0 %v501_v51 }
 0x2f2   :  { %v482_v1 = vpop.xlane.xlu1 %481 }
 0x2f3   :  { %v504_v2 = vmul.f32 0.03125, %v482_v1 }
 0x2f4   :  { %v485_v3 = vpop.xlane.xlu0 %484 }
 0x2f5   :  { %v512_v4 = vadd.f32 1e-05, %v504_v2  ;;  %v505_v5 = vmul.f32 0.03125, %v485_v3 }
 0x2f6   :  { %v488_v9 = vpop.xlane.xlu1 %487 }
 0x2f7   :  { %891 = vrsqrt.f32 %v512_v4  ;;  %v513_v12 = vadd.f32 1e-05, %v505_v5  ;;  %v506_v14 = vmul.f32 0.03125, %v488_v9 }
 0x2f9   :  { %893 = vrsqrt.f32 %v513_v12  ;;  %v514_v16 = vadd.f32 1e-05, %v506_v14 }
 0x2fa   :  { %v494_v18 = vpop.xlane.xlu1 %493  ;;  %v491_v20 = vpop.xlane.xlu0 %490 }
 0x2fb   :  { %v508_v21 = vmul.f32 0.03125, %v494_v18  ;;  %v507_v22 = vmul.f32 0.03125, %v491_v20  ;;  %895 = vrsqrt.f32 %v514_v16  ;;  %v775_v16 = vld [vmem:[%s1325_s12] ss:$0 sm:$0xff] }
 0x2fc   :  { %v653_v18 = vmul.f32 %v775_v16, %v1119_v7  ;;  %v651_v20 = vmul.f32 %v775_v16, %v1117_v6 }
 0x2fd   :  { %v515_v23 = vadd.f32 1e-05, %v507_v22  ;;  %v516_v24 = vadd.f32 1e-05, %v508_v21  ;;  %v780_v22 = vld [vmem:[%s1326_s13] ss:$0 sm:$0xff] }
 0x2fe   :  { %v500_v25 = vpop.xlane.xlu1 %499  ;;  %v497_v27 = vpop.xlane.xlu0 %496 }
 0x2ff   :  { %v510_v28 = vmul.f32 0.03125, %v500_v25  ;;  %v509_v31 = vmul.f32 0.03125, %v497_v27  ;;  %897 = vrsqrt.f32 %v515_v23  ;;  %v654_v23 = vmul.f32 %v775_v16, %v1126_v10 }
 0x300   :  { %899 = vrsqrt.f32 %v516_v24  ;;  %v652_v27 = vmul.f32 %v775_v16, %v1121_v8  ;;  %v657_v8 = vmul.f32 %v775_v16, %v1139_v26 }
 0x301   :  { %v892_v32 = vpop.eup %891  ;;  %v518_v34 = vadd.f32 1e-05, %v510_v28  ;;  %v517_v35 = vadd.f32 1e-05, %v509_v31 }
 0x302   :  { %v503_v36 = vpop.xlane.xlu0 %502  ;;  %v528_v41 = vmul.f32 %v892_v32, %v1155_v11 }
 0x303   :  { %v894_v37 = vpop.eup %893  ;;  %v511_v38 = vmul.f32 0.03125, %v503_v36  ;;  %901 = vrsqrt.f32 %v517_v35 }
 0x304   :  { %v529_v42 = vmul.f32 %v894_v37, %v1157_v15  ;;  %903 = vrsqrt.f32 %v518_v34  ;;  %v655_v37 = vmul.f32 %v775_v16, %v1130_v13 }
 0x305   :  { %v519_v43 = vadd.f32 1e-05, %v511_v38  ;;  %v896_v45 = vpop.eup %895 }
 0x306   :  { %v540_v44 = vpack.c.bf16 %v529_v42, %v528_v41  ;;  %v530_v11 = vmul.f32 %v896_v45, %v1161_v19  ;;  %v658_v41 = vmul.f32 %v775_v16, %v1142_v33 }
 0x307   :  { %905 = vrsqrt.f32 %v519_v43 }
 0x308   :  { %848 = vmatprep.mubr.msk.bf16.mxu0 %vm227_vm2, %v540_v44  ;;  %v656_v44 = vmul.f32 %v775_v16, %v1136_v17 }
 0x309   :  { %v898_v46 = vpop.eup %897 }
 0x30a   :  { %v531_v15 = vmul.f32 %v898_v46, %v1169_v29  ;;  %v900_v50 = vpop.eup %899 }
 0x30b   :  { %v532_v59 = vmul.f32 %v900_v50, %v1171_v30  ;;  %v770_v30 = vld [vmem:[%s1323_s10] ss:$0 sm:$0xff] }
 0x30c   :  { %v541_v51 = vpack.c.bf16 %v531_v15, %v530_v11 }
 0x30d   :  { %v902_v57 = vpop.eup %901 }
 0x30e   :  { %v904_v58 = vpop.eup %903  ;;  %849 = vmatmul.mubr.msk.bf16.vlgmr.msra.gmra.mrb[4].mxu0 %vm227_vm2, %v541_v51  ;;  %v533_v60 = vmul.f32 %v902_v57, %v1180_v40 }
 0x30f   :  { %857 = vmatpush3.bf16.msra.mxu0 %v642_v0  ;;  %v534_v63 = vmul.f32 %v904_v58, %v1178_v39 }
 0x310   :  { %v542_v62 = vpack.c.bf16 %v533_v60, %v532_v59  ;;  %858 = vmatprep.subr.bf16.mxu0 %v643_v53 }
 0x311   :  { %v906_v61 = vpop.eup %905 }
 0x312   :  { %v535_v19 = vmul.f32 %v906_v61, %v1188_v47  ;;  %852 = vmatprep.mubr.msk.bf16.mxu0 %vm227_vm2, %v542_v62 }
 0x313   :  { %859 = vmatpush3.bf16.msra.mxu0 %v643_v53 }
 0x314   :  { %v543_v29 = vpack.c.bf16 %v535_v19, %v534_v63 }
 0x316   :  { %853 = vmatmul.mubr.msk.bf16.gmra.mrb[8].mxu0 %vm227_vm2, %v543_v29 }
 0x317   :  { %860 = vmatprep.mubr.msk.bf16.mxu0 %vm227_vm2, %v1075_v54 }
 0x31e   :  { %861 = vmatmul.mubr.msk.bf16.vlgmr.msra.gmra.mrb[12].mxu0 %vm227_vm2, %v1073_v52 }
 0x31f   :  { %864 = vmatprep.mubr.msk.bf16.mxu0 %vm227_vm2, %v1079_v56 }
 0x326   :  { %865 = vmatmul.mubr.msk.bf16.gmra.mrb[16].mxu0 %vm227_vm2, %v1077_v55 }
 0x3e1   :  { %v850_v39 = vpop.f32.mrb[4].mxu0 }
 0x3e2   :  { %v608_v40 = vadd.f32 %v850_v39, %v770_v30  ;;  %v599_v47 = vpop.f32.mrb[5].mxu0 }
 0x3e3   :  { %v600_v0 = vadd.f32 %v770_v30, %v599_v47  ;;  %v851_v1 = vpop.f32.mrb[6].mxu0 }
 0x3e4   :  { %632 = vst [vmem:[%s1324_s14 + $0x10] sm:$0xff] %v608_v40  ;;  %v611_v52 = vadd.f32 %v851_v1, %v770_v30  ;;  %v602_v54 = vpop.f32.mrb[7].mxu0 }
 0x3e5   :  { %630 = vst [vmem:[%s1324_s14] sm:$0xff] %v600_v0  ;;  %v603_v55 = vadd.f32 %v770_v30, %v602_v54 }
 0x3e6   :  { %633 = vst [vmem:[%s1324_s14 + $0x18] sm:$0xff] %v611_v52 }
 0x3e7   :  { %631 = vst [vmem:[%s1324_s14 + $0x8] sm:$0xff] %v603_v55 }
 0x3e9   :  { %v854_v56 = vpop.f32.mrb[8].mxu0 }
 0x3ea   :  { %v624_v2 = vadd.f32 %v854_v56, %v770_v30  ;;  %v615_v3 = vpop.f32.mrb[9].mxu0 }
 0x3eb   :  { %v616_v4 = vadd.f32 %v770_v30, %v615_v3  ;;  %v855_v5 = vpop.f32.mrb[10].mxu0 }
 0x3ec   :  { %636 = vst [vmem:[%s1324_s14 + $0x30] sm:$0xff] %v624_v2  ;;  %v627_v9 = vadd.f32 %v855_v5, %v770_v30  ;;  %v618_v12 = vpop.f32.mrb[11].mxu0 }
 0x3ed   :  { %634 = vst [vmem:[%s1324_s14 + $0x20] sm:$0xff] %v616_v4  ;;  %v619_v14 = vadd.f32 %v770_v30, %v618_v12 }
 0x3ee   :  { %637 = vst [vmem:[%s1324_s14 + $0x38] sm:$0xff] %v627_v9 }
 0x3ef   :  { %635 = vst [vmem:[%s1324_s14 + $0x28] sm:$0xff] %v619_v14 }
 0x3f1   :  { %v862_v21 = vpop.f32.mrb[12].mxu0 }
 0x3f2   :  { %v702_v24 = vadd.f32 %v862_v21, %v653_v18  ;;  %v693_v25 = vpop.f32.mrb[13].mxu0 }
 0x3f3   :  { %v694_v28 = vadd.f32 %v693_v25, %v651_v20  ;;  %v863_v31 = vpop.f32.mrb[14].mxu0 }
 0x3f4   :  { %v733_v32 = vadd.f32 %v780_v22, %v702_v24  ;;  %v705_v34 = vadd.f32 %v863_v31, %v654_v23  ;;  %v696_v35 = vpop.f32.mrb[15].mxu0 }
 0x3f5   :  { %v731_v36 = vadd.f32 %v780_v22, %v694_v28  ;;  %v697_v7 = vadd.f32 %v696_v35, %v652_v27 }
 0x3f6   :  { %741 = vst.msk [vmem:[%s1327_s15 + $0x10] sm:$0xff] %vm227_vm2, %v733_v32  ;;  %v734_v6 = vadd.f32 %v780_v22, %v705_v34 }
 0x3f7   :  { %739 = vst.msk [vmem:[%s1327_s15] sm:$0xff] %vm227_vm2, %v731_v36  ;;  %v732_v10 = vadd.f32 %v780_v22, %v697_v7 }
 0x3f8   :  { %742 = vst.msk [vmem:[%s1327_s15 + $0x18] sm:$0xff] %vm227_vm2, %v734_v6 }
 0x3f9   :  { %740 = vst.msk [vmem:[%s1327_s15 + $0x8] sm:$0xff] %vm227_vm2, %v732_v10  ;;  %v866_v38 = vpop.f32.mrb[16].mxu0 }
 0x3fa   :  { %v718_v42 = vadd.f32 %v866_v38, %v657_v8  ;;  %v709_v43 = vpop.f32.mrb[17].mxu0 }
 0x3fb   :  { %v710_v26 = vadd.f32 %v709_v43, %v655_v37  ;;  %v867_v45 = vpop.f32.mrb[18].mxu0 }
 0x3fc   :  { %v737_v46 = vadd.f32 %v780_v22, %v718_v42  ;;  %v721_v48 = vadd.f32 %v867_v45, %v658_v41  ;;  %v712_v49 = vpop.f32.mrb[19].mxu0 }
 0x3fd   :  { %v735_v11 = vadd.f32 %v780_v22, %v710_v26  ;;  %v713_v15 = vadd.f32 %v712_v49, %v656_v44 }
 0x3fe   :  { %745 = vst.msk [vmem:[%s1327_s15 + $0x30] sm:$0xff] %vm227_vm2, %v737_v46  ;;  %v738_v13 = vadd.f32 %v780_v22, %v721_v48 }
 0x3ff   :  { %743 = vst.msk [vmem:[%s1327_s15 + $0x20] sm:$0xff] %vm227_vm2, %v735_v11  ;;  %v736_v33 = vadd.f32 %v780_v22, %v713_v15 }
 0x400   :  { %746 = vst.msk [vmem:[%s1327_s15 + $0x38] sm:$0xff] %vm227_vm2, %v738_v13 }
 0x401   :  { %744 = vst.msk [vmem:[%s1327_s15 + $0x28] sm:$0xff] %vm227_vm2, %v736_v33 }

// kernel: fwd.3
= control target key start
LH: loop header
LB: loop body
LE: loop exit
PB: predicated region body
PF: predicated region fallthrough
CT: control target
= control target key end

     0   :  { %s3151_s29 = smov 0   ;;  %s3890_s0 = inlined_call_operand.vmem [shape: f32[8,8,128], index: 0, kind: input, shape index: {}]   ;;  %s3891_s1 = inlined_call_operand.vmem [shape: f32[8,8,32], index: 1, kind: input, shape index: {}]   ;;  %s3892_s2 = inlined_call_operand.vmem [shape: f32[8,8,6], index: 2, kind: input, shape index: {}]   ;;  %s3893_s3 = inlined_call_operand.vmem [shape: s32[1,8,1], index: 3, kind: input, shape index: {}]   ;;  %s3894_s4 = inlined_call_operand.vmem [shape: f32[32,128], index: 4, kind: input, shape index: {}]   ;;  %s3895_s5 = inlined_call_operand.vmem [shape: f32[32,32], index: 5, kind: input, shape index: {}]   ;;  %s3896_s6 = inlined_call_operand.vmem [shape: f32[1,32], index: 6, kind: input, shape index: {}]   ;;  %s3897_s7 = inlined_call_operand.vmem [shape: f32[1,32], index: 7, kind: input, shape index: {}]   ;;  %s3898_s8 = inlined_call_operand.<no memory space> [shape: f32[1,1], index: 8, kind: input, shape index: {}]   ;;  %s3899_s9 = inlined_call_operand.vmem [shape: f32[32,32], index: 9, kind: input, shape index: {}]   ;;  %s3900_s10 = inlined_call_operand.vmem [shape: f32[1,32], index: 10, kind: input, shape index: {}]   ;;  %s3901_s11 = inlined_call_operand.vmem [shape: f32[32,64], index: 11, kind: input, shape index: {}]   ;;  %s3902_s12 = inlined_call_operand.vmem [shape: f32[1,64], index: 12, kind: input, shape index: {}]   ;;  %s3903_s13 = inlined_call_operand.vmem [shape: f32[32,32], index: 13, kind: input, shape index: {}]   ;;  %s3904_s14 = inlined_call_operand.vmem [shape: f32[32,6], index: 14, kind: input, shape index: {}]   ;;  %s3905_s15 = inlined_call_operand.vmem [shape: f32[1,6], index: 15, kind: input, shape index: {}]   ;;  %s3906_s16 = inlined_call_operand.vmem [shape: f32[3,8,8,32], index: 16, kind: output, shape index: {0}]   ;;  %s3907_s17 = inlined_call_operand.vmem [shape: f32[3,8,8,1], index: 17, kind: output, shape index: {1}]   ;;  %s3908_s18 = inlined_call_operand.vmem [shape: f32[3,8,8,1], index: 18, kind: output, shape index: {2}]   ;;  %s3909_s19 = inlined_call_operand.vmem [shape: f32[3,8,8,1], index: 19, kind: output, shape index: {3}]   ;;  %s3910_s20 = inlined_call_operand.vmem [shape: f32[3,8,64], index: 20, kind: output, shape index: {4}]   ;;  %s3911_s21 = inlined_call_operand.vmem [shape: f32[3,8,8,6], index: 21, kind: output, shape index: {5}]   ;;  %s3912_s22 = inlined_call_operand.vmem [shape: f32[3,8,1], index: 22, kind: output, shape index: {6}]  }
   0x1   :  { %3922 = sst [smem:[#allocation5_spill]] %s3890_s0  ;;  %v28_v0 = vstv %s3898_s8 }
   0x2   :  { %3923 = sst [smem:[#allocation6_spill]] %s3891_s1  ;;  %29 = vst [vmem:[#allocation3] sm:$0x1] %v28_v0 }
   0x3   :  { %3924 = sst [smem:[#allocation7_spill]] %s3892_s2 }
   0x4   :  { %3925 = sst [smem:[#allocation8_spill]] %s3893_s3 }
   0x5   :  { %3926 = sst [smem:[#allocation9_spill]] %s3894_s4 }
   0x6   :  { %3927 = sst [smem:[#allocation10_spill]] %s3895_s5 }
   0x7   :  { %3928 = sst [smem:[#allocation11_spill]] %s3896_s6 }
   0x8   :  { %3929 = sst [smem:[#allocation12_spill]] %s3905_s15 }
   0x9   :  { %3930 = sst [smem:[#allocation13_spill]] %s3906_s16 }
   0xa   :  { %3931 = sst [smem:[#allocation14_spill]] %s3907_s17 }
   0xb LB: > { %3932 = sst [smem:[#allocation4_spill]] %s3022_s29  ;;  %s3157_s30 = sadd.s32 4294967295, %s3022_s29   ;;  %s3022_s29 = sphi %s3151_s29, %s35_s29  }
   0xc   : > { %p2637_p0 = scmp.ge.s32.totalorder %s3022_s29, 1  ;;  %p617_p1 = scmp.lt.s32.totalorder %s3022_s29, 4 }
   0xe   : > { %p618_p2 = pnand %p2637_p0, %p617_p1 }
   0xf   : > { %p702_p3 = scmp.lt.s32.totalorder (!%p618_p2), %s3157_s30, 2  ;;  %p736_p4 = scmp.eq.s32.totalorder (!%p618_p2), %s3157_s30, 2 }
  0x10   : > { %621 = sbr.rel (%p618_p2) target bundleno = 7466 (0x1d2a), region = 84  ;;  %s3933_s16 = sld [smem:[#allocation13_spill]] (!%p618_p2) }
  0x11   : > { %s3934_s17 = sld [smem:[#allocation14_spill]] (!%p618_p2)  ;;  %p2650_p5 = scmp.ne.s32.totalorder (!%p618_p2), %s3157_s30, 0 }
  0x17   : > { %s703_s8 = scalar_select %p702_p3, %s3157_s30, 2 }
  0x18   : > { %740 = sbr.rel (%p2650_p5) target bundleno = 31 (0x1f), region = 88  ;;  %vm741_vm0 = vcmask (!%p2650_p5), 7168   ;;  %v3024_v1 = vmov (!%p2650_p5), 1.0  }
  0x19   : > { %s2734_s4 = sshll.u32 %s703_s8, 6  ;;  %s2646_s0 = sshll.u32 %s703_s8, 3  ;;  %742 = vst.msk [vmem:[#allocation2] sm:$0xff] (!%p2650_p5), %vm741_vm0, %v3024_v1  ;;  %743 = vst.msk [vmem:[#allocation2 + $0x8] sm:$0xff] (!%p2650_p5), %vm741_vm0, %v3024_v1 }
  0x1a   : > { %s3167_s5 = scalar_lea.vmem %s3933_s16, %s2734_s4  ;;  %s3172_s25 = scalar_lea.vmem %s3934_s17, %s2734_s4  ;;  %744 = vst.msk [vmem:[#allocation2 + $0x10] sm:$0xff] (!%p2650_p5), %vm741_vm0, %v3024_v1  ;;  %745 = vst.msk [vmem:[#allocation2 + $0x18] sm:$0xff] (!%p2650_p5), %vm741_vm0, %v3024_v1 }
  0x1b   : > { %s3177_s27 = scalar_lea.vmem %s3908_s18, %s2734_s4  ;;  %s3182_s29 = scalar_lea.vmem %s3909_s19, %s2734_s4  ;;  %746 = vst.msk [vmem:[#allocation2 + $0x20] sm:$0xff] (!%p2650_p5), %vm741_vm0, %v3024_v1  ;;  %747 = vst.msk [vmem:[#allocation2 + $0x28] sm:$0xff] (!%p2650_p5), %vm741_vm0, %v3024_v1 }
  0x1c   : > { %s3187_s23 = scalar_lea.vmem %s3910_s20, %s2646_s0  ;;  %s3192_s24 = scalar_lea.vmem %s3911_s21, %s2734_s4  ;;  %748 = vst.msk [vmem:[#allocation2 + $0x30] sm:$0xff] (!%p2650_p5), %vm741_vm0, %v3024_v1  ;;  %749 = vst.msk [vmem:[#allocation2 + $0x38] sm:$0xff] (!%p2650_p5), %vm741_vm0, %v3024_v1 }
  0x1d   : > { %s3197_s26 = scalar_lea.vmem %s3912_s22, %s2646_s0 }
  0x1f PF: > { %s3935_s4 = sld [smem:[#allocation9_spill]]  ;;  %v3025_v5 = vmov 0.0   ;;  %vm3026_vm1 = vmmov 0   ;;  %v3027_v8 = vmov 0   ;;  %s3936_s15 = sld [smem:[#allocation5_spill]]  ;;  %vm757_vm2 = vcmask 261120  }
  0x20   : > { %2784 = vmatprep.subr.bf16.mxu0 %v3025_v5  ;;  %2788 = vmatprep.mubr.msk.bf16.mxu0 %vm3026_vm1, %v3025_v5  ;;  %v826_v10 = vld [vmem:[#allocation2] sm:$0xff]  ;;  %s3921_s16 = smov 64   ;;  %s3919_s17 = smov 32   ;;  %v914_v41 = vld [vmem:[#allocation2 + $0x8] sm:$0xff]  ;;  %vm1650_vm4 = vcmask 7168  }
  0x21   : > { %2913 = vset.pattern.permute.xlu1 %v3027_v8  ;;  %2792 = vmatprep.subr.bf16.mxu1 %v3025_v5  ;;  %s3937_s3 = sld [smem:[#allocation10_spill]]  ;;  %s3938_s0 = smov 64  }
  0x22   : > { %2796 = vmatprep.mubr.msk.bf16.mxu1 %vm3026_vm1, %v3025_v5  ;;  %2914 = vset.pattern.permute.xlu0 %v3027_v8  ;;  %s3939_s2 = smov 32   ;;  %s3940_s28 = sld [smem:[#allocation11_spill]] }
  0x23   : > { %829 = vperm.xlu1 %2913, %v826_v10  }
  0x25   : > { %v750_v2 = vld [vmem:[%s3935_s4] sm:$0xff]  ;;  %v751_v3 = vld [vmem:[%s3935_s4 + $0x8] sm:$0xff]  ;;  %v752_v4 = vld [vmem:[%s3935_s4 + $0x10] sm:$0xff] }
  0x26   : > { %v3210_v6 = vpack.c.bf16 %v751_v3, %v750_v2  ;;  %v753_v7 = vld [vmem:[%s3935_s4 + $0x18] sm:$0xff]  ;;  %v756_v11 = vld [vmem:[%s3936_s15] sm:$0xff]  ;;  %v2652_v34 = vld [vmem:[%s3936_s15 + $0x8] sm:$0xff] }
  0x27   : > { %v3219_v9 = vpack.c.bf16 %v753_v7, %v752_v4  ;;  %v2656_v59 = vld [vmem:[%s3936_s15 + $0x10] sm:$0xff] }
  0x28   : > { %2785 = vmatpush3.bf16.msra.mxu0 %v3210_v6  ;;  %2793 = vmatpush3.bf16.msra.mxu1 %v3210_v6  ;;  %v1003_v2 = vld [vmem:[#allocation2 + $0x10] sm:$0xff] }
  0x29   : > { %2786 = vmatprep.subr.bf16.mxu0 %v3025_v5  ;;  %2794 = vmatprep.subr.bf16.mxu1 %v3025_v5 }
  0x2c   : > { %2787 = vmatpush3.bf16.msra.mxu0 %v3219_v9  ;;  %2795 = vmatpush3.bf16.msra.mxu1 %v3219_v9 }
  0x2d   : > { %2800 = vmatprep.subr.bf16.mxu0 %v3025_v5  ;;  %2808 = vmatprep.subr.bf16.mxu1 %v3025_v5 }
  0x2f   : > { %2789 = vmatmul.mubr.bf16.vlgmr.msra.gmra.mrb[0].mxu0 %v3027_v8 }
  0x30   : > { %2801 = vmatpush3.bf16.msra.mxu0 %v3210_v6  ;;  %2804 = vmatprep.mubr.msk.bf16.mxu0 %vm3026_vm1, %v3025_v5 }
  0x31   : > { %2802 = vmatprep.subr.bf16.mxu0 %v3025_v5 }
  0x34   : > { %2803 = vmatpush3.bf16.msra.mxu0 %v3219_v9 }
  0x35   : > { %2816 = vmatprep.subr.bf16.mxu0 %v3025_v5 }
  0xa2   : > { %v830_v28 = vpop.permute.xlu1 %829 }
 0x102   : > { %v795_v12 = vpop.f32.mrb[0].mxu0 }
 0x103   : > { %v801_v13 = vadd.f32 %v795_v12, %v756_v11  ;;  %v2790_v14 = vpop.f32.mrb[1].mxu0 }
 0x104   : > { %v798_v15 = vpop.f32.mrb[2].mxu0 }
 0x105   : > { %2920 = vtanh.f32 %v801_v13  ;;  %v2791_v16 = vpop.f32.mrb[3].mxu0  ;;  %v2651_v18 = vmul.f32 -1.442695, %v801_v13 }
 0x107   : > { %2922 = vpow2.f32 %v2651_v18 }
 0x10f   : > { %v2921_v17 = vpop.eup %2920 }
 0x110   : > { %811 = vrot.lane.b32.xlu0 %v2921_v17, %s3921_s16 }
 0x111   : > { %v2923_v19 = vpop.eup %2922 }
 0x112   : > { %v805_v20 = vadd.f32 1.0, %v2923_v19 }
 0x114   : > { %2924 = vrcp.f32 %v805_v20 }
 0x11e   : > { %v2925_v21 = vpop.eup %2924 }
 0x11f   : > { %v809_v24 = vmul.f32 0.0, %v2925_v21 }
 0x182   : > { %v812_v22 = vpop.permute.xlu0 %811 }
 0x183   : > { %v814_v23 = vmul.f32 %v2925_v21, %v812_v22 }
 0x185   : > { %816 = vrot.lane.b32.xlu0 %v814_v23, %s3919_s17  ;;  %v2660_v23 = vld [vmem:[%s3936_s15 + $0x18] sm:$0xff] }
 0x1f7   : > { %v817_v25 = vpop.permute.xlu0 %816 }
 0x1f8   : > { %v819_v26 = vadd.f32 %v817_v25, %v809_v24 }
 0x1fa   : > { %2926 = vtanh.f32 %v819_v26  ;;  %v833_v48 = vmul.f32 %v830_v28, %v819_v26 }
 0x204   : > { %v2927_v27 = vpop.eup %2926 }
 0x205   : > { %822 = vrot.lane.b32.xlu1 %v2927_v27, %s3921_s16 }
 0x277   : > { %v823_v29 = vpop.permute.xlu1 %822 }
 0x278   : > { %v825_v30 = vmul.f32 %v2925_v21, %v823_v29 }
 0x27a   : > { %v3242_v31 = vmul.f32 %v830_v28, %v825_v30  ;;  %v1092_v30 = vld [vmem:[#allocation2 + $0x18] sm:$0xff] }
 0x27c   : > { %v841_v32 = vpack.c.bf16 %v3242_v31, %v3242_v31 }
 0x27e   : > { %843 = vrot.lane.b32.xlu0 %v841_v32, %s3919_s17 }
 0x2f0   : > { %v844_v33 = vpop.permute.xlu0 %843 }
 0x2f1   : > { %2797 = vmatmul.mubr.msk.bf16.vlgmr.msra.gmra.mrb[0].mxu1 %vm757_vm2, %v844_v33 }
 0x2f2   : > { %2809 = vmatpush3.bf16.msra.mxu1 %v3210_v6  ;;  %2812 = vmatprep.mubr.msk.bf16.mxu1 %vm3026_vm1, %v3025_v5 }
 0x2f3   : > { %2810 = vmatprep.subr.bf16.mxu1 %v3025_v5 }
 0x2f6   : > { %2811 = vmatpush3.bf16.msra.mxu1 %v3219_v9 }
 0x2f7   : > { %2824 = vmatprep.subr.bf16.mxu1 %v3025_v5 }
 0x3c4   : > { %v882_v35 = vpop.f32.mrb[0].mxu1 }
 0x3c5   : > { %v888_v36 = vadd.f32 %v2652_v34, %v882_v35  ;;  %v2798_v37 = vpop.f32.mrb[1].mxu1 }
 0x3c6   : > { %v885_v38 = vpop.f32.mrb[2].mxu1 }
 0x3c7   : > { %2928 = vtanh.f32 %v888_v36  ;;  %v2799_v39 = vpop.f32.mrb[3].mxu1  ;;  %v2654_v42 = vmul.f32 -1.442695, %v888_v36 }
 0x3c9   : > { %2930 = vpow2.f32 %v2654_v42 }
 0x3d1   : > { %v2929_v40 = vpop.eup %2928 }
 0x3d2   : > { %898 = vrot.lane.b32.xlu1 %v2929_v40, %s3921_s16 }
 0x3d3   : > { %v2931_v43 = vpop.eup %2930 }
 0x3d4   : > { %v892_v44 = vadd.f32 1.0, %v2931_v43 }
 0x3d6   : > { %917 = vperm.xlu1 %2913, %v914_v41   ;;  %2932 = vrcp.f32 %v892_v44 }
 0x3e0   : > { %v2933_v45 = vpop.eup %2932 }
 0x3e1   : > { %v896_v49 = vmul.f32 %v2933_v45, %v833_v48 }
 0x444   : > { %v899_v46 = vpop.permute.xlu1 %898 }
 0x445   : > { %v901_v47 = vmul.f32 %v2933_v45, %v899_v46 }
 0x447   : > { %903 = vrot.lane.b32.xlu0 %v901_v47, %s3919_s17 }
 0x455   : > { %v918_v55 = vpop.permute.xlu1 %917 }
 0x4b9   : > { %v904_v50 = vpop.permute.xlu0 %903 }
 0x4ba   : > { %v906_v51 = vadd.f32 %v904_v50, %v896_v49  ;;  %v2664_v49 = vld [vmem:[%s3936_s15 + $0x20] sm:$0xff] }
 0x4bc   : > { %2934 = vtanh.f32 %v906_v51  ;;  %v921_v12 = vmul.f32 %v918_v55, %v906_v51 }
 0x4c6   : > { %v2935_v52 = vpop.eup %2934 }
 0x4c7   : > { %909 = vrot.lane.b32.xlu0 %v2935_v52, %s3921_s16 }
 0x539   : > { %v910_v53 = vpop.permute.xlu0 %909 }
 0x53a   : > { %v912_v54 = vmul.f32 %v2933_v45, %v910_v53 }
 0x53c   : > { %v3260_v56 = vmul.f32 %v918_v55, %v912_v54 }
 0x53e   : > { %v930_v57 = vpack.c.bf16 %v3260_v56, %v3260_v56 }
 0x540   : > { %932 = vrot.lane.b32.xlu1 %v930_v57, %s3919_s17  ;;  %v1181_v57 = vld [vmem:[#allocation2 + $0x20] sm:$0xff] }
 0x5b2   : > { %v933_v58 = vpop.permute.xlu1 %932 }
 0x5b3   : > { %2805 = vmatmul.mubr.msk.bf16.vlgmr.msra.gmra.mrb[4].mxu0 %vm757_vm2, %v933_v58 }
 0x5b4   : > { %2817 = vmatpush3.bf16.msra.mxu0 %v3210_v6  ;;  %2820 = vmatprep.mubr.msk.bf16.mxu0 %vm3026_vm1, %v3025_v5 }
 0x5b5   : > { %2818 = vmatprep.subr.bf16.mxu0 %v3025_v5 }
 0x5b8   : > { %2819 = vmatpush3.bf16.msra.mxu0 %v3219_v9 }
 0x5b9   : > { %2832 = vmatprep.subr.bf16.mxu0 %v3025_v5 }
 0x686   : > { %v971_v60 = vpop.f32.mrb[4].mxu0 }
 0x687   : > { %v977_v61 = vadd.f32 %v2656_v59, %v971_v60  ;;  %v2806_v62 = vpop.f32.mrb[5].mxu0 }
 0x688   : > { %v974_v63 = vpop.f32.mrb[6].mxu0 }
 0x689   : > { %2936 = vtanh.f32 %v977_v61  ;;  %v2807_v0 = vpop.f32.mrb[7].mxu0  ;;  %v2658_v3 = vmul.f32 -1.442695, %v977_v61 }
 0x68b   : > { %2938 = vpow2.f32 %v2658_v3 }
 0x693   : > { %v2937_v1 = vpop.eup %2936 }
 0x694   : > { %987 = vrot.lane.b32.xlu0 %v2937_v1, %s3921_s16 }
 0x695   : > { %v2939_v4 = vpop.eup %2938 }
 0x696   : > { %v981_v7 = vadd.f32 1.0, %v2939_v4 }
 0x698   : > { %1006 = vperm.xlu0 %2914, %v1003_v2   ;;  %2940 = vrcp.f32 %v981_v7 }
 0x6a2   : > { %v2941_v8 = vpop.eup %2940 }
 0x6a3   : > { %v985_v13 = vmul.f32 %v2941_v8, %v921_v12 }
 0x706   : > { %v988_v10 = vpop.permute.xlu0 %987 }
 0x707   : > { %v990_v11 = vmul.f32 %v2941_v8, %v988_v10 }
 0x709   : > { %992 = vrot.lane.b32.xlu1 %v990_v11, %s3919_s17 }
 0x717   : > { %v1007_v19 = vpop.permute.xlu0 %1006 }
 0x77b   : > { %v993_v14 = vpop.permute.xlu1 %992 }
 0x77c   : > { %v995_v15 = vadd.f32 %v993_v14, %v985_v13  ;;  %v2668_v14 = vld [vmem:[%s3936_s15 + $0x28] sm:$0xff] }
 0x77e   : > { %2942 = vtanh.f32 %v995_v15  ;;  %v1010_v38 = vmul.f32 %v1007_v19, %v995_v15 }
 0x788   : > { %v2943_v16 = vpop.eup %2942 }
 0x789   : > { %998 = vrot.lane.b32.xlu1 %v2943_v16, %s3921_s16 }
 0x7fb   : > { %v999_v17 = vpop.permute.xlu1 %998 }
 0x7fc   : > { %v1001_v18 = vmul.f32 %v2941_v8, %v999_v17 }
 0x7fe   : > { %v3278_v20 = vmul.f32 %v1007_v19, %v1001_v18 }
 0x800   : > { %v1019_v21 = vpack.c.bf16 %v3278_v20, %v3278_v20 }
 0x802   : > { %1021 = vrot.lane.b32.xlu1 %v1019_v21, %s3919_s17  ;;  %v1270_v21 = vld [vmem:[#allocation2 + $0x28] sm:$0xff] }
 0x874   : > { %v1022_v22 = vpop.permute.xlu1 %1021 }
 0x875   : > { %2813 = vmatmul.mubr.msk.bf16.vlgmr.msra.gmra.mrb[4].mxu1 %vm757_vm2, %v1022_v22 }
 0x876   : > { %2825 = vmatpush3.bf16.msra.mxu1 %v3210_v6  ;;  %2828 = vmatprep.mubr.msk.bf16.mxu1 %vm3026_vm1, %v3025_v5 }
 0x877   : > { %2826 = vmatprep.subr.bf16.mxu1 %v3025_v5 }
 0x87a   : > { %2827 = vmatpush3.bf16.msra.mxu1 %v3219_v9 }
 0x87b   : > { %2840 = vmatprep.subr.bf16.mxu1 %v3025_v5 }
 0x948   : > { %v1060_v24 = vpop.f32.mrb[4].mxu1 }
 0x949   : > { %v1066_v25 = vadd.f32 %v2660_v23, %v1060_v24  ;;  %v2814_v26 = vpop.f32.mrb[5].mxu1 }
 0x94a   : > { %v1063_v27 = vpop.f32.mrb[6].mxu1 }
 0x94b   : > { %2944 = vtanh.f32 %v1066_v25  ;;  %v2815_v28 = vpop.f32.mrb[7].mxu1  ;;  %v2662_v32 = vmul.f32 -1.442695, %v1066_v25 }
 0x94d   : > { %2946 = vpow2.f32 %v2662_v32 }
 0x955   : > { %v2945_v29 = vpop.eup %2944 }
 0x956   : > { %1076 = vrot.lane.b32.xlu0 %v2945_v29, %s3921_s16 }
 0x957   : > { %v2947_v33 = vpop.eup %2946 }
 0x958   : > { %v1070_v34 = vadd.f32 1.0, %v2947_v33 }
 0x95a   : > { %1095 = vperm.xlu0 %2914, %v1092_v30   ;;  %2948 = vrcp.f32 %v1070_v34 }
 0x964   : > { %v2949_v35 = vpop.eup %2948 }
 0x965   : > { %v1074_v39 = vmul.f32 %v2949_v35, %v1010_v38 }
 0x9c8   : > { %v1077_v36 = vpop.permute.xlu0 %1076 }
 0x9c9   : > { %v1079_v37 = vmul.f32 %v2949_v35, %v1077_v36 }
 0x9cb   : > { %1081 = vrot.lane.b32.xlu1 %v1079_v37, %s3919_s17 }
 0x9d9   : > { %v1096_v45 = vpop.permute.xlu0 %1095 }
 0xa3d   : > { %v1082_v40 = vpop.permute.xlu1 %1081 }
 0xa3e   : > { %v1084_v41 = vadd.f32 %v1082_v40, %v1074_v39  ;;  %v2672_v39 = vld [vmem:[%s3936_s15 + $0x30] sm:$0xff] }
 0xa40   : > { %2950 = vtanh.f32 %v1084_v41  ;;  %v1099_v0 = vmul.f32 %v1096_v45, %v1084_v41 }
 0xa4a   : > { %v2951_v42 = vpop.eup %2950 }
 0xa4b   : > { %1087 = vrot.lane.b32.xlu1 %v2951_v42, %s3921_s16 }
 0xabd   : > { %v1088_v43 = vpop.permute.xlu1 %1087 }
 0xabe   : > { %v1090_v44 = vmul.f32 %v2949_v35, %v1088_v43 }
 0xac0   : > { %v3296_v46 = vmul.f32 %v1096_v45, %v1090_v44 }
 0xac2   : > { %v1108_v47 = vpack.c.bf16 %v3296_v46, %v3296_v46 }
 0xac4   : > { %1110 = vrot.lane.b32.xlu0 %v1108_v47, %s3919_s17  ;;  %v1359_v47 = vld [vmem:[#allocation2 + $0x30] sm:$0xff] }
 0xb36   : > { %v1111_v48 = vpop.permute.xlu0 %1110 }
 0xb37   : > { %2821 = vmatmul.mubr.msk.bf16.vlgmr.msra.gmra.mrb[8].mxu0 %vm757_vm2, %v1111_v48 }
 0xb38   : > { %2833 = vmatpush3.bf16.msra.mxu0 %v3210_v6  ;;  %2836 = vmatprep.mubr.msk.bf16.mxu0 %vm3026_vm1, %v3025_v5 }
 0xb39   : > { %2834 = vmatprep.subr.bf16.mxu0 %v3025_v5 }
 0xb3c   : > { %2835 = vmatpush3.bf16.msra.mxu0 %v3219_v9 }
 0xc0a   : > { %v1149_v50 = vpop.f32.mrb[8].mxu0 }
 0xc0b   : > { %v1155_v51 = vadd.f32 %v2664_v49, %v1149_v50  ;;  %v2822_v52 = vpop.f32.mrb[9].mxu0 }
 0xc0c   : > { %v1152_v53 = vpop.f32.mrb[10].mxu0 }
 0xc0d   : > { %2952 = vtanh.f32 %v1155_v51  ;;  %v2823_v54 = vpop.f32.mrb[11].mxu0  ;;  %v2666_v58 = vmul.f32 -1.442695, %v1155_v51 }
 0xc0f   : > { %2954 = vpow2.f32 %v2666_v58 }
 0xc17   : > { %v2953_v55 = vpop.eup %2952 }
 0xc18   : > { %1165 = vrot.lane.b32.xlu1 %v2953_v55, %s3921_s16 }
 0xc19   : > { %v2955_v59 = vpop.eup %2954 }
 0xc1a   : > { %v1159_v60 = vadd.f32 1.0, %v2955_v59 }
 0xc1c   : > { %1184 = vperm.xlu1 %2913, %v1181_v57   ;;  %2956 = vrcp.f32 %v1159_v60 }
 0xc26   : > { %v2957_v61 = vpop.eup %2956 }
 0xc27   : > { %v1163_v1 = vmul.f32 %v2957_v61, %v1099_v0 }
 0xc8a   : > { %v1166_v62 = vpop.permute.xlu1 %1165 }
 0xc8b   : > { %v1168_v63 = vmul.f32 %v2957_v61, %v1166_v62 }
 0xc8d   : > { %1170 = vrot.lane.b32.xlu0 %v1168_v63, %s3919_s17 }
 0xc9b   : > { %v1185_v10 = vpop.permute.xlu1 %1184 }
 0xcff   : > { %v1171_v2 = vpop.permute.xlu0 %1170 }
 0xd00   : > { %v1173_v3 = vadd.f32 %v1171_v2, %v1163_v1  ;;  %v2676_v2 = vld [vmem:[%s3936_s15 + $0x38] sm:$0xff] }
 0xd02   : > { %2958 = vtanh.f32 %v1173_v3  ;;  %v1188_v27 = vmul.f32 %v1185_v10, %v1173_v3 }
 0xd0c   : > { %v2959_v4 = vpop.eup %2958 }
 0xd0d   : > { %1176 = vrot.lane.b32.xlu0 %v2959_v4, %s3921_s16 }
 0xd7f   : > { %v1177_v7 = vpop.permute.xlu0 %1176 }
 0xd80   : > { %v1179_v8 = vmul.f32 %v2957_v61, %v1177_v7 }
 0xd82   : > { %v3313_v11 = vmul.f32 %v1185_v10, %v1179_v8 }
 0xd84   : > { %v1197_v12 = vpack.c.bf16 %v3313_v11, %v3313_v11 }
 0xd86   : > { %1199 = vrot.lane.b32.xlu1 %v1197_v12, %s3919_s17 }
 0xdf8   : > { %v1200_v13 = vpop.permute.xlu1 %1199 }
 0xdf9   : > { %2829 = vmatmul.mubr.msk.bf16.vlgmr.msra.gmra.mrb[8].mxu1 %vm757_vm2, %v1200_v13  ;;  %v1448_v13 = vld [vmem:[#allocation2 + $0x38] sm:$0xff] }
 0xdfa   : > { %2841 = vmatpush3.bf16.msra.mxu1 %v3210_v6  ;;  %2844 = vmatprep.mubr.msk.bf16.mxu1 %vm3026_vm1, %v3025_v5 }
 0xdfb   : > { %2842 = vmatprep.subr.bf16.mxu1 %v3025_v5 }
 0xdfe   : > { %2843 = vmatpush3.bf16.msra.mxu1 %v3219_v9 }
 0xdff   : > { %2860 = vmatprep.subr.bf16.mxu1 %v3025_v5 }
 0xecc   : > { %v1238_v15 = vpop.f32.mrb[8].mxu1 }
 0xecd   : > { %v1244_v16 = vadd.f32 %v2668_v14, %v1238_v15  ;;  %v2830_v17 = vpop.f32.mrb[9].mxu1 }
 0xece   : > { %v1241_v18 = vpop.f32.mrb[10].mxu1 }
 0xecf   : > { %2960 = vtanh.f32 %v1244_v16  ;;  %v2831_v19 = vpop.f32.mrb[11].mxu1  ;;  %v2670_v22 = vmul.f32 -1.442695, %v1244_v16 }
 0xed1   : > { %2962 = vpow2.f32 %v2670_v22 }
 0xed9   : > { %v2961_v6 = vpop.eup %2960 }
 0xeda   : > { %1254 = vrot.lane.b32.xlu0 %v2961_v6, %s3921_s16 }
 0xedb   : > { %v2963_v9 = vpop.eup %2962 }
 0xedc   : > { %v1248_v23 = vadd.f32 1.0, %v2963_v9 }
 0xede   : > { %1273 = vperm.xlu0 %2914, %v1270_v21   ;;  %2964 = vrcp.f32 %v1248_v23 }
 0xee8   : > { %v2965_v24 = vpop.eup %2964 }
 0xee9   : > { %v1252_v28 = vmul.f32 %v2965_v24, %v1188_v27 }
 0xf4c   : > { %v1255_v25 = vpop.permute.xlu0 %1254 }
 0xf4d   : > { %v1257_v26 = vmul.f32 %v2965_v24, %v1255_v25  ;;  %v1469_v25 = vld [vmem:[%s3937_s3] sm:$0xff] }
 0xf4f   : > { %1259 = vrot.lane.b32.xlu1 %v1257_v26, %s3919_s17  ;;  %v1470_v26 = vld [vmem:[%s3937_s3 + $0x8] sm:$0xff] }
 0xf50   : > { %v1477_v27 = vpack.c.bf16 %v1470_v26, %v1469_v25 }
 0xf52   : > { %2848 = vmatprep.subr.bf16.mxu0 %v1477_v27 }
 0xf5d   : > { %v1274_v35 = vpop.permute.xlu0 %1273 }
 0xfc1   : > { %v1260_v29 = vpop.permute.xlu1 %1259 }
 0xfc2   : > { %v1262_v30 = vadd.f32 %v1260_v29, %v1252_v28  ;;  %v1471_v28 = vld [vmem:[%s3937_s3 + $0x10] sm:$0xff]  ;;  %v1472_v29 = vld [vmem:[%s3937_s3 + $0x18] sm:$0xff] }
 0xfc4   : > { %2966 = vtanh.f32 %v1262_v30  ;;  %v1277_v54 = vmul.f32 %v1274_v35, %v1262_v30 }
 0xfce   : > { %v2967_v32 = vpop.eup %2966 }
 0xfcf   : > { %1265 = vrot.lane.b32.xlu1 %v2967_v32, %s3921_s16  ;;  %v1478_v32 = vpack.c.bf16 %v1472_v29, %v1471_v28 }
0x1041   : > { %v1266_v33 = vpop.permute.xlu1 %1265 }
0x1042   : > { %v1268_v34 = vmul.f32 %v2965_v24, %v1266_v33 }
0x1044   : > { %v3331_v36 = vmul.f32 %v1274_v35, %v1268_v34 }
0x1046   : > { %v1286_v37 = vpack.c.bf16 %v3331_v36, %v3331_v36 }
0x1048   : > { %1288 = vrot.lane.b32.xlu0 %v1286_v37, %s3919_s17 }
0x10ba   : > { %v1289_v38 = vpop.permute.xlu0 %1288 }
0x10bb   : > { %2837 = vmatmul.mubr.msk.bf16.vlgmr.msra.gmra.mrb[12].mxu0 %vm757_vm2, %v1289_v38 }
0x10bc   : > { %2849 = vmatpush3.bf16.msra.mxu0 %v1477_v27  ;;  %v2686_v27 = vld [vmem:[#allocation3] ss:$0 sm:$0xff] }
0x10bd   : > { %2850 = vmatprep.subr.bf16.mxu0 %v1478_v32 }
0x10c0   : > { %2851 = vmatpush3.bf16.msra.mxu0 %v1478_v32 }
0x10c1   : > { %2876 = vmatprep.subr.bf16.mxu0 %v3025_v5 }
0x118e   : > { %v1327_v40 = vpop.f32.mrb[12].mxu0 }
0x118f   : > { %v1333_v41 = vadd.f32 %v2672_v39, %v1327_v40  ;;  %v2838_v42 = vpop.f32.mrb[13].mxu0 }
0x1190   : > { %v1330_v43 = vpop.f32.mrb[14].mxu0 }
0x1191   : > { %2968 = vtanh.f32 %v1333_v41  ;;  %v2839_v44 = vpop.f32.mrb[15].mxu0  ;;  %v2674_v48 = vmul.f32 -1.442695, %v1333_v41 }
0x1193   : > { %2970 = vpow2.f32 %v2674_v48 }
0x119b   : > { %v2969_v45 = vpop.eup %2968 }
0x119c   : > { %1343 = vrot.lane.b32.xlu1 %v2969_v45, %s3921_s16 }
0x119d   : > { %v2971_v49 = vpop.eup %2970 }
0x119e   : > { %v1337_v50 = vadd.f32 1.0, %v2971_v49 }
0x11a0   : > { %1362 = vperm.xlu1 %2913, %v1359_v47   ;;  %2972 = vrcp.f32 %v1337_v50 }
0x11aa   : > { %v2973_v51 = vpop.eup %2972 }
0x11ab   : > { %v1341_v55 = vmul.f32 %v2973_v51, %v1277_v54 }
0x120e   : > { %v1344_v52 = vpop.permute.xlu1 %1343 }
0x120f   : > { %v1346_v53 = vmul.f32 %v2973_v51, %v1344_v52 }
0x1211   : > { %1348 = vrot.lane.b32.xlu0 %v1346_v53, %s3919_s17 }
0x121f   : > { %v1363_v62 = vpop.permute.xlu1 %1362 }
0x1283   : > { %v1349_v57 = vpop.permute.xlu0 %1348 }
0x1284   : > { %v1351_v58 = vadd.f32 %v1349_v57, %v1341_v55  ;;  %v2685_v57 = vld [vmem:[%s3897_s7] ss:$0 sm:$0xff] }
0x1286   : > { %2974 = vtanh.f32 %v1351_v58  ;;  %v1366_v22 = vmul.f32 %v1363_v62, %v1351_v58 }
0x1290   : > { %v2975_v59 = vpop.eup %2974 }
0x1291   : > { %1354 = vrot.lane.b32.xlu0 %v2975_v59, %s3921_s16 }
0x1303   : > { %v1355_v60 = vpop.permute.xlu0 %1354 }
0x1304   : > { %v1357_v61 = vmul.f32 %v2973_v51, %v1355_v60  ;;  %v2680_v51 = vld [vmem:[%s3940_s28] ss:$0 sm:$0xff]  ;;  %s3944_s28 = sld [smem:[#allocation7_spill]] }
0x1306   : > { %v1365_v63 = vmul.f32 %v1363_v62, %v1357_v61 }
0x1308   : > { %v1375_v0 = vpack.c.bf16 %v1365_v63, %v1365_v63 }
0x130a   : > { %1377 = vrot.lane.b32.xlu1 %v1375_v0, %s3919_s17 }
0x137c   : > { %v1378_v1 = vpop.permute.xlu1 %1377 }
0x137d   : > { %2845 = vmatmul.mubr.msk.bf16.vlgmr.msra.gmra.mrb[12].mxu1 %vm757_vm2, %v1378_v1 }
0x137e   : > { %2864 = vmatprep.mubr.msk.bf16.mxu1 %vm3026_vm1, %v3025_v5 }
0x1450   : > { %v1416_v3 = vpop.f32.mrb[12].mxu1 }
0x1451   : > { %v1422_v4 = vadd.f32 %v2676_v2, %v1416_v3  ;;  %v2846_v7 = vpop.f32.mrb[13].mxu1 }
0x1452   : > { %v1419_v8 = vpop.f32.mrb[14].mxu1 }
0x1453   : > { %2976 = vtanh.f32 %v1422_v4  ;;  %v2847_v10 = vpop.f32.mrb[15].mxu1  ;;  %v2678_v14 = vmul.f32 -1.442695, %v1422_v4 }
0x1455   : > { %2978 = vpow2.f32 %v2678_v14 }
0x145d   : > { %v2977_v12 = vpop.eup %2976 }
0x145e   : > { %1432 = vrot.lane.b32.xlu0 %v2977_v12, %s3921_s16  ;;  %s3943_s16 = sld [smem:[#allocation12_spill]] }
0x145f   : > { %v2979_v15 = vpop.eup %2978 }
0x1460   : > { %v1426_v16 = vadd.f32 1.0, %v2979_v15 }
0x1462   : > { %1451 = vperm.xlu0 %2914, %v1448_v13   ;;  %2980 = vrcp.f32 %v1426_v16 }
0x1466   : > { %835 = vrot.lane.b32.xlu0 %v3242_v31, %s3919_s17 }
0x146a   : > { %1012 = vrot.lane.b32.xlu0 %v3278_v20, %s3919_s17 }
0x146c   : > { %v2981_v17 = vpop.eup %2980 }
0x146d   : > { %v1430_v9 = vmul.f32 %v2981_v17, %v1366_v22 }
0x146e   : > { %1190 = vrot.lane.b32.xlu0 %v3313_v11, %s3919_s17 }
0x1472   : > { %1368 = vrot.lane.b32.xlu0 %v1365_v63, %s3919_s17 }
0x14d0   : > { %v1433_v18 = vpop.permute.xlu0 %1432 }
0x14d1   : > { %v1435_v19 = vmul.f32 %v2981_v17, %v1433_v18 }
0x14d3   : > { %1437 = vrot.lane.b32.xlu1 %v1435_v19, %s3919_s17 }
0x14e1   : > { %v1452_v31 = vpop.permute.xlu0 %1451 }
0x14e5   : > { %v836_v20 = vpop.permute.xlu0 %835 }
0x14e6   : > { %838 = vst.msk [vmem:[%s3167_s5] sm:$0xff] %vm757_vm2, %v836_v20 }
0x14e9   : > { %v1013_v6 = vpop.permute.xlu0 %1012 }
0x14ea   : > { %2659 = vst.msk [vmem:[%s3167_s5 + $0x10] sm:$0xff] %vm757_vm2, %v1013_v6 }
0x14ed   : > { %v1191_v11 = vpop.permute.xlu0 %1190 }
0x14ee   : > { %2667 = vst.msk [vmem:[%s3167_s5 + $0x20] sm:$0xff] %vm757_vm2, %v1191_v11 }
0x14f1   : > { %v1369_v21 = vpop.permute.xlu0 %1368  ;;  %v3404_v40 = vld [vmem:[%s3167_s5 + $0x10] sm:$0xff] }
0x14f2   : > { %2675 = vst.msk [vmem:[%s3167_s5 + $0x30] sm:$0xff] %vm757_vm2, %v1369_v21 }
0x14f5   : > { %v3413_v43 = vld [vmem:[%s3167_s5 + $0x20] sm:$0xff] }
0x14f9   : > { %v3424_v48 = vld [vmem:[%s3167_s5 + $0x30] sm:$0xff] }
0x1545   : > { %v1438_v23 = vpop.permute.xlu1 %1437 }
0x1546   : > { %v1440_v24 = vadd.f32 %v1438_v23, %v1430_v9 }
0x1548   : > { %2982 = vtanh.f32 %v1440_v24 }
0x1552   : > { %v2983_v30 = vpop.eup %2982 }
0x1553   : > { %1443 = vrot.lane.b32.xlu1 %v2983_v30, %s3938_s0  ;;  %s3941_s0 = sld [smem:[#allocation8_spill]] }
0x1557   : > { %923 = vrot.lane.b32.xlu1 %v3260_v56, %s3939_s2 }
0x1559   : > { %v3450_v26 = vld [vmem:[%s3941_s0] sm:$0xff] }
0x155a   : > { %vm1628_vm3 = vcmp.le.s32.totalorder %v3450_v26, 2  ;;  %vm1627_vm5 = vcmp.le.s32.totalorder %v3450_v26, 1  ;;  %vm1629_vm6 = vcmp.le.s32.totalorder %v3450_v26, 3  ;;  %vm1630_vm7 = vcmp.le.s32.totalorder %v3450_v26, 4 }
0x155b   : > { %1101 = vrot.lane.b32.xlu1 %v3296_v46, %s3939_s2  ;;  %v3393_v46 = vld [vmem:[%s3167_s5] sm:$0xff]  ;;  %vm1631_vm8 = vcmp.le.s32.totalorder %v3450_v26, 5  ;;  %vm1632_vm9 = vcmp.le.s32.totalorder %v3450_v26, 6  ;;  %vm1633_vm10 = vcmp.le.s32.totalorder %v3450_v26, 7 }
0x155f   : > { %1279 = vrot.lane.b32.xlu1 %v3331_v36, %s3939_s2 }
0x15c5   : > { %v1444_v33 = vpop.permute.xlu1 %1443 }
0x15c6   : > { %v1446_v34 = vmul.f32 %v2981_v17, %v1444_v33 }
0x15c8   : > { %v1454_v35 = vmul.f32 %v1452_v31, %v1446_v34 }
0x15c9   : > { %v924_v37 = vpop.permute.xlu1 %923 }
0x15ca   : > { %2655 = vst.msk [vmem:[%s3167_s5 + $0x8] sm:$0xff] %vm757_vm2, %v924_v37  ;;  %1456 = vrot.lane.b32.xlu1 %v1454_v35, %s3939_s2  ;;  %s3483_s2 = scalar_select %p736_p4, 1, 0 }
0x15cd   : > { %v1102_v38 = vpop.permute.xlu1 %1101 }
0x15ce   : > { %2663 = vst.msk [vmem:[%s3167_s5 + $0x18] sm:$0xff] %vm757_vm2, %v1102_v38 }
0x15d1   : > { %v1280_v56 = vpop.permute.xlu1 %1279  ;;  %v3396_v36 = vld [vmem:[%s3167_s5 + $0x8] sm:$0xff] }
0x15d2   : > { %2671 = vst.msk [vmem:[%s3167_s5 + $0x28] sm:$0xff] %vm757_vm2, %v1280_v56  ;;  %v1473_v39 = vpack.c.bf16 %v3396_v36, %v3393_v46 }
0x15d4   : > { %2852 = vmatprep.mubr.msk.bf16.mxu0 %vm757_vm2, %v1473_v39 }
0x15d5   : > { %v3407_v41 = vld [vmem:[%s3167_s5 + $0x18] sm:$0xff] }
0x15d6   : > { %v1474_v42 = vpack.c.bf16 %v3407_v41, %v3404_v40 }
0x15d8   : > { %2853 = vmatmul.mubr.msk.bf16.vlgmr.msra.gmra.mrb[16].mxu0 %vm757_vm2, %v1474_v42 }
0x15d9   : > { %v3416_v44 = vld [vmem:[%s3167_s5 + $0x28] sm:$0xff] }
0x15da   : > { %v1475_v45 = vpack.c.bf16 %v3416_v44, %v3413_v43 }
0x15dc   : > { %2856 = vmatprep.mubr.msk.bf16.mxu0 %vm757_vm2, %v1475_v45 }
0x163c   : > { %v1457_v47 = vpop.permute.xlu1 %1456 }
0x163d   : > { %2679 = vst.msk [vmem:[%s3167_s5 + $0x38] sm:$0xff] %vm757_vm2, %v1457_v47 }
0x1644   : > { %v3427_v49 = vld [vmem:[%s3167_s5 + $0x38] sm:$0xff] }
0x1645   : > { %v1476_v50 = vpack.c.bf16 %v3427_v49, %v3424_v48 }
0x1647   : > { %2857 = vmatmul.mubr.msk.bf16.gmra.mrb[20].mxu0 %vm757_vm2, %v1476_v50 }
0x1648   : > { %2880 = vmatprep.mubr.msk.bf16.mxu0 %vm3026_vm1, %v3025_v5 }
0x16ab   : > { %v2854_v52 = vpop.f32.mrb[16].mxu0 }
0x16ac   : > { %v1541_v53 = vadd.f32 %v2854_v52, %v2680_v51  ;;  %v1532_v54 = vpop.f32.mrb[17].mxu0 }
0x16ad   : > { %v2855_v55 = vpop.f32.mrb[18].mxu0 }
0x16ae   : > { %v1565_v58 = vmax.f32 %v1541_v53, 0.0  ;;  %v1544_v59 = vadd.f32 %v2855_v55, %v2680_v51  ;;  %v1535_v60 = vpop.f32.mrb[19].mxu0 }
0x16af   : > { %v1536_v61 = vadd.f32 %v2680_v51, %v1535_v60 }
0x16b0   : > { %v1580_v62 = vmul.f32 %v2685_v57, %v1565_v58  ;;  %v1566_v63 = vmax.f32 %v1544_v59, 0.0  ;;  %v3030_v59 = vmov -inf  }
0x16b1   : > { %v1564_v0 = vmax.f32 %v1536_v61, 0.0  ;;  %v1651_v60 = vsel %vm1650_vm4, -1e+30, %v3030_v59 }
0x16b2   : > { %v1592_v1 = vsel %vm757_vm2, %v1580_v62, 0.0  ;;  %v1581_v4 = vmul.f32 %v2685_v57, %v1566_v63 }
0x16b3   : > { %1593 = vadd.xlane.f32.xlu1 %v1592_v1  ;;  %v1579_v2 = vmul.f32 %v2685_v57, %v1564_v0 }
0x16b4   : > { %v1595_v7 = vsel %vm757_vm2, %v1581_v4, 0.0 }
0x16b5   : > { %v1589_v3 = vsel %vm757_vm2, %v1579_v2, 0.0 }
0x16b6   : > { %1590 = vadd.xlane.f32.xlu0 %v1589_v3 }
0x16ba   : > { %1596 = vadd.xlane.f32.xlu0 %v1595_v7 }
0x171a   : > { %v2858_v8 = vpop.f32.mrb[20].mxu0 }
0x171b   : > { %v1557_v10 = vadd.f32 %v2858_v8, %v2680_v51  ;;  %v1548_v12 = vpop.f32.mrb[21].mxu0 }
0x171c   : > { %v1549_v13 = vadd.f32 %v2680_v51, %v1548_v12  ;;  %v2859_v14 = vpop.f32.mrb[22].mxu0 }
0x171d   : > { %v1560_v15 = vadd.f32 %v2859_v14, %v2680_v51  ;;  %v1551_v16 = vpop.f32.mrb[23].mxu0  ;;  %v1569_v17 = vmax.f32 %v1557_v10, 0.0  ;;  %v3031_v14 = vmov 8  }
0x171e   : > { %v1567_v18 = vmax.f32 %v1549_v13, 0.0  ;;  %v1552_v19 = vadd.f32 %v2680_v51, %v1551_v16 }
0x171f   : > { %v1570_v31 = vmax.f32 %v1560_v15, 0.0  ;;  %v1584_v22 = vmul.f32 %v2685_v57, %v1569_v17 }
0x1720   : > { %v1568_v20 = vmax.f32 %v1552_v19, 0.0  ;;  %v1582_v6 = vmul.f32 %v2685_v57, %v1567_v18 }
0x1721   : > { %v1585_v23 = vmul.f32 %v2685_v57, %v1570_v31  ;;  %v1604_v24 = vsel %vm757_vm2, %v1584_v22, 0.0 }
0x1722   : > { %v1598_v11 = vsel %vm757_vm2, %v1582_v6, 0.0  ;;  %v1583_v21 = vmul.f32 %v2685_v57, %v1568_v20 }
0x1723   : > { %1599 = vadd.xlane.f32.xlu0 %v1598_v11  ;;  %v1607_v25 = vsel %vm757_vm2, %v1585_v23, 0.0 }
0x1724   : > { %v1601_v9 = vsel %vm757_vm2, %v1583_v21, 0.0 }
0x1725   : > { %1602 = vadd.xlane.f32.xlu1 %v1601_v9  ;;  %v1706_v9 = vstv %s3483_s2  ;;  %s3942_s2 = sld [smem:[#allocation6_spill]] }
0x1727   : > { %1605 = vadd.xlane.f32.xlu0 %v1604_v24 }
0x1729   : > { %1608 = vadd.xlane.f32.xlu1 %v1607_v25 }
0x1740   : > { %v1594_v28 = vpop.xlane.xlu1 %1593 }
0x1741   : > { %v1619_v29 = vadd.f32 %v2686_v27, %v1594_v28 }
0x1743   : > { %v1636_v30 = vsel %vm1628_vm3, -1e+30, %v1619_v29  ;;  %v1591_v32 = vpop.xlane.xlu0 %1590 }
0x1744   : > { %1711 = vst.msk [vmem:[%s3172_s25 + $0x10] sm:$0xff] %vm1650_vm4, %v1636_v30  ;;  %v1618_v33 = vadd.f32 %v2686_v27, %v1591_v32  ;;  %v1653_v1 = vsel %vm1650_vm4, %v1636_v30, -inf }
0x1746   : > { %v1635_v34 = vsel %vm1627_vm5, -1e+30, %v1618_v33 }
0x1747   : > { %1710 = vst.msk [vmem:[%s3172_s25 + $0x8] sm:$0xff] %vm1650_vm4, %v1635_v34  ;;  %v1597_v35 = vpop.xlane.xlu0 %1596  ;;  %v1652_v58 = vsel %vm1650_vm4, %v1635_v34, -inf }
0x1748   : > { %v1620_v37 = vadd.f32 %v2686_v27, %v1597_v35 }
0x174a   : > { %v1637_v38 = vsel %vm1629_vm6, -1e+30, %v1620_v37 }
0x174b   : > { %1712 = vst.msk [vmem:[%s3172_s25 + $0x18] sm:$0xff] %vm1650_vm4, %v1637_v38  ;;  %v1654_v2 = vsel %vm1650_vm4, %v1637_v38, -inf }
0x17b0   : > { %v1600_v56 = vpop.xlane.xlu0 %1599 }
0x17b1   : > { %v1621_v39 = vadd.f32 %v2686_v27, %v1600_v56 }
0x17b2   : > { %v1603_v42 = vpop.xlane.xlu1 %1602 }
0x17b3   : > { %v1638_v45 = vsel %vm1630_vm7, -1e+30, %v1621_v39  ;;  %v1622_v47 = vadd.f32 %v2686_v27, %v1603_v42 }
0x17b4   : > { %1713 = vst.msk [vmem:[%s3172_s25 + $0x20] sm:$0xff] %vm1650_vm4, %v1638_v45  ;;  %v1606_v50 = vpop.xlane.xlu0 %1605  ;;  %v1655_v61 = vsel %vm1650_vm4, %v1638_v45, -inf }
0x17b5   : > { %v1639_v51 = vsel %vm1631_vm8, -1e+30, %v1622_v47  ;;  %v1623_v52 = vadd.f32 %v2686_v27, %v1606_v50  ;;  %v1656_v4 = vmax.f32 %v1651_v60, %v1655_v61 }
0x17b6   : > { %v1657_v53 = vsel %vm1650_vm4, %v1639_v51, -inf  ;;  %1714 = vst.msk [vmem:[%s3172_s25 + $0x28] sm:$0xff] %vm1650_vm4, %v1639_v51  ;;  %v1609_v54 = vpop.xlane.xlu1 %1608 }
0x17b7   : > { %v1640_v55 = vsel %vm1632_vm9, -1e+30, %v1623_v52  ;;  %v1624_v57 = vadd.f32 %v2686_v27, %v1609_v54  ;;  %v1658_v63 = vmax.f32 %v1652_v58, %v1657_v53 }
0x17b8   : > { %v1659_v62 = vsel %vm1650_vm4, %v1640_v55, -inf  ;;  %1715 = vst.msk [vmem:[%s3172_s25 + $0x30] sm:$0xff] %vm1650_vm4, %v1640_v55 }
0x17b9   : > { %v1641_v0 = vsel %vm1633_vm10, -1e+30, %v1624_v57  ;;  %v1660_v7 = vmax.f32 %v1653_v1, %v1659_v62  ;;  %v1663_v10 = vmax.f32 %v1656_v4, %v1658_v63  ;;  %v2275_v62 = vld [vmem:[#allocation2] sm:$0xff]  ;;  %v2277_v63 = vld [vmem:[#allocation2 + $0x10] sm:$0xff] }
0x17ba   : > { %v1661_v3 = vsel %vm1650_vm4, %v1641_v0, -inf  ;;  %1716 = vst.msk [vmem:[%s3172_s25 + $0x38] sm:$0xff] %vm1650_vm4, %v1641_v0 }
0x17bb   : > { %v1662_v8 = vmax.f32 %v1654_v2, %v1661_v3 }
0x17bd   : > { %v1664_v12 = vmax.f32 %v1660_v7, %v1662_v8 }
0x17bf   : > { %v1665_v13 = vmax.f32 %v1663_v10, %v1664_v12  ;;  %v2276_v12 = vld [vmem:[#allocation2 + $0x8] sm:$0xff] }
0x17c1   : > { %vm2687_vm11 = vcmp.eq.f32.partialorder %v1665_v13, -1e+30  ;;  %vm1667_vm12 = vcmp.eq.f32.partialorder %v1635_v34, %v1665_v13  ;;  %vm1668_vm13 = vcmp.eq.f32.partialorder %v1636_v30, %v1665_v13  ;;  %vm1669_vm14 = vcmp.eq.f32.partialorder %v1637_v38, %v1665_v13 }
0x17c2   : > { %vm1670_vm15 = vcmp.eq.f32.partialorder %v1638_v45, %v1665_v13  ;;  %vm1671_vm0 = vcmp.eq.f32.partialorder %v1639_v51, %v1665_v13  ;;  %vm1672_vm3 = vcmp.eq.f32.partialorder %v1640_v55, %v1665_v13  ;;  %vm1673_vm5 = vcmp.eq.f32.partialorder %v1641_v0, %v1665_v13  ;;  %v2279_v13 = vld [vmem:[#allocation2 + $0x20] sm:$0xff] }
0x17c3   : > { %v1674_v15 = vsel %vm2687_vm11, 0, %v3031_v14  ;;  %v1675_v16 = vsel %vm1667_vm12, 1, %v3031_v14  ;;  %v1676_v17 = vsel %vm1668_vm13, 2, %v3031_v14  ;;  %v1677_v18 = vsel %vm1669_vm14, 3, %v3031_v14 }
0x17c4   : > { %v1678_v19 = vsel %vm1670_vm15, 4, %v3031_v14  ;;  %v1679_v31 = vsel %vm1671_vm0, 5, %v3031_v14  ;;  %v1680_v20 = vsel %vm1672_vm3, 6, %v3031_v14  ;;  %v1681_v6 = vsel %vm1673_vm5, 7, %v3031_v14 }
0x17c5   : > { %v1682_v11 = vsel %vm1650_vm4, %v1674_v15, 2147483647  ;;  %v1683_v21 = vsel %vm1650_vm4, %v1675_v16, 2147483647  ;;  %v1684_v22 = vsel %vm1650_vm4, %v1676_v17, 2147483647 }
0x17c6   : > { %v1685_v23 = vsel %vm1650_vm4, %v1677_v18, 2147483647  ;;  %v1686_v24 = vsel %vm1650_vm4, %v1678_v19, 2147483647  ;;  %v1689_v25 = vsel %vm1650_vm4, %v1679_v31, 2147483647 }
0x17c7   : > { %vm1687_vm6 = vcmp.lt.s32.totalorder %v1682_v11, %v1686_v24  ;;  %vm1690_vm7 = vcmp.lt.s32.totalorder %v1683_v21, %v1689_v25  ;;  %v1692_v27 = vsel %vm1650_vm4, %v1680_v20, 2147483647  ;;  %v1695_v28 = vsel %vm1650_vm4, %v1681_v6, 2147483647  ;;  %v2278_v6 = vld [vmem:[#allocation2 + $0x18] sm:$0xff] }
0x17c8   : > { %v1688_v29 = vsel %vm1687_vm6, %v1682_v11, %v1686_v24  ;;  %v1691_v30 = vsel %vm1690_vm7, %v1683_v21, %v1689_v25  ;;  %vm1693_vm8 = vcmp.lt.s32.totalorder %v1684_v22, %v1692_v27  ;;  %vm1696_vm9 = vcmp.lt.s32.totalorder %v1685_v23, %v1695_v28  ;;  %v2281_v11 = vld [vmem:[#allocation2 + $0x30] sm:$0xff] }
0x17c9   : > { %v1694_v32 = vsel %vm1693_vm8, %v1684_v22, %v1692_v27  ;;  %v1697_v33 = vsel %vm1696_vm9, %v1685_v23, %v1695_v28  ;;  %vm1698_vm10 = vcmp.lt.s32.totalorder %v1688_v29, %v1691_v30  ;;  %v2688_v34 = vadd.s32 4294967295, %v3450_v26 }
0x17ca   : > { %v1699_v35 = vsel %vm1698_vm10, %v1688_v29, %v1691_v30  ;;  %vm1700_vm11 = vcmp.lt.s32.totalorder %v1694_v32, %v1697_v33  ;;  %vm1707_vm12 = vcmp.eq.s32.totalorder %v1706_v9, 1  ;;  %v2280_v29 = vld [vmem:[#allocation2 + $0x28] sm:$0xff]  ;;  %v2282_v30 = vld [vmem:[#allocation2 + $0x38] sm:$0xff] }
0x17cb   : > { %v1701_v37 = vsel %vm1700_vm11, %v1694_v32, %v1697_v33 }
0x17cc   : > { %vm1702_vm13 = vcmp.lt.s32.totalorder %v1699_v35, %v1701_v37 }
0x17cd   : > { %v1703_v38 = vsel %vm1702_vm13, %v1699_v35, %v1701_v37 }
0x17ce   : > { %v3495_v56 = vsel %vm1707_vm12, %v2688_v34, %v1703_v38 }
0x17cf   : > { %vm1717_vm14 = vcmp.eq.s32.totalorder %v3495_v56, 0  ;;  %vm1718_vm15 = vcmp.eq.s32.totalorder %v3495_v56, 1  ;;  %vm1719_vm0 = vcmp.eq.s32.totalorder %v3495_v56, 2  ;;  %vm1720_vm3 = vcmp.eq.s32.totalorder %v3495_v56, 3 }
0x17d0   : > { %vm1721_vm5 = vcmp.eq.s32.totalorder %v3495_v56, 4  ;;  %vm1722_vm6 = vcmp.eq.s32.totalorder %v3495_v56, 5  ;;  %vm1723_vm7 = vcmp.eq.s32.totalorder %v3495_v56, 6  ;;  %vm1724_vm8 = vcmp.eq.s32.totalorder %v3495_v56, 7 }
0x17d1   : > { %v2689_v26 = vsel %vm1717_vm14, 1.0, %v3025_v5  ;;  %v2690_v39 = vsel %vm1718_vm15, 1.0, %v3025_v5  ;;  %v2691_v42 = vsel %vm1719_vm0, 1.0, %v3025_v5  ;;  %v2692_v45 = vsel %vm1720_vm3, 1.0, %v3025_v5 }
0x17d2   : > { %v2693_v47 = vsel %vm1721_vm5, 1.0, %v3025_v5  ;;  %v2694_v50 = vsel %vm1722_vm6, 1.0, %v3025_v5  ;;  %v2695_v51 = vsel %vm1723_vm7, 1.0, %v3025_v5  ;;  %v2696_v52 = vsel %vm1724_vm8, 1.0, %v3025_v5  ;;  %1741 = vst.msk [vmem:[%s3177_s27] sm:$0xff] %vm1650_vm4, %v2689_v26  ;;  %1742 = vst.msk [vmem:[%s3177_s27 + $0x8] sm:$0xff] %vm1650_vm4, %v2690_v39 }
0x17d3   : > { %1743 = vst.msk [vmem:[%s3177_s27 + $0x10] sm:$0xff] %vm1650_vm4, %v2691_v42  ;;  %1744 = vst.msk [vmem:[%s3177_s27 + $0x18] sm:$0xff] %vm1650_vm4, %v2692_v45  ;;  %v2697_v53 = vadd.s32 4294967295, %v3495_v56  ;;  %vm2283_vm9 = vcmp.gt.s32.totalorder %v3495_v56, 0  ;;  %vm2349_vm10 = vcmp.le.s32.totalorder %v3495_v56, 0  ;;  %vm2285_vm11 = vcmp.gt.s32.totalorder %v3495_v56, 2 }
0x17d4   : > { %1745 = vst.msk [vmem:[%s3177_s27 + $0x20] sm:$0xff] %vm1650_vm4, %v2693_v47  ;;  %1746 = vst.msk [vmem:[%s3177_s27 + $0x28] sm:$0xff] %vm1650_vm4, %v2694_v50  ;;  %v2716_v54 = vsel %vm2283_vm9, 1.0, %v3025_v5  ;;  %v2724_v55 = vsel %vm2349_vm10, 1.0, %v3025_v5  ;;  %v2718_v57 = vsel %vm2285_vm11, 1.0, %v3025_v5  ;;  %vm2351_vm12 = vcmp.le.s32.totalorder %v3495_v56, 2 }
0x17d5   : > { %1747 = vst.msk [vmem:[%s3177_s27 + $0x30] sm:$0xff] %vm1650_vm4, %v2695_v51  ;;  %1748 = vst.msk [vmem:[%s3177_s27 + $0x38] sm:$0xff] %vm1650_vm4, %v2696_v52  ;;  %vm1752_vm13 = vcmp.eq.s32.totalorder %v2697_v53, 2  ;;  %vm1750_vm14 = vcmp.eq.s32.totalorder %v2697_v53, 0  ;;  %vm1751_vm15 = vcmp.eq.s32.totalorder %v2697_v53, 1  ;;  %vm1753_vm0 = vcmp.eq.s32.totalorder %v2697_v53, 3 }
0x17d6   : > { %v2700_v58 = vsel %vm1752_vm13, 1.0, %v3025_v5  ;;  %v2698_v59 = vsel %vm1750_vm14, 1.0, %v3025_v5  ;;  %v2699_v60 = vsel %vm1751_vm15, 1.0, %v3025_v5  ;;  %v2701_v61 = vsel %vm1753_vm0, 1.0, %v3025_v5  ;;  %v1838_v47 = vld [vmem:[%s3899_s9 + $0x8] sm:$0xff]  ;;  %v1839_v51 = vld [vmem:[%s3899_s9 + $0x10] sm:$0xff] }
0x17d7   : > { %1786 = vperm.xlu1 %2913, %v2700_v58   ;;  %v2915_v0 = vpack.i.bf16 %v2699_v60, %v2698_v59  ;;  %vm1754_vm3 = vcmp.eq.s32.totalorder %v2697_v53, 4  ;;  %vm1755_vm5 = vcmp.eq.s32.totalorder %v2697_v53, 5  ;;  %vm1756_vm6 = vcmp.eq.s32.totalorder %v2697_v53, 6  ;;  %v1840_v52 = vld [vmem:[%s3899_s9 + $0x18] sm:$0xff] }
0x17d8   : > { %v2702_v1 = vsel %vm1754_vm3, 1.0, %v3025_v5  ;;  %v2703_v2 = vsel %vm1755_vm5, 1.0, %v3025_v5  ;;  %v2704_v3 = vsel %vm1756_vm6, 1.0, %v3025_v5  ;;  %vm1757_vm7 = vcmp.eq.s32.totalorder %v2697_v53, 7 }
0x17d9   : > { %2916 = vperm.xlu0 %2914, %v2915_v0   ;;  %v2705_v4 = vsel %vm1757_vm7, 1.0, %v3025_v5  ;;  %v3545_v7 = vmul.f32 %v2716_v54, %v2275_v62  ;;  %v2373_v8 = vmul.f32 %v2724_v55, %v2275_v62  ;;  %v3547_v10 = vmul.f32 %v2718_v57, %v2277_v63 }
0x17da   : > { %v2726_v14 = vsel %vm2351_vm12, 1.0, %v3025_v5  ;;  %vm2284_vm8 = vcmp.gt.s32.totalorder %v3495_v56, 1  ;;  %vm2350_vm9 = vcmp.le.s32.totalorder %v3495_v56, 1  ;;  %vm2287_vm10 = vcmp.gt.s32.totalorder %v3495_v56, 4 }
0x17db   : > { %1791 = vperm.xlu1 %2913, %v2701_v61   ;;  %2381 = vst.msk [vmem:[#allocation2] sm:$0xff] %vm1650_vm4, %v2373_v8  ;;  %2389 = vst.msk [vmem:[%s3182_s29] sm:$0xff] %vm1650_vm4, %v2373_v8  ;;  %v2375_v15 = vmul.f32 %v2726_v14, %v2277_v63  ;;  %v2717_v16 = vsel %vm2284_vm8, 1.0, %v3025_v5  ;;  %v2725_v17 = vsel %vm2350_vm9, 1.0, %v3025_v5  ;;  %v2720_v18 = vsel %vm2287_vm10, 1.0, %v3025_v5 }
0x17dc   : > { %v3561_v19 = vmul.f32 %v2717_v16, %v2276_v12  ;;  %v2374_v31 = vmul.f32 %v2725_v17, %v2276_v12  ;;  %v3563_v20 = vmul.f32 %v2720_v18, %v2279_v13  ;;  %vm2353_vm11 = vcmp.le.s32.totalorder %v3495_v56, 4 }
0x17dd   : > { %1796 = vperm.xlu0 %2914, %v2702_v1   ;;  %2383 = vst.msk [vmem:[#allocation2 + $0x10] sm:$0xff] %vm1650_vm4, %v2375_v15  ;;  %2391 = vst.msk [vmem:[%s3182_s29 + $0x10] sm:$0xff] %vm1650_vm4, %v2375_v15  ;;  %v2728_v21 = vsel %vm2353_vm11, 1.0, %v3025_v5  ;;  %vm2286_vm12 = vcmp.gt.s32.totalorder %v3495_v56, 3  ;;  %vm2352_vm13 = vcmp.le.s32.totalorder %v3495_v56, 3  ;;  %vm2289_vm14 = vcmp.gt.s32.totalorder %v3495_v56, 6 }
0x17de   : > { %2382 = vst.msk [vmem:[#allocation2 + $0x8] sm:$0xff] %vm1650_vm4, %v2374_v31  ;;  %2390 = vst.msk [vmem:[%s3182_s29 + $0x8] sm:$0xff] %vm1650_vm4, %v2374_v31  ;;  %v2377_v22 = vmul.f32 %v2728_v21, %v2279_v13  ;;  %v2719_v9 = vsel %vm2286_vm12, 1.0, %v3025_v5  ;;  %v2727_v23 = vsel %vm2352_vm13, 1.0, %v3025_v5  ;;  %v2722_v24 = vsel %vm2289_vm14, 1.0, %v3025_v5 }
0x17df   : > { %1801 = vperm.xlu1 %2913, %v2703_v2   ;;  %v3579_v25 = vmul.f32 %v2719_v9, %v2278_v6  ;;  %v2376_v27 = vmul.f32 %v2727_v23, %v2278_v6  ;;  %v3581_v28 = vmul.f32 %v2722_v24, %v2281_v11  ;;  %vm2355_vm15 = vcmp.le.s32.totalorder %v3495_v56, 6 }
0x17e0   : > { %2385 = vst.msk [vmem:[#allocation2 + $0x20] sm:$0xff] %vm1650_vm4, %v2377_v22  ;;  %2393 = vst.msk [vmem:[%s3182_s29 + $0x20] sm:$0xff] %vm1650_vm4, %v2377_v22  ;;  %v2730_v32 = vsel %vm2355_vm15, 1.0, %v3025_v5  ;;  %vm2288_vm0 = vcmp.gt.s32.totalorder %v3495_v56, 5  ;;  %vm2354_vm3 = vcmp.le.s32.totalorder %v3495_v56, 5  ;;  %vm2290_vm5 = vcmp.gt.s32.totalorder %v3495_v56, 7 }
0x17e1   : > { %1806 = vperm.xlu0 %2914, %v2704_v3   ;;  %2384 = vst.msk [vmem:[#allocation2 + $0x18] sm:$0xff] %vm1650_vm4, %v2376_v27  ;;  %2392 = vst.msk [vmem:[%s3182_s29 + $0x18] sm:$0xff] %vm1650_vm4, %v2376_v27  ;;  %v2379_v33 = vmul.f32 %v2730_v32, %v2281_v11  ;;  %v2721_v34 = vsel %vm2288_vm0, 1.0, %v3025_v5  ;;  %v2729_v35 = vsel %vm2354_vm3, 1.0, %v3025_v5  ;;  %v2723_v37 = vsel %vm2290_vm5, 1.0, %v3025_v5  ;;  %v1895_v22 = vld [vmem:[%s3901_s11] sm:$0xff] }
0x17e2   : > { %v3597_v38 = vmul.f32 %v2721_v34, %v2280_v29  ;;  %v2378_v26 = vmul.f32 %v2729_v35, %v2280_v29  ;;  %v3599_v39 = vmul.f32 %v2723_v37, %v2282_v30  ;;  %vm2356_vm6 = vcmp.le.s32.totalorder %v3495_v56, 7  ;;  %v1837_v56 = vld [vmem:[%s3899_s9] sm:$0xff]  ;;  %v1898_v27 = vld [vmem:[%s3901_s11 + $0x18] sm:$0xff]  ;;  %v1955_v32 = vld [vmem:[%s3903_s13 + $0x8] sm:$0xff] }
0x17e3   : > { %1811 = vperm.xlu1 %2913, %v2705_v4   ;;  %2387 = vst.msk [vmem:[#allocation2 + $0x30] sm:$0xff] %vm1650_vm4, %v2379_v33  ;;  %2395 = vst.msk [vmem:[%s3182_s29 + $0x30] sm:$0xff] %vm1650_vm4, %v2379_v33  ;;  %v2731_v42 = vsel %vm2356_vm6, 1.0, %v3025_v5  ;;  %v1842_v50 = vpack.c.bf16 %v1838_v47, %v1837_v56  ;;  %v1843_v53 = vpack.c.bf16 %v1840_v52, %v1839_v51  ;;  %v3032_v54 = vmov -1e+30   ;;  %v1956_v33 = vld [vmem:[%s3903_s13 + $0x10] sm:$0xff] }
0x17e4   : > { %2386 = vst.msk [vmem:[#allocation2 + $0x28] sm:$0xff] %vm1650_vm4, %v2378_v26  ;;  %2394 = vst.msk [vmem:[%s3182_s29 + $0x28] sm:$0xff] %vm1650_vm4, %v2378_v26  ;;  %v2380_v45 = vmul.f32 %v2731_v42, %v2282_v30  ;;  %v1954_v30 = vld [vmem:[%s3903_s13] sm:$0xff]  ;;  %v1957_v35 = vld [vmem:[%s3903_s13 + $0x18] sm:$0xff]  ;;  %vm2122_vm7 = vcmask 48128  }
0x17e5   : > { %2861 = vmatpush3.bf16.msra.mxu1 %v1842_v50  ;;  %1709 = vst.msk [vmem:[%s3172_s25] sm:$0xff] %vm1650_vm4, %v3032_v54  ;;  %v1959_v34 = vpack.c.bf16 %v1955_v32, %v1954_v30  ;;  %v1960_v37 = vpack.c.bf16 %v1957_v35, %v1956_v33  ;;  %v2706_v26 = vld [vmem:[%s3900_s10] ss:$0 sm:$0xff] }
0x17e6   : > { %2388 = vst.msk [vmem:[#allocation2 + $0x38] sm:$0xff] %vm1650_vm4, %v2380_v45  ;;  %2396 = vst.msk [vmem:[%s3182_s29 + $0x38] sm:$0xff] %vm1650_vm4, %v2380_v45  ;;  %2862 = vmatprep.subr.bf16.mxu1 %v3025_v5 }
0x17e7   : > { %2877 = vmatpush3.bf16.msra.mxu0 %v1959_v34  ;;  %v2711_v34 = vld [vmem:[%s3943_s16] ss:$0 sm:$0xff] }
0x17e8   : > { %2878 = vmatprep.subr.bf16.mxu0 %v3025_v5 }
0x17e9   : > { %2863 = vmatpush3.bf16.msra.mxu1 %v1843_v53  ;;  %v2028_v53 = vld [vmem:[%s3904_s14] sm:$0xff] }
0x17ea   : > { %2868 = vmatprep.subr.bf16.mxu1 %v3025_v5 }
0x17eb   : > { %2879 = vmatpush3.bf16.msra.mxu0 %v1960_v37 }
0x1856   : > { %v1787_v55 = vpop.permute.xlu1 %1786 }
0x1857   : > { %v1816_v61 = vmul.f32 %v1787_v55, %v3404_v40  ;;  %v2708_v55 = vld [vmem:[%s3902_s12] ss:$0 sm:$0xff] }
0x1858   : > { %v2917_v57 = vpop.permute.xlu0 %2916 }
0x1859   : > { %v2919_v58 = vunpack.i.h.bf16 %v2917_v57  ;;  %v2918_v59 = vunpack.i.l.bf16 %v2917_v57  ;;  %v1825_v12 = vsel %vm757_vm2, %v1816_v61, 0.0 }
0x185a   : > { %v1792_v60 = vpop.permute.xlu1 %1791 }
0x185b   : > { %v1815_v62 = vmul.f32 %v2919_v58, %v3396_v36  ;;  %v1814_v63 = vmul.f32 %v2918_v59, %v3393_v46  ;;  %v1817_v3 = vmul.f32 %v1792_v60, %v3407_v41 }
0x185c   : > { %v1797_v0 = vpop.permute.xlu0 %1796 }
0x185d   : > { %v1823_v1 = vsel %vm757_vm2, %v1815_v62, 0.0  ;;  %v1822_v2 = vsel %vm757_vm2, %v1814_v63, 0.0  ;;  %v1818_v13 = vmul.f32 %v1797_v0, %v3413_v43  ;;  %v1827_v40 = vsel %vm757_vm2, %v1817_v3, 0.0  ;;  %v2030_v63 = vld [vmem:[%s3904_s14 + $0x10] sm:$0xff]  ;;  %v2031_v0 = vld [vmem:[%s3904_s14 + $0x18] sm:$0xff]  ;;  %v2005_v3 = vld [vmem:[%s3942_s2 + $0x8] sm:$0xff] }
0x185e   : > { %v1824_v4 = vadd.f32 %v1823_v1, %v1822_v2  ;;  %v1802_v8 = vpop.permute.xlu1 %1801  ;;  %v2037_v1 = vpack.c.bf16 %v2031_v0, %v2030_v63  ;;  %v2004_v2 = vld [vmem:[%s3942_s2] sm:$0xff] }
0x185f   : > { %v1819_v36 = vmul.f32 %v1802_v8, %v3416_v44  ;;  %v1829_v17 = vsel %vm757_vm2, %v1818_v13, 0.0  ;;  %v1896_v44 = vld [vmem:[%s3901_s11 + $0x8] sm:$0xff]  ;;  %v2007_v8 = vld [vmem:[%s3942_s2 + $0x18] sm:$0xff] }
0x1860   : > { %v1826_v14 = vadd.f32 %v1825_v12, %v1824_v4  ;;  %v1807_v15 = vpop.permute.xlu0 %1806  ;;  %v1900_v23 = vpack.c.bf16 %v1896_v44, %v1895_v22  ;;  %v2006_v4 = vld [vmem:[%s3942_s2 + $0x10] sm:$0xff]  ;;  %v2008_v12 = vld [vmem:[%s3942_s2 + $0x20] sm:$0xff]  ;;  %v2009_v13 = vld [vmem:[%s3942_s2 + $0x28] sm:$0xff] }
0x1861   : > { %v1820_v18 = vmul.f32 %v1807_v15, %v3424_v48  ;;  %v1831_v41 = vsel %vm757_vm2, %v1819_v36, 0.0  ;;  %v2011_v44 = vld [vmem:[%s3942_s2 + $0x38] sm:$0xff] }
0x1862   : > { %v1828_v46 = vadd.f32 %v1827_v40, %v1826_v14  ;;  %v1812_v16 = vpop.permute.xlu1 %1811 }
0x1863   : > { %v1821_v6 = vmul.f32 %v1812_v16, %v3427_v49  ;;  %v1833_v43 = vsel %vm757_vm2, %v1820_v18, 0.0  ;;  %v1897_v49 = vld [vmem:[%s3901_s11 + $0x10] sm:$0xff] }
0x1864   : > { %v1830_v31 = vadd.f32 %v1829_v17, %v1828_v46  ;;  %v1901_v29 = vpack.c.bf16 %v1898_v27, %v1897_v49 }
0x1865   : > { %v1835_v9 = vsel %vm757_vm2, %v1821_v6, 0.0 }
0x1866   : > { %v1832_v11 = vadd.f32 %v1831_v41, %v1830_v31  ;;  %v2010_v41 = vld [vmem:[%s3942_s2 + $0x30] sm:$0xff] }
0x1868   : > { %v1834_v21 = vadd.f32 %v1833_v43, %v1832_v11 }
0x186a   : > { %v1836_v48 = vadd.f32 %v1835_v9, %v1834_v21 }
0x186c   : > { %v1841_v24 = vpack.c.bf16 %v1836_v48, %v1836_v48 }
0x186e   : > { %2865 = vmatmul.mubr.msk.bf16.vlgmr.msra.gmra.mrb[16].mxu1 %vm757_vm2, %v1841_v24 }
0x186f   : > { %2869 = vmatpush3.bf16.msra.mxu1 %v1900_v23  ;;  %2872 = vmatprep.mubr.msk.bf16.mxu1 %vm3026_vm1, %v3025_v5  ;;  %vm1952_vm1 = vcmask 523264  }
0x1870   : > { %2870 = vmatprep.subr.bf16.mxu1 %v3025_v5  ;;  %v2029_v5 = vld [vmem:[%s3904_s14 + $0x8] sm:$0xff] }
0x1871   : > { %v2036_v54 = vpack.c.bf16 %v2029_v5, %v2028_v53 }
0x1873   : > { %2871 = vmatpush3.bf16.msra.mxu1 %v1901_v29 }
0x1874   : > { %2884 = vmatprep.subr.bf16.mxu1 %v2036_v54 }
0x1941   : > { %v1888_v42 = vpop.f32.mrb[16].mxu1 }
0x1942   : > { %v1889_v45 = vadd.f32 %v2706_v26, %v1888_v42  ;;  %v2866_v56 = vpop.f32.mrb[17].mxu1 }
0x1943   : > { %v1891_v47 = vpop.f32.mrb[18].mxu1 }
0x1944   : > { %v1894_v50 = vmax.f32 %v1889_v45, 0.0  ;;  %v2867_v51 = vpop.f32.mrb[19].mxu1 }
0x1946   : > { %v1899_v52 = vpack.c.bf16 %v1894_v50, %v1894_v50 }
0x1948   : > { %2873 = vmatmul.mubr.msk.bf16.vlgmr.msra.gmra.mrb[20].mxu1 %vm757_vm2, %v1899_v52 }
0x1949   : > { %2885 = vmatpush3.bf16.msra.mxu1 %v2036_v54 }
0x194a   : > { %2886 = vmatprep.subr.bf16.mxu1 %v2037_v1 }
0x194d   : > { %2887 = vmatpush3.bf16.msra.mxu1 %v2037_v1 }
0x1a1b   : > { %v1946_v57 = vpop.f32.mrb[20].mxu1 }
0x1a1c   : > { %v1947_v58 = vadd.f32 %v2708_v55, %v1946_v57  ;;  %v2874_v59 = vpop.f32.mrb[21].mxu1 }
0x1a1d   : > { %v1949_v60 = vpop.f32.mrb[22].mxu1 }
0x1a1e   : > { %1953 = vst.msk [vmem:[%s3187_s23] sm:$0xff] %vm1952_vm1, %v1947_v58  ;;  %v1958_v61 = vpack.c.bf16 %v1947_v58, %v1947_v58  ;;  %v2875_v62 = vpop.f32.mrb[23].mxu1 }
0x1a20   : > { %2881 = vmatmul.mubr.msk.bf16.vlgmr.msra.gmra.mrb[24].mxu0 %vm757_vm2, %v1958_v61 }
0x1af3   : > { %v1998_v14 = vpop.f32.mrb[24].mxu0 }
0x1af4   : > { %v2882_v15 = vpop.f32.mrb[25].mxu0  ;;  %v2012_v40 = vadd.f32 %v2004_v2, %v1998_v14  ;;  %v2013_v36 = vadd.f32 %v2005_v3, %v1998_v14  ;;  %v2014_v46 = vadd.f32 %v2006_v4, %v1998_v14  ;;  %v2015_v16 = vadd.f32 %v2007_v8, %v1998_v14 }
0x1af5   : > { %v2001_v17 = vpop.f32.mrb[26].mxu0  ;;  %v2016_v18 = vadd.f32 %v2008_v12, %v1998_v14  ;;  %v2017_v31 = vadd.f32 %v2009_v13, %v1998_v14  ;;  %v2018_v49 = vadd.f32 %v2010_v41, %v1998_v14  ;;  %v2019_v27 = vadd.f32 %v2011_v44, %v1998_v14 }
0x1af6   : > { %v2883_v6 = vpop.f32.mrb[27].mxu0  ;;  %v2020_v11 = vmax.f32 %v2012_v40, 0.0  ;;  %v2021_v43 = vmax.f32 %v2013_v36, 0.0  ;;  %v2022_v21 = vmax.f32 %v2014_v46, 0.0  ;;  %v2023_v22 = vmax.f32 %v2015_v16, 0.0 }
0x1af7   : > { %v2024_v9 = vmax.f32 %v2016_v18, 0.0  ;;  %v2025_v48 = vmax.f32 %v2017_v31, 0.0  ;;  %v2026_v30 = vmax.f32 %v2018_v49, 0.0  ;;  %v2027_v32 = vmax.f32 %v2019_v27, 0.0 }
0x1af8   : > { %v2032_v23 = vpack.c.bf16 %v2021_v43, %v2020_v11  ;;  %v2033_v24 = vpack.c.bf16 %v2023_v22, %v2022_v21 }
0x1af9   : > { %v2034_v29 = vpack.c.bf16 %v2025_v48, %v2024_v9  ;;  %v2035_v33 = vpack.c.bf16 %v2027_v32, %v2026_v30 }
0x1afa   : > { %2888 = vmatprep.mubr.msk.bf16.mxu1 %vm757_vm2, %v2032_v23 }
0x1afb   : > { %2889 = vmatmul.mubr.msk.bf16.vlgmr.msra.gmra.mrb[24].mxu1 %vm757_vm2, %v2033_v24 }
0x1afc   : > { %2892 = vmatprep.mubr.msk.bf16.mxu1 %vm757_vm2, %v2034_v29 }
0x1b03   : > { %2893 = vmatmul.mubr.msk.bf16.gmra.mrb[28].mxu1 %vm757_vm2, %v2035_v33 }
0x1bce   : > { %v2890_v35 = vpop.f32.mrb[24].mxu1 }
0x1bcf   : > { %v3725_v37 = vadd.f32 %v2890_v35, %v2711_v34  ;;  %v2091_v26 = vpop.f32.mrb[25].mxu1 }
0x1bd0   : > { %v3727_v42 = vadd.f32 %v2711_v34, %v2091_v26  ;;  %v2891_v45 = vpop.f32.mrb[26].mxu1 }
0x1bd1   : > { %2125 = vst.msk [vmem:[%s3192_s24 + $0x10] sm:$0xff] %vm2122_vm7, %v3725_v37  ;;  %v3732_v56 = vadd.f32 %v2891_v45, %v2711_v34  ;;  %v2094_v47 = vpop.f32.mrb[27].mxu1  ;;  %v2137_v5 = vsel %vm2122_vm7, %v3725_v37, -inf  ;;  %v2227_v45 = vld [vmem:[%s3944_s28] sm:$0xff] }
0x1bd2   : > { %2123 = vst.msk [vmem:[%s3192_s24] sm:$0xff] %vm2122_vm7, %v3727_v42  ;;  %v3737_v50 = vadd.f32 %v2711_v34, %v2094_v47  ;;  %v2131_v51 = vsel %vm2122_vm7, %v3727_v42, -inf }
0x1bd3   : > { %2126 = vst.msk [vmem:[%s3192_s24 + $0x18] sm:$0xff] %vm2122_vm7, %v3732_v56  ;;  %2132 = vmax.xlane.f32.xlu0 %v2131_v51  ;;  %v2140_v63 = vsel %vm2122_vm7, %v3732_v56, -inf }
0x1bd4   : > { %2124 = vst.msk [vmem:[%s3192_s24 + $0x8] sm:$0xff] %vm2122_vm7, %v3737_v50  ;;  %v2134_v52 = vsel %vm2122_vm7, %v3737_v50, -inf }
0x1bd5   : > { %2135 = vmax.xlane.f32.xlu1 %v2134_v52 }
0x1bd6   : > { %v2894_v53 = vpop.f32.mrb[28].mxu1 }
0x1bd7   : > { %v3751_v54 = vadd.f32 %v2894_v53, %v2711_v34  ;;  %v2107_v55 = vpop.f32.mrb[29].mxu1  ;;  %2138 = vmax.xlane.f32.xlu0 %v2137_v5  ;;  %v2235_v53 = vmul.f32 %v2227_v45, %v3727_v42 }
0x1bd8   : > { %v3753_v57 = vadd.f32 %v2711_v34, %v2107_v55  ;;  %v2895_v58 = vpop.f32.mrb[30].mxu1  ;;  %v2229_v55 = vld [vmem:[%s3944_s28 + $0x10] sm:$0xff] }
0x1bd9   : > { %2129 = vst.msk [vmem:[%s3192_s24 + $0x30] sm:$0xff] %vm2122_vm7, %v3751_v54  ;;  %v3758_v59 = vadd.f32 %v2895_v58, %v2711_v34  ;;  %v2110_v60 = vpop.f32.mrb[31].mxu1  ;;  %v2149_v0 = vsel %vm2122_vm7, %v3751_v54, -inf  ;;  %v2228_v58 = vld [vmem:[%s3944_s28 + $0x8] sm:$0xff] }
0x1bda   : > { %2127 = vst.msk [vmem:[%s3192_s24 + $0x20] sm:$0xff] %vm2122_vm7, %v3753_v57  ;;  %v3763_v61 = vadd.f32 %v2711_v34, %v2110_v60  ;;  %v2143_v62 = vsel %vm2122_vm7, %v3753_v57, -inf }
0x1bdb   : > { %2130 = vst.msk [vmem:[%s3192_s24 + $0x38] sm:$0xff] %vm2122_vm7, %v3758_v59  ;;  %2144 = vmax.xlane.f32.xlu1 %v2143_v62  ;;  %2141 = vmax.xlane.f32.xlu0 %v2140_v63  ;;  %v2152_v2 = vsel %vm2122_vm7, %v3758_v59, -inf  ;;  %v2243_v62 = vsel %vm2122_vm7, %v2235_v53, 0.0 }
0x1bdc   : > { %2128 = vst.msk [vmem:[%s3192_s24 + $0x28] sm:$0xff] %vm2122_vm7, %v3763_v61  ;;  %v2146_v1 = vsel %vm2122_vm7, %v3763_v61, -inf }
0x1bdf   : > { %2150 = vmax.xlane.f32.xlu1 %v2149_v0  ;;  %2147 = vmax.xlane.f32.xlu0 %v2146_v1  ;;  %v2237_v0 = vmul.f32 %v2229_v55, %v3725_v37  ;;  %v2231_v1 = vld [vmem:[%s3944_s28 + $0x20] sm:$0xff] }
0x1be3   : > { %2153 = vmax.xlane.f32.xlu0 %v2152_v2  ;;  %v2230_v2 = vld [vmem:[%s3944_s28 + $0x18] sm:$0xff] }
0x1c60   : > { %v3781_v3 = vpop.xlane.xlu0 %2132 }
0x1c61   : > { %v2155_v4 = vsub.f32 %v3727_v42, %v3781_v3  ;;  %v2236_v42 = vmul.f32 %v2228_v58, %v3737_v50 }
0x1c62   : > { %v3785_v8 = vpop.xlane.xlu1 %2135 }
0x1c63   : > { %v2163_v12 = vmul.f32 1.442695, %v2155_v4  ;;  %v2156_v13 = vsub.f32 %v3737_v50, %v3785_v8  ;;  %v2249_v4 = vsel %vm2122_vm7, %v2237_v0, 0.0  ;;  %v2233_v50 = vld [vmem:[%s3944_s28 + $0x30] sm:$0xff] }
0x1c64   : > { %v3789_v14 = vpop.xlane.xlu0 %2138 }
0x1c65   : > { %2984 = vpow2.f32 %v2163_v12  ;;  %v2165_v15 = vmul.f32 1.442695, %v2156_v13  ;;  %v2157_v40 = vsub.f32 %v3725_v37, %v3789_v14  ;;  %v2239_v12 = vmul.f32 %v2231_v1, %v3753_v57 }
0x1c66   : > { %v2246_v13 = vsel %vm2122_vm7, %v2236_v42, 0.0  ;;  %v2238_v37 = vmul.f32 %v2230_v2, %v3732_v56 }
0x1c67   : > { %2986 = vpow2.f32 %v2165_v15  ;;  %v2167_v36 = vmul.f32 1.442695, %v2157_v40  ;;  %v2232_v15 = vld [vmem:[%s3944_s28 + $0x28] sm:$0xff]  ;;  %v2255_v40 = vsel %vm2122_vm7, %v2239_v12, 0.0 }
0x1c68   : > { %v3793_v46 = vpop.xlane.xlu1 %2144  ;;  %v3795_v16 = vpop.xlane.xlu0 %2141 }
0x1c69   : > { %2988 = vpow2.f32 %v2167_v36  ;;  %v2159_v17 = vsub.f32 %v3753_v57, %v3793_v46  ;;  %v2158_v18 = vsub.f32 %v3732_v56, %v3795_v16  ;;  %v2241_v36 = vmul.f32 %v2233_v50, %v3751_v54  ;;  %v2234_v56 = vld [vmem:[%s3944_s28 + $0x38] sm:$0xff] }
0x1c6a   : > { %v2252_v57 = vsel %vm2122_vm7, %v2238_v37, 0.0 }
0x1c6b   : > { %v2171_v31 = vmul.f32 1.442695, %v2159_v17  ;;  %v2169_v41 = vmul.f32 1.442695, %v2158_v18  ;;  %v2240_v17 = vmul.f32 %v2232_v15, %v3763_v61  ;;  %v2261_v18 = vsel %vm2122_vm7, %v2241_v36, 0.0 }
0x1c6c   : > { %v3801_v6 = vpop.xlane.xlu1 %2150  ;;  %v3803_v11 = vpop.xlane.xlu0 %2147 }
0x1c6d   : > { %2990 = vpow2.f32 %v2171_v31  ;;  %v2161_v43 = vsub.f32 %v3751_v54, %v3801_v6  ;;  %v2160_v21 = vsub.f32 %v3763_v61, %v3803_v11  ;;  %v2258_v31 = vsel %vm2122_vm7, %v2240_v17, 0.0 }
0x1c6e   : > { %2992 = vpow2.f32 %v2169_v41  ;;  %v2242_v41 = vmul.f32 %v2234_v56, %v3758_v59 }
0x1c6f   : > { %v2985_v22 = vpop.eup %2984  ;;  %v2175_v44 = vmul.f32 1.442695, %v2161_v43  ;;  %v2173_v9 = vmul.f32 1.442695, %v2160_v21 }
0x1c70   : > { %v3809_v48 = vpop.xlane.xlu0 %2153  ;;  %v2179_v23 = vsel %vm2122_vm7, %v2985_v22, 0.0  ;;  %v2264_v54 = vsel %vm2122_vm7, %v2242_v41, 0.0 }
0x1c71   : > { %v2987_v24 = vpop.eup %2986  ;;  %2994 = vpow2.f32 %v2175_v44  ;;  %v2162_v49 = vsub.f32 %v3758_v59, %v3809_v48  ;;  %2180 = vadd.xlane.f32.xlu1 %v2179_v23 }
0x1c72   : > { %2996 = vpow2.f32 %v2173_v9  ;;  %v2182_v27 = vsel %vm2122_vm7, %v2987_v24, 0.0 }
0x1c73   : > { %v2989_v29 = vpop.eup %2988  ;;  %v2177_v30 = vmul.f32 1.442695, %v2162_v49  ;;  %2183 = vadd.xlane.f32.xlu0 %v2182_v27 }
0x1c74   : > { %v2185_v32 = vsel %vm2122_vm7, %v2989_v29, 0.0 }
0x1c75   : > { %2998 = vpow2.f32 %v2177_v30  ;;  %2186 = vadd.xlane.f32.xlu1 %v2185_v32 }
0x1c77   : > { %v2991_v33 = vpop.eup %2990 }
0x1c78   : > { %v2993_v34 = vpop.eup %2992  ;;  %v2191_v35 = vsel %vm2122_vm7, %v2991_v33, 0.0 }
0x1c79   : > { %2192 = vadd.xlane.f32.xlu1 %v2191_v35  ;;  %v2188_v26 = vsel %vm2122_vm7, %v2993_v34, 0.0 }
0x1c7a   : > { %2189 = vadd.xlane.f32.xlu0 %v2188_v26 }
0x1c7b   : > { %v2995_v47 = vpop.eup %2994 }
0x1c7c   : > { %v2997_v51 = vpop.eup %2996  ;;  %v2197_v52 = vsel %vm2122_vm7, %v2995_v47, 0.0 }
0x1c7d   : > { %2198 = vadd.xlane.f32.xlu1 %v2197_v52  ;;  %v2194_v5 = vsel %vm2122_vm7, %v2997_v51, 0.0 }
0x1c7e   : > { %2195 = vadd.xlane.f32.xlu0 %v2194_v5 }
0x1c7f   : > { %v2999_v60 = vpop.eup %2998 }
0x1c80   : > { %v2200_v63 = vsel %vm2122_vm7, %v2999_v60, 0.0 }
0x1c81   : > { %2244 = vadd.xlane.f32.xlu1 %v2243_v62 }
0x1c82   : > { %2201 = vadd.xlane.f32.xlu0 %v2200_v63 }
0x1c85   : > { %2250 = vadd.xlane.f32.xlu1 %v2249_v4 }
0x1c86   : > { %2247 = vadd.xlane.f32.xlu0 %v2246_v13 }
0x1c89   : > { %2256 = vadd.xlane.f32.xlu1 %v2255_v40 }
0x1c8a   : > { %2253 = vadd.xlane.f32.xlu0 %v2252_v57 }
0x1c8d   : > { %2262 = vadd.xlane.f32.xlu1 %v2261_v18 }
0x1c8e   : > { %2259 = vadd.xlane.f32.xlu0 %v2258_v31 }
0x1c92   : > { %2265 = vadd.xlane.f32.xlu0 %v2264_v54 }
0x1cfe   : > { %v2181_v43 = vpop.xlane.xlu1 %2180 }
0x1cff   : > { %3000 = vlog2.f32 %v2181_v43 }
0x1d00   : > { %v2184_v21 = vpop.xlane.xlu0 %2183 }
0x1d01   : > { %3002 = vlog2.f32 %v2184_v21 }
0x1d02   : > { %v2187_v61 = vpop.xlane.xlu1 %2186 }
0x1d03   : > { %3004 = vlog2.f32 %v2187_v61 }
0x1d06   : > { %v2193_v22 = vpop.xlane.xlu1 %2192 }
0x1d07   : > { %3006 = vlog2.f32 %v2193_v22  ;;  %v2190_v44 = vpop.xlane.xlu0 %2189 }
0x1d08   : > { %3008 = vlog2.f32 %v2190_v44 }
0x1d09   : > { %v3001_v9 = vpop.eup %3000 }
0x1d0a   : > { %v2204_v23 = vmul.f32 0.6931472, %v3001_v9  ;;  %v2199_v24 = vpop.xlane.xlu1 %2198 }
0x1d0b   : > { %v3003_v49 = vpop.eup %3002  ;;  %3010 = vlog2.f32 %v2199_v24  ;;  %v2196_v59 = vpop.xlane.xlu0 %2195 }
0x1d0c   : > { %3012 = vlog2.f32 %v2196_v59  ;;  %v2219_v27 = vadd.f32 %v2204_v23, %v3781_v3  ;;  %v2206_v30 = vmul.f32 0.6931472, %v3003_v49 }
0x1d0d   : > { %v3005_v29 = vpop.eup %3004 }
0x1d0e   : > { %v2208_v32 = vmul.f32 0.6931472, %v3005_v29  ;;  %v2245_v33 = vpop.xlane.xlu1 %2244  ;;  %v2220_v53 = vadd.f32 %v2206_v30, %v3785_v8 }
0x1d0f   : > { %v2202_v34 = vpop.xlane.xlu0 %2201  ;;  %v2267_v35 = vsub.f32 %v2219_v27, %v2245_v33 }
0x1d10   : > { %3014 = vlog2.f32 %v2202_v34  ;;  %v2221_v26 = vadd.f32 %v2208_v32, %v3789_v14 }
0x1d11   : > { %v3007_v45 = vpop.eup %3006  ;;  %v2317_v3 = vmul.f32 %v3545_v7, %v2267_v35 }
0x1d12   : > { %v3009_v47 = vpop.eup %3008  ;;  %v2212_v51 = vmul.f32 0.6931472, %v3007_v45  ;;  %v2251_v52 = vpop.xlane.xlu1 %2250 }
0x1d13   : > { %v2210_v5 = vmul.f32 0.6931472, %v3009_v47  ;;  %v2269_v55 = vsub.f32 %v2221_v26, %v2251_v52  ;;  %v2248_v58 = vpop.xlane.xlu0 %2247  ;;  %v2333_v37 = vsel %vm1650_vm4, %v2317_v3, 0.0 }
0x1d14   : > { %v2268_v60 = vsub.f32 %v2220_v53, %v2248_v58  ;;  %v2223_v62 = vadd.f32 %v2212_v51, %v3793_v46 }
0x1d15   : > { %v3011_v63 = vpop.eup %3010  ;;  %v2222_v0 = vadd.f32 %v2210_v5, %v3795_v16  ;;  %v2319_v14 = vmul.f32 %v3547_v10, %v2269_v55 }
0x1d16   : > { %v3013_v42 = vpop.eup %3012  ;;  %v2216_v1 = vmul.f32 0.6931472, %v3011_v63  ;;  %v2318_v2 = vmul.f32 %v3561_v19, %v2268_v60  ;;  %v2257_v4 = vpop.xlane.xlu1 %2256 }
0x1d17   : > { %v2214_v12 = vmul.f32 0.6931472, %v3013_v42  ;;  %v2271_v8 = vsub.f32 %v2223_v62, %v2257_v4  ;;  %v2254_v13 = vpop.xlane.xlu0 %2253  ;;  %v2336_v36 = vsel %vm1650_vm4, %v2319_v14, 0.0 }
0x1d18   : > { %v2334_v7 = vsel %vm1650_vm4, %v2318_v2, 0.0  ;;  %v2270_v50 = vsub.f32 %v2222_v0, %v2254_v13  ;;  %v2225_v46 = vadd.f32 %v2216_v1, %v3801_v6 }
0x1d19   : > { %v2335_v15 = vadd.f32 %v2334_v7, %v2333_v37  ;;  %v2224_v16 = vadd.f32 %v2214_v12, %v3803_v11  ;;  %v2321_v10 = vmul.f32 %v3563_v20, %v2271_v8 }
0x1d1a   : > { %v3015_v40 = vpop.eup %3014  ;;  %v2320_v19 = vmul.f32 %v3579_v25, %v2270_v50  ;;  %v2263_v57 = vpop.xlane.xlu1 %2262 }
0x1d1b   : > { %v2218_v17 = vmul.f32 0.6931472, %v3015_v40  ;;  %v2337_v56 = vadd.f32 %v2336_v36, %v2335_v15  ;;  %v2273_v18 = vsub.f32 %v2225_v46, %v2263_v57  ;;  %v2260_v31 = vpop.xlane.xlu0 %2259  ;;  %v2340_v11 = vsel %vm1650_vm4, %v2321_v10, 0.0 }
0x1d1c   : > { %v2338_v41 = vsel %vm1650_vm4, %v2320_v19, 0.0  ;;  %v2272_v54 = vsub.f32 %v2224_v16, %v2260_v31 }
0x1d1d   : > { %v2339_v43 = vadd.f32 %v2338_v41, %v2337_v56  ;;  %v2226_v6 = vadd.f32 %v2218_v17, %v3809_v48  ;;  %v2323_v21 = vmul.f32 %v3581_v28, %v2273_v18 }
0x1d1e   : > { %v2322_v20 = vmul.f32 %v3597_v38, %v2272_v54 }
0x1d1f   : > { %v2341_v61 = vadd.f32 %v2340_v11, %v2339_v43  ;;  %v2266_v25 = vpop.xlane.xlu0 %2265  ;;  %v2344_v23 = vsel %vm1650_vm4, %v2323_v21, 0.0 }
0x1d20   : > { %v2342_v22 = vsel %vm1650_vm4, %v2322_v20, 0.0  ;;  %v2274_v44 = vsub.f32 %v2226_v6, %v2266_v25 }
0x1d21   : > { %v2343_v9 = vadd.f32 %v2342_v22, %v2341_v61 }
0x1d22   : > { %v2324_v24 = vmul.f32 %v3599_v39, %v2274_v44 }
0x1d23   : > { %v2345_v49 = vadd.f32 %v2344_v23, %v2343_v9 }
0x1d24   : > { %v2332_v59 = vmul.f32 0.0, %v2324_v24 }
0x1d26   : > { %v2346_v48 = vsel %vm1650_vm4, %v2332_v59, 0.0 }
0x1d27   : > { %v2347_v27 = vadd.f32 %v2346_v48, %v2345_v49 }
0x1d29   : > { %2348 = vst.msk [vmem:[%s3197_s26] sm:$0xff] %vm1650_vm4, %v2347_v27 }
0x1d2a PF: > { %s3945_s1 = sld [smem:[#allocation4_spill]] }
0x1d30   : > { %s35_s29 = sadd.s32 1, %s3945_s1  }
0x1d31   : > { %p32_p6 = scmp.ge.s32.totalorder %s35_s29, 5  }
0x1d33   :  { %34 = sbr.rel (!%p32_p6) target bundleno = 11 (0xb), region = 208 }

</bundles_post_ra>
